<compile_context>
chip_gen: v7x
topology: tpu7x:2x2x1
jax: 0.10.0
libtpu: 0.0.40
codegen_flags: <defaults>
</compile_context>

<pallas_src>
import math
import numpy as np
import jax
import jax.numpy as jnp
from jax.experimental import pallas as pl

# ----- small synthetic BERT config (BERT-base would be 768/12/12/3072) -----
VOCAB      = 64          # vocab size after tokenizer.add_tokens(['[TRI]'])
MAX_LEN    = 8           # max_length arg of BertModelCross
SEQ        = 2 * MAX_LEN # sentence pairs are concatenated -> 2 * max_length
HIDDEN     = 32
NUM_HEADS  = 2
HEAD_DIM   = HIDDEN // NUM_HEADS
FFN        = 4 * HIDDEN
N_LAYERS   = 2
MAX_POS    = 32
TARGET_DIM = 16
LN_EPS     = 1e-12       # BERT LayerNorm eps


# --------------------------------------------------------------------------
# fused kernel
# --------------------------------------------------------------------------
def _layernorm(x, gamma, beta):
    mean = jnp.mean(x, axis=-1, keepdims=True)
    var = jnp.mean(jnp.square(x - mean), axis=-1, keepdims=True)
    return (x - mean) * jax.lax.rsqrt(var + LN_EPS) * gamma + beta


def fused_bert_kernel(word_ref, pos_ref, typ_ref, eg_ref, eb_ref,
                      mask_ref, clssel_ref,
                      wq_ref, bq_ref, wk_ref, bk_ref, wv_ref, bv_ref,
                      wo_ref, bo_ref, g1_ref, b1_ref,
                      w1_ref, bi1_ref, w2_ref, bi2_ref, g2_ref, b2_ref,
                      wp_ref, bp_ref, wd_ref, bd_ref, out_ref):
    B = mask_ref.shape[0]
    S = SEQ
    scale = 1.0 / math.sqrt(HEAD_DIM)

    # --- embeddings: word + position + token_type(0), then LayerNorm -------
    x = word_ref[...] + pos_ref[...] + typ_ref[...]           # (B*S, H) f32
    h = _layernorm(x, eg_ref[...], eb_ref[...])

    # --- transformer encoder layers (statically unrolled, L=2) -------------
    for l in range(N_LAYERS):
        h_bf = h.astype(jnp.bfloat16)

        # per-head Q/K/V projections: weights pre-split per head, so no lane
        # slicing of activations is needed.  Each is (B*S, HEAD_DIM) f32.
        q, k, v = [], [], []
        for hd in range(NUM_HEADS):
            q.append(jnp.dot(h_bf, wq_ref[l, hd],
                             preferred_element_type=jnp.float32) + bq_ref[l, hd])
            k.append(jnp.dot(h_bf, wk_ref[l, hd],
                             preferred_element_type=jnp.float32) + bk_ref[l, hd])
            v.append(jnp.dot(h_bf, wv_ref[l, hd],
                             preferred_element_type=jnp.float32) + bv_ref[l, hd])

        # attention: static loop over batch (8-aligned sublane row slices);
        # per-head output projection is folded in and summed, so there is no
        # lane-axis concatenation of heads.
        attn_rows = []
        for b in range(B):
            rows = slice(b * S, (b + 1) * S)
            mask_b = mask_ref[b]                               # (1, S) additive key mask
            ctx_out = jnp.zeros((S, HIDDEN), jnp.float32)
            for hd in range(NUM_HEADS):
                qb, kb, vb = q[hd][rows], k[hd][rows], v[hd][rows]   # (S, HEAD_DIM)
                scores = jax.lax.dot_general(
                    qb, kb, (((1,), (1,)), ((), ())),
                    preferred_element_type=jnp.float32) * scale + mask_b   # (S, S)
                scores = scores - jnp.max(scores, axis=-1, keepdims=True)
                e = jnp.exp(scores)
                probs = e * pl.reciprocal(jnp.sum(e, axis=-1, keepdims=True),
                                          approx=True)
                ctx = jnp.dot(probs, vb, preferred_element_type=jnp.float32)  # (S, HEAD_DIM)
                ctx_out = ctx_out + jnp.dot(ctx.astype(jnp.bfloat16), wo_ref[l, hd],
                                            preferred_element_type=jnp.float32)
            attn_rows.append(ctx_out)
        attn = jnp.concatenate(attn_rows, axis=0) + bo_ref[l]  # (B*S, H)

        h1 = _layernorm(h + attn, g1_ref[l], b1_ref[l])

        inter = jnp.dot(h1.astype(jnp.bfloat16), w1_ref[l],
                        preferred_element_type=jnp.float32) + bi1_ref[l]
        # TODO(synk): HuggingFace BERT uses exact erf-GELU; tanh approximation used here.
        inter = jax.nn.gelu(inter, approximate=True)
        ffn = jnp.dot(inter.astype(jnp.bfloat16), w2_ref[l],
                      preferred_element_type=jnp.float32) + bi2_ref[l]

        h = _layernorm(h1 + ffn, g2_ref[l], b2_ref[l])

    # --- pooler (tanh(CLS @ Wp + bp)) fused with final dense ---------------
    # CLS rows (row b*S of h) extracted with a tiny selector matmul -> (B, H);
    # avoids sub-8-sublane gathers.
    cls = jnp.dot(clssel_ref[...], h, preferred_element_type=jnp.float32)
    pooled = jnp.tanh(jnp.dot(cls.astype(jnp.bfloat16), wp_ref[...],
                              preferred_element_type=jnp.float32) + bp_ref[...])
    out_ref[...] = (jnp.dot(pooled.astype(jnp.bfloat16), wd_ref[...],
                            preferred_element_type=jnp.float32) + bd_ref[...])


# --------------------------------------------------------------------------
# wrapper: one fused pallas_call for the whole forward
# --------------------------------------------------------------------------
@jax.jit
def bert_cross_forward(params, input_ids, attention_mask):
    B, S = input_ids.shape
    # embedding gather + positional tiling kept as JAX glue (no Pallas gather needed)
    word = jnp.take(params["word_emb"], input_ids.reshape(-1), axis=0)   # (B*S, H)
    pos = jnp.tile(params["pos_emb"][:S], (B, 1))                        # (B*S, H)
    typ = params["type_emb"][0:1]                                        # (1, H) token_type=0
    # BERT extended attention mask: (1 - mask) * -10000 over key positions
    mask_bias = ((1.0 - attention_mask.astype(jnp.float32)) * -10000.0)[:, None, :]  # (B,1,S)
    # selector picking row b*S (the [CLS] row of each pair) out of (B*S, H)
    cls_sel = jax.nn.one_hot(jnp.arange(B) * S, B * S, dtype=jnp.float32)            # (B, B*S)

    return pl.pallas_call(
        fused_bert_kernel,
        out_shape=jax.ShapeDtypeStruct((B, TARGET_DIM), jnp.float32),
    )(word, pos, typ, params["emb_ln_g"], params["emb_ln_b"],
      mask_bias, cls_sel,
      params["wq"], params["bq"], params["wk"], params["bk"],
      params["wv"], params["bv"], params["wo"], params["bo"],
      params["g1"], params["b1"], params["w1"], params["bi1"],
      params["w2"], params["bi2"], params["g2"], params["b2"],
      params["pooler_w"], params["pooler_b"],
      params["dense_w"], params["dense_b"])


# --------------------------------------------------------------------------
# deterministic parameter init + tokenizer-output preprocessing (glue)
# --------------------------------------------------------------------------
def init_params(key):
    keys = iter(jax.random.split(key, 64))

    def w_init(shape, dtype=jnp.bfloat16):
        return (0.02 * jax.random.normal(next(keys), shape, jnp.float32)).astype(dtype)

    L, NH, H, HD, F = N_LAYERS, NUM_HEADS, HIDDEN, HEAD_DIM, FFN
    params = dict(
        # embeddings / LN in f32
        word_emb=w_init((VOCAB, H), jnp.float32),
        pos_emb=w_init((MAX_POS, H), jnp.float32),
        type_emb=w_init((2, H), jnp.float32),
        emb_ln_g=jnp.ones((1, H), jnp.float32),
        emb_ln_b=jnp.zeros((1, H), jnp.float32),
        # per-layer weights stacked on a leading layer axis; Q/K/V/O pre-split per head
        wq=w_init((L, NH, H, HD)), bq=jnp.zeros((L, NH, 1, HD), jnp.float32),
        wk=w_init((L, NH, H, HD)), bk=jnp.zeros((L, NH, 1, HD), jnp.float32),
        wv=w_init((L, NH, H, HD)), bv=jnp.zeros((L, NH, 1, HD), jnp.float32),
        wo=w_init((L, NH, HD, H)), bo=jnp.zeros((L, 1, H), jnp.float32),
        g1=jnp.ones((L, 1, H), jnp.float32), b1=jnp.zeros((L, 1, H), jnp.float32),
        w1=w_init((L, H, F)), bi1=jnp.zeros((L, 1, F), jnp.float32),
        w2=w_init((L, F, H)), bi2=jnp.zeros((L, 1, H), jnp.float32),
        g2=jnp.ones((L, 1, H), jnp.float32), b2=jnp.zeros((L, 1, H), jnp.float32),
        # pooler + dense head
        pooler_w=w_init((H, H)), pooler_b=jnp.zeros((1, H), jnp.float32),
        dense_w=w_init((H, TARGET_DIM)), dense_b=jnp.zeros((1, TARGET_DIM), jnp.float32),
    )
    return params


def pair_preprocess(input_ids, attention_mask):
    """Mirror the PyTorch forward: odd rows drop their leading [CLS] token and
    pad with 0, then consecutive (even, odd) rows are concatenated into one
    cross-encoder sequence of length 2*max_length."""
    ids = np.array(input_ids)
    msk = np.array(attention_mask)
    for i in range(ids.shape[0]):
        if i % 2 == 1:
            ids[i] = np.concatenate([ids[i, 1:], [0]])
            msk[i] = np.concatenate([msk[i, 1:], [0]])
    ids = ids.reshape(ids.shape[0] // 2, 2 * MAX_LEN)
    msk = msk.reshape(msk.shape[0] // 2, 2 * MAX_LEN)
    return jnp.asarray(ids, jnp.int32), jnp.asarray(msk, jnp.float32)


# --------------------------------------------------------------------------
if __name__ == "__main__":
    key = jax.random.PRNGKey(0)
    key, k_ids = jax.random.split(key)

    # synthetic "tokenizer output": 4 sentences -> 2 cross-encoder pairs
    # TODO(synk): BertTokenizer string tokenization has no Pallas equivalent;
    # integer ids/mask are generated directly.
    raw_ids = np.array(jax.random.randint(k_ids, (4, MAX_LEN), 1, VOCAB,
                                          dtype=jnp.int32))
    raw_mask = np.ones((4, MAX_LEN), np.int32)
    raw_ids[1, -2:] = 0; raw_mask[1, -2:] = 0      # some padding
    raw_ids[3, -3:] = 0; raw_mask[3, -3:] = 0

    input_ids, attention_mask = pair_preprocess(raw_ids, raw_mask)   # (2, 16)

    params = init_params(key)
    out = bert_cross_forward(params, input_ids, attention_mask)      # (2, TARGET_DIM)
    jax.block_until_ready(out)

    assert out.shape == (input_ids.shape[0], TARGET_DIM)
    assert bool(jnp.all(jnp.isfinite(out)))
    print("KERNEL_OK")
</pallas_src>

<mosaic_0001>
module attributes {stable_mosaic.version = 11 : i64} {
  func.func @fused_bert_kernel(%arg0: memref<32x32xf32, #tpu.memory_space<vmem>>, %arg1: memref<32x32xf32, #tpu.memory_space<vmem>>, %arg2: memref<1x32xf32, #tpu.memory_space<vmem>>, %arg3: memref<1x32xf32, #tpu.memory_space<vmem>>, %arg4: memref<1x32xf32, #tpu.memory_space<vmem>>, %arg5: memref<2x1x16xf32, #tpu.memory_space<vmem>>, %arg6: memref<2x32xf32, #tpu.memory_space<vmem>>, %arg7: memref<2x2x32x16xbf16, #tpu.memory_space<vmem>>, %arg8: memref<2x2x1x16xf32, #tpu.memory_space<vmem>>, %arg9: memref<2x2x32x16xbf16, #tpu.memory_space<vmem>>, %arg10: memref<2x2x1x16xf32, #tpu.memory_space<vmem>>, %arg11: memref<2x2x32x16xbf16, #tpu.memory_space<vmem>>, %arg12: memref<2x2x1x16xf32, #tpu.memory_space<vmem>>, %arg13: memref<2x2x16x32xbf16, #tpu.memory_space<vmem>>, %arg14: memref<2x1x32xf32, #tpu.memory_space<vmem>>, %arg15: memref<2x1x32xf32, #tpu.memory_space<vmem>>, %arg16: memref<2x1x32xf32, #tpu.memory_space<vmem>>, %arg17: memref<2x32x128xbf16, #tpu.memory_space<vmem>>, %arg18: memref<2x1x128xf32, #tpu.memory_space<vmem>>, %arg19: memref<2x128x32xbf16, #tpu.memory_space<vmem>>, %arg20: memref<2x1x32xf32, #tpu.memory_space<vmem>>, %arg21: memref<2x1x32xf32, #tpu.memory_space<vmem>>, %arg22: memref<2x1x32xf32, #tpu.memory_space<vmem>>, %arg23: memref<32x32xbf16, #tpu.memory_space<vmem>>, %arg24: memref<1x32xf32, #tpu.memory_space<vmem>>, %arg25: memref<32x16xbf16, #tpu.memory_space<vmem>>, %arg26: memref<1x16xf32, #tpu.memory_space<vmem>>, %arg27: memref<2x16xf32, #tpu.memory_space<vmem>>) attributes {dimension_semantics = [], scalar_prefetch = 0 : i64, scratch_operands = 0 : i64, tpu.core_type = #tpu.core_type<tc>} {
    %c0 = arith.constant 0 : index
    %c0_0 = arith.constant 0 : index
    %0 = vector.load %arg0[%c0, %c0_0] : memref<32x32xf32, #tpu.memory_space<vmem>>, vector<32x32xf32>
    %c0_1 = arith.constant 0 : index
    %c0_2 = arith.constant 0 : index
    %1 = vector.load %arg1[%c0_1, %c0_2] : memref<32x32xf32, #tpu.memory_space<vmem>>, vector<32x32xf32>
    %2 = arith.addf %0, %1 : vector<32x32xf32>
    %c0_3 = arith.constant 0 : index
    %c0_4 = arith.constant 0 : index
    %3 = vector.load %arg2[%c0_3, %c0_4] : memref<1x32xf32, #tpu.memory_space<vmem>>, vector<1x32xf32>
    %4 = vector.broadcast %3 : vector<1x32xf32> to vector<32x32xf32>
    %5 = arith.addf %2, %4 : vector<32x32xf32>
    %c0_5 = arith.constant 0 : index
    %c0_6 = arith.constant 0 : index
    %6 = vector.load %arg3[%c0_5, %c0_6] : memref<1x32xf32, #tpu.memory_space<vmem>>, vector<1x32xf32>
    %c0_7 = arith.constant 0 : index
    %c0_8 = arith.constant 0 : index
    %7 = vector.load %arg4[%c0_7, %c0_8] : memref<1x32xf32, #tpu.memory_space<vmem>>, vector<1x32xf32>
    %cst = arith.constant dense<0.000000e+00> : vector<32xf32>
    %8 = vector.multi_reduction <add>, %5, %cst [1] : vector<32x32xf32> to vector<32xf32>
    %9 = vector.shape_cast %8 : vector<32xf32> to vector<32x1xf32>
    %cst_9 = arith.constant 3.200000e+01 : f32
    %10 = vector.broadcast %cst_9 : f32 to vector<32x1xf32>
    %11 = arith.divf %9, %10 : vector<32x1xf32>
    %12 = vector.broadcast %11 : vector<32x1xf32> to vector<32x32xf32>
    %13 = arith.subf %5, %12 : vector<32x32xf32>
    %14 = arith.mulf %13, %13 : vector<32x32xf32>
    %cst_10 = arith.constant dense<0.000000e+00> : vector<32xf32>
    %15 = vector.multi_reduction <add>, %14, %cst_10 [1] : vector<32x32xf32> to vector<32xf32>
    %16 = vector.shape_cast %15 : vector<32xf32> to vector<32x1xf32>
    %cst_11 = arith.constant 3.200000e+01 : f32
    %17 = vector.broadcast %cst_11 : f32 to vector<32x1xf32>
    %18 = arith.divf %16, %17 : vector<32x1xf32>
    %19 = vector.broadcast %11 : vector<32x1xf32> to vector<32x32xf32>
    %20 = arith.subf %5, %19 : vector<32x32xf32>
    %cst_12 = arith.constant 9.99999996E-13 : f32
    %21 = vector.broadcast %cst_12 : f32 to vector<32x1xf32>
    %22 = arith.addf %18, %21 : vector<32x1xf32>
    %23 = math.rsqrt %22 : vector<32x1xf32>
    %24 = vector.broadcast %23 : vector<32x1xf32> to vector<32x32xf32>
    %25 = arith.mulf %20, %24 : vector<32x32xf32>
    %26 = vector.broadcast %6 : vector<1x32xf32> to vector<32x32xf32>
    %27 = arith.mulf %25, %26 : vector<32x32xf32>
    %28 = vector.broadcast %7 : vector<1x32xf32> to vector<32x32xf32>
    %29 = arith.addf %27, %28 : vector<32x32xf32>
    %30 = arith.truncf %29 : vector<32x32xf32> to vector<32x32xbf16>
    %c0_13 = arith.constant 0 : index
    %c0_14 = arith.constant 0 : index
    %c0_15 = arith.constant 0 : index
    %c0_16 = arith.constant 0 : index
    %31 = vector.load %arg7[%c0_13, %c0_14, %c0_15, %c0_16] : memref<2x2x32x16xbf16, #tpu.memory_space<vmem>>, vector<1x1x32x16xbf16>
    %32 = vector.shape_cast %31 : vector<1x1x32x16xbf16> to vector<32x16xbf16>
    %cst_17 = arith.constant dense<0.000000e+00> : vector<32x16xf32>
    %33 = tpu.matmul %30, %32, %cst_17 {dimension_numbers = #tpu.dot_dimension_numbers<[1], [0], [0], [1], [0, 0, 1, 1], [], []>} : vector<32x32xbf16>, vector<32x16xbf16>, vector<32x16xf32> -> vector<32x16xf32>
    %c0_18 = arith.constant 0 : index
    %c0_19 = arith.constant 0 : index
    %c0_20 = arith.constant 0 : index
    %c0_21 = arith.constant 0 : index
    %34 = vector.load %arg8[%c0_18, %c0_19, %c0_20, %c0_21] : memref<2x2x1x16xf32, #tpu.memory_space<vmem>>, vector<1x1x1x16xf32>
    %35 = vector.shape_cast %34 : vector<1x1x1x16xf32> to vector<1x16xf32>
    %36 = vector.broadcast %35 : vector<1x16xf32> to vector<32x16xf32>
    %37 = arith.addf %33, %36 : vector<32x16xf32>
    %c0_22 = arith.constant 0 : index
    %c0_23 = arith.constant 0 : index
    %c0_24 = arith.constant 0 : index
    %c0_25 = arith.constant 0 : index
    %38 = vector.load %arg9[%c0_22, %c0_23, %c0_24, %c0_25] : memref<2x2x32x16xbf16, #tpu.memory_space<vmem>>, vector<1x1x32x16xbf16>
    %39 = vector.shape_cast %38 : vector<1x1x32x16xbf16> to vector<32x16xbf16>
    %cst_26 = arith.constant dense<0.000000e+00> : vector<32x16xf32>
    %40 = tpu.matmul %30, %39, %cst_26 {dimension_numbers = #tpu.dot_dimension_numbers<[1], [0], [0], [1], [0, 0, 1, 1], [], []>} : vector<32x32xbf16>, vector<32x16xbf16>, vector<32x16xf32> -> vector<32x16xf32>
    %c0_27 = arith.constant 0 : index
    %c0_28 = arith.constant 0 : index
    %c0_29 = arith.constant 0 : index
    %c0_30 = arith.constant 0 : index
    %41 = vector.load %arg10[%c0_27, %c0_28, %c0_29, %c0_30] : memref<2x2x1x16xf32, #tpu.memory_space<vmem>>, vector<1x1x1x16xf32>
    %42 = vector.shape_cast %41 : vector<1x1x1x16xf32> to vector<1x16xf32>
    %43 = vector.broadcast %42 : vector<1x16xf32> to vector<32x16xf32>
    %44 = arith.addf %40, %43 : vector<32x16xf32>
    %c0_31 = arith.constant 0 : index
    %c0_32 = arith.constant 0 : index
    %c0_33 = arith.constant 0 : index
    %c0_34 = arith.constant 0 : index
    %45 = vector.load %arg11[%c0_31, %c0_32, %c0_33, %c0_34] : memref<2x2x32x16xbf16, #tpu.memory_space<vmem>>, vector<1x1x32x16xbf16>
    %46 = vector.shape_cast %45 : vector<1x1x32x16xbf16> to vector<32x16xbf16>
    %cst_35 = arith.constant dense<0.000000e+00> : vector<32x16xf32>
    %47 = tpu.matmul %30, %46, %cst_35 {dimension_numbers = #tpu.dot_dimension_numbers<[1], [0], [0], [1], [0, 0, 1, 1], [], []>} : vector<32x32xbf16>, vector<32x16xbf16>, vector<32x16xf32> -> vector<32x16xf32>
    %c0_36 = arith.constant 0 : index
    %c0_37 = arith.constant 0 : index
    %c0_38 = arith.constant 0 : index
    %c0_39 = arith.constant 0 : index
    %48 = vector.load %arg12[%c0_36, %c0_37, %c0_38, %c0_39] : memref<2x2x1x16xf32, #tpu.memory_space<vmem>>, vector<1x1x1x16xf32>
    %49 = vector.shape_cast %48 : vector<1x1x1x16xf32> to vector<1x16xf32>
    %50 = vector.broadcast %49 : vector<1x16xf32> to vector<32x16xf32>
    %51 = arith.addf %47, %50 : vector<32x16xf32>
    %c0_40 = arith.constant 0 : index
    %c1 = arith.constant 1 : index
    %c0_41 = arith.constant 0 : index
    %c0_42 = arith.constant 0 : index
    %52 = vector.load %arg7[%c0_40, %c1, %c0_41, %c0_42] : memref<2x2x32x16xbf16, #tpu.memory_space<vmem>>, vector<1x1x32x16xbf16>
    %53 = vector.shape_cast %52 : vector<1x1x32x16xbf16> to vector<32x16xbf16>
    %cst_43 = arith.constant dense<0.000000e+00> : vector<32x16xf32>
    %54 = tpu.matmul %30, %53, %cst_43 {dimension_numbers = #tpu.dot_dimension_numbers<[1], [0], [0], [1], [0, 0, 1, 1], [], []>} : vector<32x32xbf16>, vector<32x16xbf16>, vector<32x16xf32> -> vector<32x16xf32>
    %c0_44 = arith.constant 0 : index
    %c1_45 = arith.constant 1 : index
    %c0_46 = arith.constant 0 : index
    %c0_47 = arith.constant 0 : index
    %55 = vector.load %arg8[%c0_44, %c1_45, %c0_46, %c0_47] : memref<2x2x1x16xf32, #tpu.memory_space<vmem>>, vector<1x1x1x16xf32>
    %56 = vector.shape_cast %55 : vector<1x1x1x16xf32> to vector<1x16xf32>
    %57 = vector.broadcast %56 : vector<1x16xf32> to vector<32x16xf32>
    %58 = arith.addf %54, %57 : vector<32x16xf32>
    %c0_48 = arith.constant 0 : index
    %c1_49 = arith.constant 1 : index
    %c0_50 = arith.constant 0 : index
    %c0_51 = arith.constant 0 : index
    %59 = vector.load %arg9[%c0_48, %c1_49, %c0_50, %c0_51] : memref<2x2x32x16xbf16, #tpu.memory_space<vmem>>, vector<1x1x32x16xbf16>
    %60 = vector.shape_cast %59 : vector<1x1x32x16xbf16> to vector<32x16xbf16>
    %cst_52 = arith.constant dense<0.000000e+00> : vector<32x16xf32>
    %61 = tpu.matmul %30, %60, %cst_52 {dimension_numbers = #tpu.dot_dimension_numbers<[1], [0], [0], [1], [0, 0, 1, 1], [], []>} : vector<32x32xbf16>, vector<32x16xbf16>, vector<32x16xf32> -> vector<32x16xf32>
    %c0_53 = arith.constant 0 : index
    %c1_54 = arith.constant 1 : index
    %c0_55 = arith.constant 0 : index
    %c0_56 = arith.constant 0 : index
    %62 = vector.load %arg10[%c0_53, %c1_54, %c0_55, %c0_56] : memref<2x2x1x16xf32, #tpu.memory_space<vmem>>, vector<1x1x1x16xf32>
    %63 = vector.shape_cast %62 : vector<1x1x1x16xf32> to vector<1x16xf32>
    %64 = vector.broadcast %63 : vector<1x16xf32> to vector<32x16xf32>
    %65 = arith.addf %61, %64 : vector<32x16xf32>
    %c0_57 = arith.constant 0 : index
    %c1_58 = arith.constant 1 : index
    %c0_59 = arith.constant 0 : index
    %c0_60 = arith.constant 0 : index
    %66 = vector.load %arg11[%c0_57, %c1_58, %c0_59, %c0_60] : memref<2x2x32x16xbf16, #tpu.memory_space<vmem>>, vector<1x1x32x16xbf16>
    %67 = vector.shape_cast %66 : vector<1x1x32x16xbf16> to vector<32x16xbf16>
    %cst_61 = arith.constant dense<0.000000e+00> : vector<32x16xf32>
    %68 = tpu.matmul %30, %67, %cst_61 {dimension_numbers = #tpu.dot_dimension_numbers<[1], [0], [0], [1], [0, 0, 1, 1], [], []>} : vector<32x32xbf16>, vector<32x16xbf16>, vector<32x16xf32> -> vector<32x16xf32>
    %c0_62 = arith.constant 0 : index
    %c1_63 = arith.constant 1 : index
    %c0_64 = arith.constant 0 : index
    %c0_65 = arith.constant 0 : index
    %69 = vector.load %arg12[%c0_62, %c1_63, %c0_64, %c0_65] : memref<2x2x1x16xf32, #tpu.memory_space<vmem>>, vector<1x1x1x16xf32>
    %70 = vector.shape_cast %69 : vector<1x1x1x16xf32> to vector<1x16xf32>
    %71 = vector.broadcast %70 : vector<1x16xf32> to vector<32x16xf32>
    %72 = arith.addf %68, %71 : vector<32x16xf32>
    %c0_66 = arith.constant 0 : index
    %c0_67 = arith.constant 0 : index
    %c0_68 = arith.constant 0 : index
    %73 = vector.load %arg5[%c0_66, %c0_67, %c0_68] : memref<2x1x16xf32, #tpu.memory_space<vmem>>, vector<1x1x16xf32>
    %74 = vector.shape_cast %73 : vector<1x1x16xf32> to vector<1x16xf32>
    %cst_69 = arith.constant 0.000000e+00 : f32
    %75 = vector.broadcast %cst_69 : f32 to vector<16x32xf32>
    %76 = vector.extract_strided_slice %37 {offsets = [0, 0], sizes = [16, 16], strides = [1, 1]} : vector<32x16xf32> to vector<16x16xf32>
    %77 = vector.extract_strided_slice %44 {offsets = [0, 0], sizes = [16, 16], strides = [1, 1]} : vector<32x16xf32> to vector<16x16xf32>
    %78 = vector.extract_strided_slice %51 {offsets = [0, 0], sizes = [16, 16], strides = [1, 1]} : vector<32x16xf32> to vector<16x16xf32>
    %cst_70 = arith.constant dense<0.000000e+00> : vector<16x16xf32>
    %79 = tpu.matmul %76, %77, %cst_70 {dimension_numbers = #tpu.dot_dimension_numbers<[1], [1], [0], [0], [0, 0, 1, 0], [], []>} : vector<16x16xf32>, vector<16x16xf32>, vector<16x16xf32> -> vector<16x16xf32>
    %cst_71 = arith.constant 2.500000e-01 : f32
    %80 = vector.broadcast %cst_71 : f32 to vector<16x16xf32>
    %81 = arith.mulf %79, %80 : vector<16x16xf32>
    %82 = vector.broadcast %74 : vector<1x16xf32> to vector<16x16xf32>
    %83 = arith.addf %81, %82 : vector<16x16xf32>
    %cst_72 = arith.constant dense<0xFF800000> : vector<16xf32>
    %84 = vector.multi_reduction <maximumf>, %83, %cst_72 [1] : vector<16x16xf32> to vector<16xf32>
    %85 = vector.shape_cast %84 : vector<16xf32> to vector<16x1xf32>
    %86 = vector.broadcast %85 : vector<16x1xf32> to vector<16x16xf32>
    %87 = arith.subf %83, %86 : vector<16x16xf32>
    %88 = math.exp %87 : vector<16x16xf32>
    %cst_73 = arith.constant dense<0.000000e+00> : vector<16xf32>
    %89 = vector.multi_reduction <add>, %88, %cst_73 [1] : vector<16x16xf32> to vector<16xf32>
    %90 = vector.shape_cast %89 : vector<16xf32> to vector<16x1xf32>
    %91 = tpu.reciprocal %90 {approx = true} : vector<16x1xf32> -> vector<16x1xf32>
    %92 = vector.broadcast %91 : vector<16x1xf32> to vector<16x16xf32>
    %93 = arith.mulf %88, %92 : vector<16x16xf32>
    %cst_74 = arith.constant dense<0.000000e+00> : vector<16x16xf32>
    %94 = tpu.matmul %93, %78, %cst_74 {dimension_numbers = #tpu.dot_dimension_numbers<[1], [0], [0], [1], [0, 0, 1, 1], [], []>} : vector<16x16xf32>, vector<16x16xf32>, vector<16x16xf32> -> vector<16x16xf32>
    %95 = arith.truncf %94 : vector<16x16xf32> to vector<16x16xbf16>
    %c0_75 = arith.constant 0 : index
    %c0_76 = arith.constant 0 : index
    %c0_77 = arith.constant 0 : index
    %c0_78 = arith.constant 0 : index
    %96 = vector.load %arg13[%c0_75, %c0_76, %c0_77, %c0_78] : memref<2x2x16x32xbf16, #tpu.memory_space<vmem>>, vector<1x1x16x32xbf16>
    %97 = vector.shape_cast %96 : vector<1x1x16x32xbf16> to vector<16x32xbf16>
    %cst_79 = arith.constant dense<0.000000e+00> : vector<16x32xf32>
    %98 = tpu.matmul %95, %97, %cst_79 {dimension_numbers = #tpu.dot_dimension_numbers<[1], [0], [0], [1], [0, 0, 1, 1], [], []>} : vector<16x16xbf16>, vector<16x32xbf16>, vector<16x32xf32> -> vector<16x32xf32>
    %99 = arith.addf %75, %98 : vector<16x32xf32>
    %100 = vector.extract_strided_slice %58 {offsets = [0, 0], sizes = [16, 16], strides = [1, 1]} : vector<32x16xf32> to vector<16x16xf32>
    %101 = vector.extract_strided_slice %65 {offsets = [0, 0], sizes = [16, 16], strides = [1, 1]} : vector<32x16xf32> to vector<16x16xf32>
    %102 = vector.extract_strided_slice %72 {offsets = [0, 0], sizes = [16, 16], strides = [1, 1]} : vector<32x16xf32> to vector<16x16xf32>
    %cst_80 = arith.constant dense<0.000000e+00> : vector<16x16xf32>
    %103 = tpu.matmul %100, %101, %cst_80 {dimension_numbers = #tpu.dot_dimension_numbers<[1], [1], [0], [0], [0, 0, 1, 0], [], []>} : vector<16x16xf32>, vector<16x16xf32>, vector<16x16xf32> -> vector<16x16xf32>
    %cst_81 = arith.constant 2.500000e-01 : f32
    %104 = vector.broadcast %cst_81 : f32 to vector<16x16xf32>
    %105 = arith.mulf %103, %104 : vector<16x16xf32>
    %106 = vector.broadcast %74 : vector<1x16xf32> to vector<16x16xf32>
    %107 = arith.addf %105, %106 : vector<16x16xf32>
    %cst_82 = arith.constant dense<0xFF800000> : vector<16xf32>
    %108 = vector.multi_reduction <maximumf>, %107, %cst_82 [1] : vector<16x16xf32> to vector<16xf32>
    %109 = vector.shape_cast %108 : vector<16xf32> to vector<16x1xf32>
    %110 = vector.broadcast %109 : vector<16x1xf32> to vector<16x16xf32>
    %111 = arith.subf %107, %110 : vector<16x16xf32>
    %112 = math.exp %111 : vector<16x16xf32>
    %cst_83 = arith.constant dense<0.000000e+00> : vector<16xf32>
    %113 = vector.multi_reduction <add>, %112, %cst_83 [1] : vector<16x16xf32> to vector<16xf32>
    %114 = vector.shape_cast %113 : vector<16xf32> to vector<16x1xf32>
    %115 = tpu.reciprocal %114 {approx = true} : vector<16x1xf32> -> vector<16x1xf32>
    %116 = vector.broadcast %115 : vector<16x1xf32> to vector<16x16xf32>
    %117 = arith.mulf %112, %116 : vector<16x16xf32>
    %cst_84 = arith.constant dense<0.000000e+00> : vector<16x16xf32>
    %118 = tpu.matmul %117, %102, %cst_84 {dimension_numbers = #tpu.dot_dimension_numbers<[1], [0], [0], [1], [0, 0, 1, 1], [], []>} : vector<16x16xf32>, vector<16x16xf32>, vector<16x16xf32> -> vector<16x16xf32>
    %119 = arith.truncf %118 : vector<16x16xf32> to vector<16x16xbf16>
    %c0_85 = arith.constant 0 : index
    %c1_86 = arith.constant 1 : index
    %c0_87 = arith.constant 0 : index
    %c0_88 = arith.constant 0 : index
    %120 = vector.load %arg13[%c0_85, %c1_86, %c0_87, %c0_88] : memref<2x2x16x32xbf16, #tpu.memory_space<vmem>>, vector<1x1x16x32xbf16>
    %121 = vector.shape_cast %120 : vector<1x1x16x32xbf16> to vector<16x32xbf16>
    %cst_89 = arith.constant dense<0.000000e+00> : vector<16x32xf32>
    %122 = tpu.matmul %119, %121, %cst_89 {dimension_numbers = #tpu.dot_dimension_numbers<[1], [0], [0], [1], [0, 0, 1, 1], [], []>} : vector<16x16xbf16>, vector<16x32xbf16>, vector<16x32xf32> -> vector<16x32xf32>
    %123 = arith.addf %99, %122 : vector<16x32xf32>
    %c1_90 = arith.constant 1 : index
    %c0_91 = arith.constant 0 : index
    %c0_92 = arith.constant 0 : index
    %124 = vector.load %arg5[%c1_90, %c0_91, %c0_92] : memref<2x1x16xf32, #tpu.memory_space<vmem>>, vector<1x1x16xf32>
    %125 = vector.shape_cast %124 : vector<1x1x16xf32> to vector<1x16xf32>
    %cst_93 = arith.constant 0.000000e+00 : f32
    %126 = vector.broadcast %cst_93 : f32 to vector<16x32xf32>
    %127 = vector.extract_strided_slice %37 {offsets = [16, 0], sizes = [16, 16], strides = [1, 1]} : vector<32x16xf32> to vector<16x16xf32>
    %128 = vector.extract_strided_slice %44 {offsets = [16, 0], sizes = [16, 16], strides = [1, 1]} : vector<32x16xf32> to vector<16x16xf32>
    %129 = vector.extract_strided_slice %51 {offsets = [16, 0], sizes = [16, 16], strides = [1, 1]} : vector<32x16xf32> to vector<16x16xf32>
    %cst_94 = arith.constant dense<0.000000e+00> : vector<16x16xf32>
    %130 = tpu.matmul %127, %128, %cst_94 {dimension_numbers = #tpu.dot_dimension_numbers<[1], [1], [0], [0], [0, 0, 1, 0], [], []>} : vector<16x16xf32>, vector<16x16xf32>, vector<16x16xf32> -> vector<16x16xf32>
    %cst_95 = arith.constant 2.500000e-01 : f32
    %131 = vector.broadcast %cst_95 : f32 to vector<16x16xf32>
    %132 = arith.mulf %130, %131 : vector<16x16xf32>
    %133 = vector.broadcast %125 : vector<1x16xf32> to vector<16x16xf32>
    %134 = arith.addf %132, %133 : vector<16x16xf32>
    %cst_96 = arith.constant dense<0xFF800000> : vector<16xf32>
    %135 = vector.multi_reduction <maximumf>, %134, %cst_96 [1] : vector<16x16xf32> to vector<16xf32>
    %136 = vector.shape_cast %135 : vector<16xf32> to vector<16x1xf32>
    %137 = vector.broadcast %136 : vector<16x1xf32> to vector<16x16xf32>
    %138 = arith.subf %134, %137 : vector<16x16xf32>
    %139 = math.exp %138 : vector<16x16xf32>
    %cst_97 = arith.constant dense<0.000000e+00> : vector<16xf32>
    %140 = vector.multi_reduction <add>, %139, %cst_97 [1] : vector<16x16xf32> to vector<16xf32>
    %141 = vector.shape_cast %140 : vector<16xf32> to vector<16x1xf32>
    %142 = tpu.reciprocal %141 {approx = true} : vector<16x1xf32> -> vector<16x1xf32>
    %143 = vector.broadcast %142 : vector<16x1xf32> to vector<16x16xf32>
    %144 = arith.mulf %139, %143 : vector<16x16xf32>
    %cst_98 = arith.constant dense<0.000000e+00> : vector<16x16xf32>
    %145 = tpu.matmul %144, %129, %cst_98 {dimension_numbers = #tpu.dot_dimension_numbers<[1], [0], [0], [1], [0, 0, 1, 1], [], []>} : vector<16x16xf32>, vector<16x16xf32>, vector<16x16xf32> -> vector<16x16xf32>
    %146 = arith.truncf %145 : vector<16x16xf32> to vector<16x16xbf16>
    %c0_99 = arith.constant 0 : index
    %c0_100 = arith.constant 0 : index
    %c0_101 = arith.constant 0 : index
    %c0_102 = arith.constant 0 : index
    %147 = vector.load %arg13[%c0_99, %c0_100, %c0_101, %c0_102] : memref<2x2x16x32xbf16, #tpu.memory_space<vmem>>, vector<1x1x16x32xbf16>
    %148 = vector.shape_cast %147 : vector<1x1x16x32xbf16> to vector<16x32xbf16>
    %cst_103 = arith.constant dense<0.000000e+00> : vector<16x32xf32>
    %149 = tpu.matmul %146, %148, %cst_103 {dimension_numbers = #tpu.dot_dimension_numbers<[1], [0], [0], [1], [0, 0, 1, 1], [], []>} : vector<16x16xbf16>, vector<16x32xbf16>, vector<16x32xf32> -> vector<16x32xf32>
    %150 = arith.addf %126, %149 : vector<16x32xf32>
    %151 = vector.extract_strided_slice %58 {offsets = [16, 0], sizes = [16, 16], strides = [1, 1]} : vector<32x16xf32> to vector<16x16xf32>
    %152 = vector.extract_strided_slice %65 {offsets = [16, 0], sizes = [16, 16], strides = [1, 1]} : vector<32x16xf32> to vector<16x16xf32>
    %153 = vector.extract_strided_slice %72 {offsets = [16, 0], sizes = [16, 16], strides = [1, 1]} : vector<32x16xf32> to vector<16x16xf32>
    %cst_104 = arith.constant dense<0.000000e+00> : vector<16x16xf32>
    %154 = tpu.matmul %151, %152, %cst_104 {dimension_numbers = #tpu.dot_dimension_numbers<[1], [1], [0], [0], [0, 0, 1, 0], [], []>} : vector<16x16xf32>, vector<16x16xf32>, vector<16x16xf32> -> vector<16x16xf32>
    %cst_105 = arith.constant 2.500000e-01 : f32
    %155 = vector.broadcast %cst_105 : f32 to vector<16x16xf32>
    %156 = arith.mulf %154, %155 : vector<16x16xf32>
    %157 = vector.broadcast %125 : vector<1x16xf32> to vector<16x16xf32>
    %158 = arith.addf %156, %157 : vector<16x16xf32>
    %cst_106 = arith.constant dense<0xFF800000> : vector<16xf32>
    %159 = vector.multi_reduction <maximumf>, %158, %cst_106 [1] : vector<16x16xf32> to vector<16xf32>
    %160 = vector.shape_cast %159 : vector<16xf32> to vector<16x1xf32>
    %161 = vector.broadcast %160 : vector<16x1xf32> to vector<16x16xf32>
    %162 = arith.subf %158, %161 : vector<16x16xf32>
    %163 = math.exp %162 : vector<16x16xf32>
    %cst_107 = arith.constant dense<0.000000e+00> : vector<16xf32>
    %164 = vector.multi_reduction <add>, %163, %cst_107 [1] : vector<16x16xf32> to vector<16xf32>
    %165 = vector.shape_cast %164 : vector<16xf32> to vector<16x1xf32>
    %166 = tpu.reciprocal %165 {approx = true} : vector<16x1xf32> -> vector<16x1xf32>
    %167 = vector.broadcast %166 : vector<16x1xf32> to vector<16x16xf32>
    %168 = arith.mulf %163, %167 : vector<16x16xf32>
    %cst_108 = arith.constant dense<0.000000e+00> : vector<16x16xf32>
    %169 = tpu.matmul %168, %153, %cst_108 {dimension_numbers = #tpu.dot_dimension_numbers<[1], [0], [0], [1], [0, 0, 1, 1], [], []>} : vector<16x16xf32>, vector<16x16xf32>, vector<16x16xf32> -> vector<16x16xf32>
    %170 = arith.truncf %169 : vector<16x16xf32> to vector<16x16xbf16>
    %c0_109 = arith.constant 0 : index
    %c1_110 = arith.constant 1 : index
    %c0_111 = arith.constant 0 : index
    %c0_112 = arith.constant 0 : index
    %171 = vector.load %arg13[%c0_109, %c1_110, %c0_111, %c0_112] : memref<2x2x16x32xbf16, #tpu.memory_space<vmem>>, vector<1x1x16x32xbf16>
    %172 = vector.shape_cast %171 : vector<1x1x16x32xbf16> to vector<16x32xbf16>
    %cst_113 = arith.constant dense<0.000000e+00> : vector<16x32xf32>
    %173 = tpu.matmul %170, %172, %cst_113 {dimension_numbers = #tpu.dot_dimension_numbers<[1], [0], [0], [1], [0, 0, 1, 1], [], []>} : vector<16x16xbf16>, vector<16x32xbf16>, vector<16x32xf32> -> vector<16x32xf32>
    %174 = arith.addf %150, %173 : vector<16x32xf32>
    %175 = tpu.concatenate %123, %174 in 0 : vector<16x32xf32>, vector<16x32xf32> -> vector<32x32xf32>
    %c0_114 = arith.constant 0 : index
    %c0_115 = arith.constant 0 : index
    %c0_116 = arith.constant 0 : index
    %176 = vector.load %arg14[%c0_114, %c0_115, %c0_116] : memref<2x1x32xf32, #tpu.memory_space<vmem>>, vector<1x1x32xf32>
    %177 = vector.shape_cast %176 : vector<1x1x32xf32> to vector<1x32xf32>
    %178 = vector.broadcast %177 : vector<1x32xf32> to vector<32x32xf32>
    %179 = arith.addf %175, %178 : vector<32x32xf32>
    %180 = arith.addf %29, %179 : vector<32x32xf32>
    %c0_117 = arith.constant 0 : index
    %c0_118 = arith.constant 0 : index
    %c0_119 = arith.constant 0 : index
    %181 = vector.load %arg15[%c0_117, %c0_118, %c0_119] : memref<2x1x32xf32, #tpu.memory_space<vmem>>, vector<1x1x32xf32>
    %182 = vector.shape_cast %181 : vector<1x1x32xf32> to vector<1x32xf32>
    %c0_120 = arith.constant 0 : index
    %c0_121 = arith.constant 0 : index
    %c0_122 = arith.constant 0 : index
    %183 = vector.load %arg16[%c0_120, %c0_121, %c0_122] : memref<2x1x32xf32, #tpu.memory_space<vmem>>, vector<1x1x32xf32>
    %184 = vector.shape_cast %183 : vector<1x1x32xf32> to vector<1x32xf32>
    %cst_123 = arith.constant dense<0.000000e+00> : vector<32xf32>
    %185 = vector.multi_reduction <add>, %180, %cst_123 [1] : vector<32x32xf32> to vector<32xf32>
    %186 = vector.shape_cast %185 : vector<32xf32> to vector<32x1xf32>
    %cst_124 = arith.constant 3.200000e+01 : f32
    %187 = vector.broadcast %cst_124 : f32 to vector<32x1xf32>
    %188 = arith.divf %186, %187 : vector<32x1xf32>
    %189 = vector.broadcast %188 : vector<32x1xf32> to vector<32x32xf32>
    %190 = arith.subf %180, %189 : vector<32x32xf32>
    %191 = arith.mulf %190, %190 : vector<32x32xf32>
    %cst_125 = arith.constant dense<0.000000e+00> : vector<32xf32>
    %192 = vector.multi_reduction <add>, %191, %cst_125 [1] : vector<32x32xf32> to vector<32xf32>
    %193 = vector.shape_cast %192 : vector<32xf32> to vector<32x1xf32>
    %cst_126 = arith.constant 3.200000e+01 : f32
    %194 = vector.broadcast %cst_126 : f32 to vector<32x1xf32>
    %195 = arith.divf %193, %194 : vector<32x1xf32>
    %196 = vector.broadcast %188 : vector<32x1xf32> to vector<32x32xf32>
    %197 = arith.subf %180, %196 : vector<32x32xf32>
    %cst_127 = arith.constant 9.99999996E-13 : f32
    %198 = vector.broadcast %cst_127 : f32 to vector<32x1xf32>
    %199 = arith.addf %195, %198 : vector<32x1xf32>
    %200 = math.rsqrt %199 : vector<32x1xf32>
    %201 = vector.broadcast %200 : vector<32x1xf32> to vector<32x32xf32>
    %202 = arith.mulf %197, %201 : vector<32x32xf32>
    %203 = vector.broadcast %182 : vector<1x32xf32> to vector<32x32xf32>
    %204 = arith.mulf %202, %203 : vector<32x32xf32>
    %205 = vector.broadcast %184 : vector<1x32xf32> to vector<32x32xf32>
    %206 = arith.addf %204, %205 : vector<32x32xf32>
    %207 = arith.truncf %206 : vector<32x32xf32> to vector<32x32xbf16>
    %c0_128 = arith.constant 0 : index
    %c0_129 = arith.constant 0 : index
    %c0_130 = arith.constant 0 : index
    %208 = vector.load %arg17[%c0_128, %c0_129, %c0_130] : memref<2x32x128xbf16, #tpu.memory_space<vmem>>, vector<1x32x128xbf16>
    %209 = vector.shape_cast %208 : vector<1x32x128xbf16> to vector<32x128xbf16>
    %cst_131 = arith.constant dense<0.000000e+00> : vector<32x128xf32>
    %210 = tpu.matmul %207, %209, %cst_131 {dimension_numbers = #tpu.dot_dimension_numbers<[1], [0], [0], [1], [0, 0, 1, 1], [], []>} : vector<32x32xbf16>, vector<32x128xbf16>, vector<32x128xf32> -> vector<32x128xf32>
    %c0_132 = arith.constant 0 : index
    %c0_133 = arith.constant 0 : index
    %c0_134 = arith.constant 0 : index
    %211 = vector.load %arg18[%c0_132, %c0_133, %c0_134] : memref<2x1x128xf32, #tpu.memory_space<vmem>>, vector<1x1x128xf32>
    %212 = vector.shape_cast %211 : vector<1x1x128xf32> to vector<1x128xf32>
    %213 = vector.broadcast %212 : vector<1x128xf32> to vector<32x128xf32>
    %214 = arith.addf %210, %213 : vector<32x128xf32>
    %215 = arith.mulf %214, %214 : vector<32x128xf32>
    %216 = arith.mulf %214, %215 : vector<32x128xf32>
    %cst_135 = arith.constant 4.471500e-02 : f32
    %217 = vector.broadcast %cst_135 : f32 to vector<32x128xf32>
    %218 = arith.mulf %217, %216 : vector<32x128xf32>
    %219 = arith.addf %214, %218 : vector<32x128xf32>
    %cst_136 = arith.constant 0.797884583 : f32
    %220 = vector.broadcast %cst_136 : f32 to vector<32x128xf32>
    %221 = arith.mulf %220, %219 : vector<32x128xf32>
    %222 = math.tanh %221 : vector<32x128xf32>
    %cst_137 = arith.constant 1.000000e+00 : f32
    %223 = vector.broadcast %cst_137 : f32 to vector<32x128xf32>
    %224 = arith.addf %223, %222 : vector<32x128xf32>
    %cst_138 = arith.constant 5.000000e-01 : f32
    %225 = vector.broadcast %cst_138 : f32 to vector<32x128xf32>
    %226 = arith.mulf %225, %224 : vector<32x128xf32>
    %227 = arith.mulf %214, %226 : vector<32x128xf32>
    %228 = arith.truncf %227 : vector<32x128xf32> to vector<32x128xbf16>
    %c0_139 = arith.constant 0 : index
    %c0_140 = arith.constant 0 : index
    %c0_141 = arith.constant 0 : index
    %229 = vector.load %arg19[%c0_139, %c0_140, %c0_141] : memref<2x128x32xbf16, #tpu.memory_space<vmem>>, vector<1x128x32xbf16>
    %230 = vector.shape_cast %229 : vector<1x128x32xbf16> to vector<128x32xbf16>
    %cst_142 = arith.constant dense<0.000000e+00> : vector<32x32xf32>
    %231 = tpu.matmul %228, %230, %cst_142 {dimension_numbers = #tpu.dot_dimension_numbers<[1], [0], [0], [1], [0, 0, 1, 1], [], []>} : vector<32x128xbf16>, vector<128x32xbf16>, vector<32x32xf32> -> vector<32x32xf32>
    %c0_143 = arith.constant 0 : index
    %c0_144 = arith.constant 0 : index
    %c0_145 = arith.constant 0 : index
    %232 = vector.load %arg20[%c0_143, %c0_144, %c0_145] : memref<2x1x32xf32, #tpu.memory_space<vmem>>, vector<1x1x32xf32>
    %233 = vector.shape_cast %232 : vector<1x1x32xf32> to vector<1x32xf32>
    %234 = vector.broadcast %233 : vector<1x32xf32> to vector<32x32xf32>
    %235 = arith.addf %231, %234 : vector<32x32xf32>
    %236 = arith.addf %206, %235 : vector<32x32xf32>
    %c0_146 = arith.constant 0 : index
    %c0_147 = arith.constant 0 : index
    %c0_148 = arith.constant 0 : index
    %237 = vector.load %arg21[%c0_146, %c0_147, %c0_148] : memref<2x1x32xf32, #tpu.memory_space<vmem>>, vector<1x1x32xf32>
    %238 = vector.shape_cast %237 : vector<1x1x32xf32> to vector<1x32xf32>
    %c0_149 = arith.constant 0 : index
    %c0_150 = arith.constant 0 : index
    %c0_151 = arith.constant 0 : index
    %239 = vector.load %arg22[%c0_149, %c0_150, %c0_151] : memref<2x1x32xf32, #tpu.memory_space<vmem>>, vector<1x1x32xf32>
    %240 = vector.shape_cast %239 : vector<1x1x32xf32> to vector<1x32xf32>
    %cst_152 = arith.constant dense<0.000000e+00> : vector<32xf32>
    %241 = vector.multi_reduction <add>, %236, %cst_152 [1] : vector<32x32xf32> to vector<32xf32>
    %242 = vector.shape_cast %241 : vector<32xf32> to vector<32x1xf32>
    %cst_153 = arith.constant 3.200000e+01 : f32
    %243 = vector.broadcast %cst_153 : f32 to vector<32x1xf32>
    %244 = arith.divf %242, %243 : vector<32x1xf32>
    %245 = vector.broadcast %244 : vector<32x1xf32> to vector<32x32xf32>
    %246 = arith.subf %236, %245 : vector<32x32xf32>
    %247 = arith.mulf %246, %246 : vector<32x32xf32>
    %cst_154 = arith.constant dense<0.000000e+00> : vector<32xf32>
    %248 = vector.multi_reduction <add>, %247, %cst_154 [1] : vector<32x32xf32> to vector<32xf32>
    %249 = vector.shape_cast %248 : vector<32xf32> to vector<32x1xf32>
    %cst_155 = arith.constant 3.200000e+01 : f32
    %250 = vector.broadcast %cst_155 : f32 to vector<32x1xf32>
    %251 = arith.divf %249, %250 : vector<32x1xf32>
    %252 = vector.broadcast %244 : vector<32x1xf32> to vector<32x32xf32>
    %253 = arith.subf %236, %252 : vector<32x32xf32>
    %cst_156 = arith.constant 9.99999996E-13 : f32
    %254 = vector.broadcast %cst_156 : f32 to vector<32x1xf32>
    %255 = arith.addf %251, %254 : vector<32x1xf32>
    %256 = math.rsqrt %255 : vector<32x1xf32>
    %257 = vector.broadcast %256 : vector<32x1xf32> to vector<32x32xf32>
    %258 = arith.mulf %253, %257 : vector<32x32xf32>
    %259 = vector.broadcast %238 : vector<1x32xf32> to vector<32x32xf32>
    %260 = arith.mulf %258, %259 : vector<32x32xf32>
    %261 = vector.broadcast %240 : vector<1x32xf32> to vector<32x32xf32>
    %262 = arith.addf %260, %261 : vector<32x32xf32>
    %263 = arith.truncf %262 : vector<32x32xf32> to vector<32x32xbf16>
    %c1_157 = arith.constant 1 : index
    %c0_158 = arith.constant 0 : index
    %c0_159 = arith.constant 0 : index
    %c0_160 = arith.constant 0 : index
    %264 = vector.load %arg7[%c1_157, %c0_158, %c0_159, %c0_160] : memref<2x2x32x16xbf16, #tpu.memory_space<vmem>>, vector<1x1x32x16xbf16>
    %265 = vector.shape_cast %264 : vector<1x1x32x16xbf16> to vector<32x16xbf16>
    %cst_161 = arith.constant dense<0.000000e+00> : vector<32x16xf32>
    %266 = tpu.matmul %263, %265, %cst_161 {dimension_numbers = #tpu.dot_dimension_numbers<[1], [0], [0], [1], [0, 0, 1, 1], [], []>} : vector<32x32xbf16>, vector<32x16xbf16>, vector<32x16xf32> -> vector<32x16xf32>
    %c1_162 = arith.constant 1 : index
    %c0_163 = arith.constant 0 : index
    %c0_164 = arith.constant 0 : index
    %c0_165 = arith.constant 0 : index
    %267 = vector.load %arg8[%c1_162, %c0_163, %c0_164, %c0_165] : memref<2x2x1x16xf32, #tpu.memory_space<vmem>>, vector<1x1x1x16xf32>
    %268 = vector.shape_cast %267 : vector<1x1x1x16xf32> to vector<1x16xf32>
    %269 = vector.broadcast %268 : vector<1x16xf32> to vector<32x16xf32>
    %270 = arith.addf %266, %269 : vector<32x16xf32>
    %c1_166 = arith.constant 1 : index
    %c0_167 = arith.constant 0 : index
    %c0_168 = arith.constant 0 : index
    %c0_169 = arith.constant 0 : index
    %271 = vector.load %arg9[%c1_166, %c0_167, %c0_168, %c0_169] : memref<2x2x32x16xbf16, #tpu.memory_space<vmem>>, vector<1x1x32x16xbf16>
    %272 = vector.shape_cast %271 : vector<1x1x32x16xbf16> to vector<32x16xbf16>
    %cst_170 = arith.constant dense<0.000000e+00> : vector<32x16xf32>
    %273 = tpu.matmul %263, %272, %cst_170 {dimension_numbers = #tpu.dot_dimension_numbers<[1], [0], [0], [1], [0, 0, 1, 1], [], []>} : vector<32x32xbf16>, vector<32x16xbf16>, vector<32x16xf32> -> vector<32x16xf32>
    %c1_171 = arith.constant 1 : index
    %c0_172 = arith.constant 0 : index
    %c0_173 = arith.constant 0 : index
    %c0_174 = arith.constant 0 : index
    %274 = vector.load %arg10[%c1_171, %c0_172, %c0_173, %c0_174] : memref<2x2x1x16xf32, #tpu.memory_space<vmem>>, vector<1x1x1x16xf32>
    %275 = vector.shape_cast %274 : vector<1x1x1x16xf32> to vector<1x16xf32>
    %276 = vector.broadcast %275 : vector<1x16xf32> to vector<32x16xf32>
    %277 = arith.addf %273, %276 : vector<32x16xf32>
    %c1_175 = arith.constant 1 : index
    %c0_176 = arith.constant 0 : index
    %c0_177 = arith.constant 0 : index
    %c0_178 = arith.constant 0 : index
    %278 = vector.load %arg11[%c1_175, %c0_176, %c0_177, %c0_178] : memref<2x2x32x16xbf16, #tpu.memory_space<vmem>>, vector<1x1x32x16xbf16>
    %279 = vector.shape_cast %278 : vector<1x1x32x16xbf16> to vector<32x16xbf16>
    %cst_179 = arith.constant dense<0.000000e+00> : vector<32x16xf32>
    %280 = tpu.matmul %263, %279, %cst_179 {dimension_numbers = #tpu.dot_dimension_numbers<[1], [0], [0], [1], [0, 0, 1, 1], [], []>} : vector<32x32xbf16>, vector<32x16xbf16>, vector<32x16xf32> -> vector<32x16xf32>
    %c1_180 = arith.constant 1 : index
    %c0_181 = arith.constant 0 : index
    %c0_182 = arith.constant 0 : index
    %c0_183 = arith.constant 0 : index
    %281 = vector.load %arg12[%c1_180, %c0_181, %c0_182, %c0_183] : memref<2x2x1x16xf32, #tpu.memory_space<vmem>>, vector<1x1x1x16xf32>
    %282 = vector.shape_cast %281 : vector<1x1x1x16xf32> to vector<1x16xf32>
    %283 = vector.broadcast %282 : vector<1x16xf32> to vector<32x16xf32>
    %284 = arith.addf %280, %283 : vector<32x16xf32>
    %c1_184 = arith.constant 1 : index
    %c1_185 = arith.constant 1 : index
    %c0_186 = arith.constant 0 : index
    %c0_187 = arith.constant 0 : index
    %285 = vector.load %arg7[%c1_184, %c1_185, %c0_186, %c0_187] : memref<2x2x32x16xbf16, #tpu.memory_space<vmem>>, vector<1x1x32x16xbf16>
    %286 = vector.shape_cast %285 : vector<1x1x32x16xbf16> to vector<32x16xbf16>
    %cst_188 = arith.constant dense<0.000000e+00> : vector<32x16xf32>
    %287 = tpu.matmul %263, %286, %cst_188 {dimension_numbers = #tpu.dot_dimension_numbers<[1], [0], [0], [1], [0, 0, 1, 1], [], []>} : vector<32x32xbf16>, vector<32x16xbf16>, vector<32x16xf32> -> vector<32x16xf32>
    %c1_189 = arith.constant 1 : index
    %c1_190 = arith.constant 1 : index
    %c0_191 = arith.constant 0 : index
    %c0_192 = arith.constant 0 : index
    %288 = vector.load %arg8[%c1_189, %c1_190, %c0_191, %c0_192] : memref<2x2x1x16xf32, #tpu.memory_space<vmem>>, vector<1x1x1x16xf32>
    %289 = vector.shape_cast %288 : vector<1x1x1x16xf32> to vector<1x16xf32>
    %290 = vector.broadcast %289 : vector<1x16xf32> to vector<32x16xf32>
    %291 = arith.addf %287, %290 : vector<32x16xf32>
    %c1_193 = arith.constant 1 : index
    %c1_194 = arith.constant 1 : index
    %c0_195 = arith.constant 0 : index
    %c0_196 = arith.constant 0 : index
    %292 = vector.load %arg9[%c1_193, %c1_194, %c0_195, %c0_196] : memref<2x2x32x16xbf16, #tpu.memory_space<vmem>>, vector<1x1x32x16xbf16>
    %293 = vector.shape_cast %292 : vector<1x1x32x16xbf16> to vector<32x16xbf16>
    %cst_197 = arith.constant dense<0.000000e+00> : vector<32x16xf32>
    %294 = tpu.matmul %263, %293, %cst_197 {dimension_numbers = #tpu.dot_dimension_numbers<[1], [0], [0], [1], [0, 0, 1, 1], [], []>} : vector<32x32xbf16>, vector<32x16xbf16>, vector<32x16xf32> -> vector<32x16xf32>
    %c1_198 = arith.constant 1 : index
    %c1_199 = arith.constant 1 : index
    %c0_200 = arith.constant 0 : index
    %c0_201 = arith.constant 0 : index
    %295 = vector.load %arg10[%c1_198, %c1_199, %c0_200, %c0_201] : memref<2x2x1x16xf32, #tpu.memory_space<vmem>>, vector<1x1x1x16xf32>
    %296 = vector.shape_cast %295 : vector<1x1x1x16xf32> to vector<1x16xf32>
    %297 = vector.broadcast %296 : vector<1x16xf32> to vector<32x16xf32>
    %298 = arith.addf %294, %297 : vector<32x16xf32>
    %c1_202 = arith.constant 1 : index
    %c1_203 = arith.constant 1 : index
    %c0_204 = arith.constant 0 : index
    %c0_205 = arith.constant 0 : index
    %299 = vector.load %arg11[%c1_202, %c1_203, %c0_204, %c0_205] : memref<2x2x32x16xbf16, #tpu.memory_space<vmem>>, vector<1x1x32x16xbf16>
    %300 = vector.shape_cast %299 : vector<1x1x32x16xbf16> to vector<32x16xbf16>
    %cst_206 = arith.constant dense<0.000000e+00> : vector<32x16xf32>
    %301 = tpu.matmul %263, %300, %cst_206 {dimension_numbers = #tpu.dot_dimension_numbers<[1], [0], [0], [1], [0, 0, 1, 1], [], []>} : vector<32x32xbf16>, vector<32x16xbf16>, vector<32x16xf32> -> vector<32x16xf32>
    %c1_207 = arith.constant 1 : index
    %c1_208 = arith.constant 1 : index
    %c0_209 = arith.constant 0 : index
    %c0_210 = arith.constant 0 : index
    %302 = vector.load %arg12[%c1_207, %c1_208, %c0_209, %c0_210] : memref<2x2x1x16xf32, #tpu.memory_space<vmem>>, vector<1x1x1x16xf32>
    %303 = vector.shape_cast %302 : vector<1x1x1x16xf32> to vector<1x16xf32>
    %304 = vector.broadcast %303 : vector<1x16xf32> to vector<32x16xf32>
    %305 = arith.addf %301, %304 : vector<32x16xf32>
    %c0_211 = arith.constant 0 : index
    %c0_212 = arith.constant 0 : index
    %c0_213 = arith.constant 0 : index
    %306 = vector.load %arg5[%c0_211, %c0_212, %c0_213] : memref<2x1x16xf32, #tpu.memory_space<vmem>>, vector<1x1x16xf32>
    %307 = vector.shape_cast %306 : vector<1x1x16xf32> to vector<1x16xf32>
    %cst_214 = arith.constant 0.000000e+00 : f32
    %308 = vector.broadcast %cst_214 : f32 to vector<16x32xf32>
    %309 = vector.extract_strided_slice %270 {offsets = [0, 0], sizes = [16, 16], strides = [1, 1]} : vector<32x16xf32> to vector<16x16xf32>
    %310 = vector.extract_strided_slice %277 {offsets = [0, 0], sizes = [16, 16], strides = [1, 1]} : vector<32x16xf32> to vector<16x16xf32>
    %311 = vector.extract_strided_slice %284 {offsets = [0, 0], sizes = [16, 16], strides = [1, 1]} : vector<32x16xf32> to vector<16x16xf32>
    %cst_215 = arith.constant dense<0.000000e+00> : vector<16x16xf32>
    %312 = tpu.matmul %309, %310, %cst_215 {dimension_numbers = #tpu.dot_dimension_numbers<[1], [1], [0], [0], [0, 0, 1, 0], [], []>} : vector<16x16xf32>, vector<16x16xf32>, vector<16x16xf32> -> vector<16x16xf32>
    %cst_216 = arith.constant 2.500000e-01 : f32
    %313 = vector.broadcast %cst_216 : f32 to vector<16x16xf32>
    %314 = arith.mulf %312, %313 : vector<16x16xf32>
    %315 = vector.broadcast %307 : vector<1x16xf32> to vector<16x16xf32>
    %316 = arith.addf %314, %315 : vector<16x16xf32>
    %cst_217 = arith.constant dense<0xFF800000> : vector<16xf32>
    %317 = vector.multi_reduction <maximumf>, %316, %cst_217 [1] : vector<16x16xf32> to vector<16xf32>
    %318 = vector.shape_cast %317 : vector<16xf32> to vector<16x1xf32>
    %319 = vector.broadcast %318 : vector<16x1xf32> to vector<16x16xf32>
    %320 = arith.subf %316, %319 : vector<16x16xf32>
    %321 = math.exp %320 : vector<16x16xf32>
    %cst_218 = arith.constant dense<0.000000e+00> : vector<16xf32>
    %322 = vector.multi_reduction <add>, %321, %cst_218 [1] : vector<16x16xf32> to vector<16xf32>
    %323 = vector.shape_cast %322 : vector<16xf32> to vector<16x1xf32>
    %324 = tpu.reciprocal %323 {approx = true} : vector<16x1xf32> -> vector<16x1xf32>
    %325 = vector.broadcast %324 : vector<16x1xf32> to vector<16x16xf32>
    %326 = arith.mulf %321, %325 : vector<16x16xf32>
    %cst_219 = arith.constant dense<0.000000e+00> : vector<16x16xf32>
    %327 = tpu.matmul %326, %311, %cst_219 {dimension_numbers = #tpu.dot_dimension_numbers<[1], [0], [0], [1], [0, 0, 1, 1], [], []>} : vector<16x16xf32>, vector<16x16xf32>, vector<16x16xf32> -> vector<16x16xf32>
    %328 = arith.truncf %327 : vector<16x16xf32> to vector<16x16xbf16>
    %c1_220 = arith.constant 1 : index
    %c0_221 = arith.constant 0 : index
    %c0_222 = arith.constant 0 : index
    %c0_223 = arith.constant 0 : index
    %329 = vector.load %arg13[%c1_220, %c0_221, %c0_222, %c0_223] : memref<2x2x16x32xbf16, #tpu.memory_space<vmem>>, vector<1x1x16x32xbf16>
    %330 = vector.shape_cast %329 : vector<1x1x16x32xbf16> to vector<16x32xbf16>
    %cst_224 = arith.constant dense<0.000000e+00> : vector<16x32xf32>
    %331 = tpu.matmul %328, %330, %cst_224 {dimension_numbers = #tpu.dot_dimension_numbers<[1], [0], [0], [1], [0, 0, 1, 1], [], []>} : vector<16x16xbf16>, vector<16x32xbf16>, vector<16x32xf32> -> vector<16x32xf32>
    %332 = arith.addf %308, %331 : vector<16x32xf32>
    %333 = vector.extract_strided_slice %291 {offsets = [0, 0], sizes = [16, 16], strides = [1, 1]} : vector<32x16xf32> to vector<16x16xf32>
    %334 = vector.extract_strided_slice %298 {offsets = [0, 0], sizes = [16, 16], strides = [1, 1]} : vector<32x16xf32> to vector<16x16xf32>
    %335 = vector.extract_strided_slice %305 {offsets = [0, 0], sizes = [16, 16], strides = [1, 1]} : vector<32x16xf32> to vector<16x16xf32>
    %cst_225 = arith.constant dense<0.000000e+00> : vector<16x16xf32>
    %336 = tpu.matmul %333, %334, %cst_225 {dimension_numbers = #tpu.dot_dimension_numbers<[1], [1], [0], [0], [0, 0, 1, 0], [], []>} : vector<16x16xf32>, vector<16x16xf32>, vector<16x16xf32> -> vector<16x16xf32>
    %cst_226 = arith.constant 2.500000e-01 : f32
    %337 = vector.broadcast %cst_226 : f32 to vector<16x16xf32>
    %338 = arith.mulf %336, %337 : vector<16x16xf32>
    %339 = vector.broadcast %307 : vector<1x16xf32> to vector<16x16xf32>
    %340 = arith.addf %338, %339 : vector<16x16xf32>
    %cst_227 = arith.constant dense<0xFF800000> : vector<16xf32>
    %341 = vector.multi_reduction <maximumf>, %340, %cst_227 [1] : vector<16x16xf32> to vector<16xf32>
    %342 = vector.shape_cast %341 : vector<16xf32> to vector<16x1xf32>
    %343 = vector.broadcast %342 : vector<16x1xf32> to vector<16x16xf32>
    %344 = arith.subf %340, %343 : vector<16x16xf32>
    %345 = math.exp %344 : vector<16x16xf32>
    %cst_228 = arith.constant dense<0.000000e+00> : vector<16xf32>
    %346 = vector.multi_reduction <add>, %345, %cst_228 [1] : vector<16x16xf32> to vector<16xf32>
    %347 = vector.shape_cast %346 : vector<16xf32> to vector<16x1xf32>
    %348 = tpu.reciprocal %347 {approx = true} : vector<16x1xf32> -> vector<16x1xf32>
    %349 = vector.broadcast %348 : vector<16x1xf32> to vector<16x16xf32>
    %350 = arith.mulf %345, %349 : vector<16x16xf32>
    %cst_229 = arith.constant dense<0.000000e+00> : vector<16x16xf32>
    %351 = tpu.matmul %350, %335, %cst_229 {dimension_numbers = #tpu.dot_dimension_numbers<[1], [0], [0], [1], [0, 0, 1, 1], [], []>} : vector<16x16xf32>, vector<16x16xf32>, vector<16x16xf32> -> vector<16x16xf32>
    %352 = arith.truncf %351 : vector<16x16xf32> to vector<16x16xbf16>
    %c1_230 = arith.constant 1 : index
    %c1_231 = arith.constant 1 : index
    %c0_232 = arith.constant 0 : index
    %c0_233 = arith.constant 0 : index
    %353 = vector.load %arg13[%c1_230, %c1_231, %c0_232, %c0_233] : memref<2x2x16x32xbf16, #tpu.memory_space<vmem>>, vector<1x1x16x32xbf16>
    %354 = vector.shape_cast %353 : vector<1x1x16x32xbf16> to vector<16x32xbf16>
    %cst_234 = arith.constant dense<0.000000e+00> : vector<16x32xf32>
    %355 = tpu.matmul %352, %354, %cst_234 {dimension_numbers = #tpu.dot_dimension_numbers<[1], [0], [0], [1], [0, 0, 1, 1], [], []>} : vector<16x16xbf16>, vector<16x32xbf16>, vector<16x32xf32> -> vector<16x32xf32>
    %356 = arith.addf %332, %355 : vector<16x32xf32>
    %c1_235 = arith.constant 1 : index
    %c0_236 = arith.constant 0 : index
    %c0_237 = arith.constant 0 : index
    %357 = vector.load %arg5[%c1_235, %c0_236, %c0_237] : memref<2x1x16xf32, #tpu.memory_space<vmem>>, vector<1x1x16xf32>
    %358 = vector.shape_cast %357 : vector<1x1x16xf32> to vector<1x16xf32>
    %cst_238 = arith.constant 0.000000e+00 : f32
    %359 = vector.broadcast %cst_238 : f32 to vector<16x32xf32>
    %360 = vector.extract_strided_slice %270 {offsets = [16, 0], sizes = [16, 16], strides = [1, 1]} : vector<32x16xf32> to vector<16x16xf32>
    %361 = vector.extract_strided_slice %277 {offsets = [16, 0], sizes = [16, 16], strides = [1, 1]} : vector<32x16xf32> to vector<16x16xf32>
    %362 = vector.extract_strided_slice %284 {offsets = [16, 0], sizes = [16, 16], strides = [1, 1]} : vector<32x16xf32> to vector<16x16xf32>
    %cst_239 = arith.constant dense<0.000000e+00> : vector<16x16xf32>
    %363 = tpu.matmul %360, %361, %cst_239 {dimension_numbers = #tpu.dot_dimension_numbers<[1], [1], [0], [0], [0, 0, 1, 0], [], []>} : vector<16x16xf32>, vector<16x16xf32>, vector<16x16xf32> -> vector<16x16xf32>
    %cst_240 = arith.constant 2.500000e-01 : f32
    %364 = vector.broadcast %cst_240 : f32 to vector<16x16xf32>
    %365 = arith.mulf %363, %364 : vector<16x16xf32>
    %366 = vector.broadcast %358 : vector<1x16xf32> to vector<16x16xf32>
    %367 = arith.addf %365, %366 : vector<16x16xf32>
    %cst_241 = arith.constant dense<0xFF800000> : vector<16xf32>
    %368 = vector.multi_reduction <maximumf>, %367, %cst_241 [1] : vector<16x16xf32> to vector<16xf32>
    %369 = vector.shape_cast %368 : vector<16xf32> to vector<16x1xf32>
    %370 = vector.broadcast %369 : vector<16x1xf32> to vector<16x16xf32>
    %371 = arith.subf %367, %370 : vector<16x16xf32>
    %372 = math.exp %371 : vector<16x16xf32>
    %cst_242 = arith.constant dense<0.000000e+00> : vector<16xf32>
    %373 = vector.multi_reduction <add>, %372, %cst_242 [1] : vector<16x16xf32> to vector<16xf32>
    %374 = vector.shape_cast %373 : vector<16xf32> to vector<16x1xf32>
    %375 = tpu.reciprocal %374 {approx = true} : vector<16x1xf32> -> vector<16x1xf32>
    %376 = vector.broadcast %375 : vector<16x1xf32> to vector<16x16xf32>
    %377 = arith.mulf %372, %376 : vector<16x16xf32>
    %cst_243 = arith.constant dense<0.000000e+00> : vector<16x16xf32>
    %378 = tpu.matmul %377, %362, %cst_243 {dimension_numbers = #tpu.dot_dimension_numbers<[1], [0], [0], [1], [0, 0, 1, 1], [], []>} : vector<16x16xf32>, vector<16x16xf32>, vector<16x16xf32> -> vector<16x16xf32>
    %379 = arith.truncf %378 : vector<16x16xf32> to vector<16x16xbf16>
    %c1_244 = arith.constant 1 : index
    %c0_245 = arith.constant 0 : index
    %c0_246 = arith.constant 0 : index
    %c0_247 = arith.constant 0 : index
    %380 = vector.load %arg13[%c1_244, %c0_245, %c0_246, %c0_247] : memref<2x2x16x32xbf16, #tpu.memory_space<vmem>>, vector<1x1x16x32xbf16>
    %381 = vector.shape_cast %380 : vector<1x1x16x32xbf16> to vector<16x32xbf16>
    %cst_248 = arith.constant dense<0.000000e+00> : vector<16x32xf32>
    %382 = tpu.matmul %379, %381, %cst_248 {dimension_numbers = #tpu.dot_dimension_numbers<[1], [0], [0], [1], [0, 0, 1, 1], [], []>} : vector<16x16xbf16>, vector<16x32xbf16>, vector<16x32xf32> -> vector<16x32xf32>
    %383 = arith.addf %359, %382 : vector<16x32xf32>
    %384 = vector.extract_strided_slice %291 {offsets = [16, 0], sizes = [16, 16], strides = [1, 1]} : vector<32x16xf32> to vector<16x16xf32>
    %385 = vector.extract_strided_slice %298 {offsets = [16, 0], sizes = [16, 16], strides = [1, 1]} : vector<32x16xf32> to vector<16x16xf32>
    %386 = vector.extract_strided_slice %305 {offsets = [16, 0], sizes = [16, 16], strides = [1, 1]} : vector<32x16xf32> to vector<16x16xf32>
    %cst_249 = arith.constant dense<0.000000e+00> : vector<16x16xf32>
    %387 = tpu.matmul %384, %385, %cst_249 {dimension_numbers = #tpu.dot_dimension_numbers<[1], [1], [0], [0], [0, 0, 1, 0], [], []>} : vector<16x16xf32>, vector<16x16xf32>, vector<16x16xf32> -> vector<16x16xf32>
    %cst_250 = arith.constant 2.500000e-01 : f32
    %388 = vector.broadcast %cst_250 : f32 to vector<16x16xf32>
    %389 = arith.mulf %387, %388 : vector<16x16xf32>
    %390 = vector.broadcast %358 : vector<1x16xf32> to vector<16x16xf32>
    %391 = arith.addf %389, %390 : vector<16x16xf32>
    %cst_251 = arith.constant dense<0xFF800000> : vector<16xf32>
    %392 = vector.multi_reduction <maximumf>, %391, %cst_251 [1] : vector<16x16xf32> to vector<16xf32>
    %393 = vector.shape_cast %392 : vector<16xf32> to vector<16x1xf32>
    %394 = vector.broadcast %393 : vector<16x1xf32> to vector<16x16xf32>
    %395 = arith.subf %391, %394 : vector<16x16xf32>
    %396 = math.exp %395 : vector<16x16xf32>
    %cst_252 = arith.constant dense<0.000000e+00> : vector<16xf32>
    %397 = vector.multi_reduction <add>, %396, %cst_252 [1] : vector<16x16xf32> to vector<16xf32>
    %398 = vector.shape_cast %397 : vector<16xf32> to vector<16x1xf32>
    %399 = tpu.reciprocal %398 {approx = true} : vector<16x1xf32> -> vector<16x1xf32>
    %400 = vector.broadcast %399 : vector<16x1xf32> to vector<16x16xf32>
    %401 = arith.mulf %396, %400 : vector<16x16xf32>
    %cst_253 = arith.constant dense<0.000000e+00> : vector<16x16xf32>
    %402 = tpu.matmul %401, %386, %cst_253 {dimension_numbers = #tpu.dot_dimension_numbers<[1], [0], [0], [1], [0, 0, 1, 1], [], []>} : vector<16x16xf32>, vector<16x16xf32>, vector<16x16xf32> -> vector<16x16xf32>
    %403 = arith.truncf %402 : vector<16x16xf32> to vector<16x16xbf16>
    %c1_254 = arith.constant 1 : index
    %c1_255 = arith.constant 1 : index
    %c0_256 = arith.constant 0 : index
    %c0_257 = arith.constant 0 : index
    %404 = vector.load %arg13[%c1_254, %c1_255, %c0_256, %c0_257] : memref<2x2x16x32xbf16, #tpu.memory_space<vmem>>, vector<1x1x16x32xbf16>
    %405 = vector.shape_cast %404 : vector<1x1x16x32xbf16> to vector<16x32xbf16>
    %cst_258 = arith.constant dense<0.000000e+00> : vector<16x32xf32>
    %406 = tpu.matmul %403, %405, %cst_258 {dimension_numbers = #tpu.dot_dimension_numbers<[1], [0], [0], [1], [0, 0, 1, 1], [], []>} : vector<16x16xbf16>, vector<16x32xbf16>, vector<16x32xf32> -> vector<16x32xf32>
    %407 = arith.addf %383, %406 : vector<16x32xf32>
    %408 = tpu.concatenate %356, %407 in 0 : vector<16x32xf32>, vector<16x32xf32> -> vector<32x32xf32>
    %c1_259 = arith.constant 1 : index
    %c0_260 = arith.constant 0 : index
    %c0_261 = arith.constant 0 : index
    %409 = vector.load %arg14[%c1_259, %c0_260, %c0_261] : memref<2x1x32xf32, #tpu.memory_space<vmem>>, vector<1x1x32xf32>
    %410 = vector.shape_cast %409 : vector<1x1x32xf32> to vector<1x32xf32>
    %411 = vector.broadcast %410 : vector<1x32xf32> to vector<32x32xf32>
    %412 = arith.addf %408, %411 : vector<32x32xf32>
    %413 = arith.addf %262, %412 : vector<32x32xf32>
    %c1_262 = arith.constant 1 : index
    %c0_263 = arith.constant 0 : index
    %c0_264 = arith.constant 0 : index
    %414 = vector.load %arg15[%c1_262, %c0_263, %c0_264] : memref<2x1x32xf32, #tpu.memory_space<vmem>>, vector<1x1x32xf32>
    %415 = vector.shape_cast %414 : vector<1x1x32xf32> to vector<1x32xf32>
    %c1_265 = arith.constant 1 : index
    %c0_266 = arith.constant 0 : index
    %c0_267 = arith.constant 0 : index
    %416 = vector.load %arg16[%c1_265, %c0_266, %c0_267] : memref<2x1x32xf32, #tpu.memory_space<vmem>>, vector<1x1x32xf32>
    %417 = vector.shape_cast %416 : vector<1x1x32xf32> to vector<1x32xf32>
    %cst_268 = arith.constant dense<0.000000e+00> : vector<32xf32>
    %418 = vector.multi_reduction <add>, %413, %cst_268 [1] : vector<32x32xf32> to vector<32xf32>
    %419 = vector.shape_cast %418 : vector<32xf32> to vector<32x1xf32>
    %cst_269 = arith.constant 3.200000e+01 : f32
    %420 = vector.broadcast %cst_269 : f32 to vector<32x1xf32>
    %421 = arith.divf %419, %420 : vector<32x1xf32>
    %422 = vector.broadcast %421 : vector<32x1xf32> to vector<32x32xf32>
    %423 = arith.subf %413, %422 : vector<32x32xf32>
    %424 = arith.mulf %423, %423 : vector<32x32xf32>
    %cst_270 = arith.constant dense<0.000000e+00> : vector<32xf32>
    %425 = vector.multi_reduction <add>, %424, %cst_270 [1] : vector<32x32xf32> to vector<32xf32>
    %426 = vector.shape_cast %425 : vector<32xf32> to vector<32x1xf32>
    %cst_271 = arith.constant 3.200000e+01 : f32
    %427 = vector.broadcast %cst_271 : f32 to vector<32x1xf32>
    %428 = arith.divf %426, %427 : vector<32x1xf32>
    %429 = vector.broadcast %421 : vector<32x1xf32> to vector<32x32xf32>
    %430 = arith.subf %413, %429 : vector<32x32xf32>
    %cst_272 = arith.constant 9.99999996E-13 : f32
    %431 = vector.broadcast %cst_272 : f32 to vector<32x1xf32>
    %432 = arith.addf %428, %431 : vector<32x1xf32>
    %433 = math.rsqrt %432 : vector<32x1xf32>
    %434 = vector.broadcast %433 : vector<32x1xf32> to vector<32x32xf32>
    %435 = arith.mulf %430, %434 : vector<32x32xf32>
    %436 = vector.broadcast %415 : vector<1x32xf32> to vector<32x32xf32>
    %437 = arith.mulf %435, %436 : vector<32x32xf32>
    %438 = vector.broadcast %417 : vector<1x32xf32> to vector<32x32xf32>
    %439 = arith.addf %437, %438 : vector<32x32xf32>
    %440 = arith.truncf %439 : vector<32x32xf32> to vector<32x32xbf16>
    %c1_273 = arith.constant 1 : index
    %c0_274 = arith.constant 0 : index
    %c0_275 = arith.constant 0 : index
    %441 = vector.load %arg17[%c1_273, %c0_274, %c0_275] : memref<2x32x128xbf16, #tpu.memory_space<vmem>>, vector<1x32x128xbf16>
    %442 = vector.shape_cast %441 : vector<1x32x128xbf16> to vector<32x128xbf16>
    %cst_276 = arith.constant dense<0.000000e+00> : vector<32x128xf32>
    %443 = tpu.matmul %440, %442, %cst_276 {dimension_numbers = #tpu.dot_dimension_numbers<[1], [0], [0], [1], [0, 0, 1, 1], [], []>} : vector<32x32xbf16>, vector<32x128xbf16>, vector<32x128xf32> -> vector<32x128xf32>
    %c1_277 = arith.constant 1 : index
    %c0_278 = arith.constant 0 : index
    %c0_279 = arith.constant 0 : index
    %444 = vector.load %arg18[%c1_277, %c0_278, %c0_279] : memref<2x1x128xf32, #tpu.memory_space<vmem>>, vector<1x1x128xf32>
    %445 = vector.shape_cast %444 : vector<1x1x128xf32> to vector<1x128xf32>
    %446 = vector.broadcast %445 : vector<1x128xf32> to vector<32x128xf32>
    %447 = arith.addf %443, %446 : vector<32x128xf32>
    %448 = arith.mulf %447, %447 : vector<32x128xf32>
    %449 = arith.mulf %447, %448 : vector<32x128xf32>
    %cst_280 = arith.constant 4.471500e-02 : f32
    %450 = vector.broadcast %cst_280 : f32 to vector<32x128xf32>
    %451 = arith.mulf %450, %449 : vector<32x128xf32>
    %452 = arith.addf %447, %451 : vector<32x128xf32>
    %cst_281 = arith.constant 0.797884583 : f32
    %453 = vector.broadcast %cst_281 : f32 to vector<32x128xf32>
    %454 = arith.mulf %453, %452 : vector<32x128xf32>
    %455 = math.tanh %454 : vector<32x128xf32>
    %cst_282 = arith.constant 1.000000e+00 : f32
    %456 = vector.broadcast %cst_282 : f32 to vector<32x128xf32>
    %457 = arith.addf %456, %455 : vector<32x128xf32>
    %cst_283 = arith.constant 5.000000e-01 : f32
    %458 = vector.broadcast %cst_283 : f32 to vector<32x128xf32>
    %459 = arith.mulf %458, %457 : vector<32x128xf32>
    %460 = arith.mulf %447, %459 : vector<32x128xf32>
    %461 = arith.truncf %460 : vector<32x128xf32> to vector<32x128xbf16>
    %c1_284 = arith.constant 1 : index
    %c0_285 = arith.constant 0 : index
    %c0_286 = arith.constant 0 : index
    %462 = vector.load %arg19[%c1_284, %c0_285, %c0_286] : memref<2x128x32xbf16, #tpu.memory_space<vmem>>, vector<1x128x32xbf16>
    %463 = vector.shape_cast %462 : vector<1x128x32xbf16> to vector<128x32xbf16>
    %cst_287 = arith.constant dense<0.000000e+00> : vector<32x32xf32>
    %464 = tpu.matmul %461, %463, %cst_287 {dimension_numbers = #tpu.dot_dimension_numbers<[1], [0], [0], [1], [0, 0, 1, 1], [], []>} : vector<32x128xbf16>, vector<128x32xbf16>, vector<32x32xf32> -> vector<32x32xf32>
    %c1_288 = arith.constant 1 : index
    %c0_289 = arith.constant 0 : index
    %c0_290 = arith.constant 0 : index
    %465 = vector.load %arg20[%c1_288, %c0_289, %c0_290] : memref<2x1x32xf32, #tpu.memory_space<vmem>>, vector<1x1x32xf32>
    %466 = vector.shape_cast %465 : vector<1x1x32xf32> to vector<1x32xf32>
    %467 = vector.broadcast %466 : vector<1x32xf32> to vector<32x32xf32>
    %468 = arith.addf %464, %467 : vector<32x32xf32>
    %469 = arith.addf %439, %468 : vector<32x32xf32>
    %c1_291 = arith.constant 1 : index
    %c0_292 = arith.constant 0 : index
    %c0_293 = arith.constant 0 : index
    %470 = vector.load %arg21[%c1_291, %c0_292, %c0_293] : memref<2x1x32xf32, #tpu.memory_space<vmem>>, vector<1x1x32xf32>
    %471 = vector.shape_cast %470 : vector<1x1x32xf32> to vector<1x32xf32>
    %c1_294 = arith.constant 1 : index
    %c0_295 = arith.constant 0 : index
    %c0_296 = arith.constant 0 : index
    %472 = vector.load %arg22[%c1_294, %c0_295, %c0_296] : memref<2x1x32xf32, #tpu.memory_space<vmem>>, vector<1x1x32xf32>
    %473 = vector.shape_cast %472 : vector<1x1x32xf32> to vector<1x32xf32>
    %cst_297 = arith.constant dense<0.000000e+00> : vector<32xf32>
    %474 = vector.multi_reduction <add>, %469, %cst_297 [1] : vector<32x32xf32> to vector<32xf32>
    %475 = vector.shape_cast %474 : vector<32xf32> to vector<32x1xf32>
    %cst_298 = arith.constant 3.200000e+01 : f32
    %476 = vector.broadcast %cst_298 : f32 to vector<32x1xf32>
    %477 = arith.divf %475, %476 : vector<32x1xf32>
    %478 = vector.broadcast %477 : vector<32x1xf32> to vector<32x32xf32>
    %479 = arith.subf %469, %478 : vector<32x32xf32>
    %480 = arith.mulf %479, %479 : vector<32x32xf32>
    %cst_299 = arith.constant dense<0.000000e+00> : vector<32xf32>
    %481 = vector.multi_reduction <add>, %480, %cst_299 [1] : vector<32x32xf32> to vector<32xf32>
    %482 = vector.shape_cast %481 : vector<32xf32> to vector<32x1xf32>
    %cst_300 = arith.constant 3.200000e+01 : f32
    %483 = vector.broadcast %cst_300 : f32 to vector<32x1xf32>
    %484 = arith.divf %482, %483 : vector<32x1xf32>
    %485 = vector.broadcast %477 : vector<32x1xf32> to vector<32x32xf32>
    %486 = arith.subf %469, %485 : vector<32x32xf32>
    %cst_301 = arith.constant 9.99999996E-13 : f32
    %487 = vector.broadcast %cst_301 : f32 to vector<32x1xf32>
    %488 = arith.addf %484, %487 : vector<32x1xf32>
    %489 = math.rsqrt %488 : vector<32x1xf32>
    %490 = vector.broadcast %489 : vector<32x1xf32> to vector<32x32xf32>
    %491 = arith.mulf %486, %490 : vector<32x32xf32>
    %492 = vector.broadcast %471 : vector<1x32xf32> to vector<32x32xf32>
    %493 = arith.mulf %491, %492 : vector<32x32xf32>
    %494 = vector.broadcast %473 : vector<1x32xf32> to vector<32x32xf32>
    %495 = arith.addf %493, %494 : vector<32x32xf32>
    %c0_302 = arith.constant 0 : index
    %c0_303 = arith.constant 0 : index
    %496 = vector.load %arg6[%c0_302, %c0_303] : memref<2x32xf32, #tpu.memory_space<vmem>>, vector<2x32xf32>
    %cst_304 = arith.constant dense<0.000000e+00> : vector<2x32xf32>
    %497 = tpu.matmul %496, %495, %cst_304 {dimension_numbers = #tpu.dot_dimension_numbers<[1], [0], [0], [1], [0, 0, 1, 1], [], []>} : vector<2x32xf32>, vector<32x32xf32>, vector<2x32xf32> -> vector<2x32xf32>
    %498 = arith.truncf %497 : vector<2x32xf32> to vector<2x32xbf16>
    %c0_305 = arith.constant 0 : index
    %c0_306 = arith.constant 0 : index
    %499 = vector.load %arg23[%c0_305, %c0_306] : memref<32x32xbf16, #tpu.memory_space<vmem>>, vector<32x32xbf16>
    %cst_307 = arith.constant dense<0.000000e+00> : vector<2x32xf32>
    %500 = tpu.matmul %498, %499, %cst_307 {dimension_numbers = #tpu.dot_dimension_numbers<[1], [0], [0], [1], [0, 0, 1, 1], [], []>} : vector<2x32xbf16>, vector<32x32xbf16>, vector<2x32xf32> -> vector<2x32xf32>
    %c0_308 = arith.constant 0 : index
    %c0_309 = arith.constant 0 : index
    %501 = vector.load %arg24[%c0_308, %c0_309] : memref<1x32xf32, #tpu.memory_space<vmem>>, vector<1x32xf32>
    %502 = vector.broadcast %501 : vector<1x32xf32> to vector<2x32xf32>
    %503 = arith.addf %500, %502 : vector<2x32xf32>
    %504 = math.tanh %503 : vector<2x32xf32>
    %505 = arith.truncf %504 : vector<2x32xf32> to vector<2x32xbf16>
    %c0_310 = arith.constant 0 : index
    %c0_311 = arith.constant 0 : index
    %506 = vector.load %arg25[%c0_310, %c0_311] : memref<32x16xbf16, #tpu.memory_space<vmem>>, vector<32x16xbf16>
    %cst_312 = arith.constant dense<0.000000e+00> : vector<2x16xf32>
    %507 = tpu.matmul %505, %506, %cst_312 {dimension_numbers = #tpu.dot_dimension_numbers<[1], [0], [0], [1], [0, 0, 1, 1], [], []>} : vector<2x32xbf16>, vector<32x16xbf16>, vector<2x16xf32> -> vector<2x16xf32>
    %c0_313 = arith.constant 0 : index
    %c0_314 = arith.constant 0 : index
    %508 = vector.load %arg26[%c0_313, %c0_314] : memref<1x16xf32, #tpu.memory_space<vmem>>, vector<1x16xf32>
    %509 = vector.broadcast %508 : vector<1x16xf32> to vector<2x16xf32>
    %510 = arith.addf %507, %509 : vector<2x16xf32>
    %c0_315 = arith.constant 0 : index
    %c0_316 = arith.constant 0 : index
    %511 = vector.load %arg27[%c0_315, %c0_316] : memref<2x16xf32, #tpu.memory_space<vmem>>, vector<2x16xf32>
    tpu.vector_store %arg27[%c0_315, %c0_316], %510 {strides = array<i32>} : memref<2x16xf32, #tpu.memory_space<vmem>>, vector<2x16xf32>,
    return
  }
}

</mosaic_0001>

<bundles_post_ra>
// kernel: bert_cross_forward.1
= control target key start
LH: loop header
LB: loop body
LE: loop exit
PB: predicated region body
PF: predicated region fallthrough
CT: control target
= control target key end

     0   :  { %s5950_s0 = inlined_call_operand.vmem [shape: f32[32,32], index: 0, kind: input, shape index: {}]   ;;  %s5951_s1 = inlined_call_operand.vmem [shape: f32[32,32], index: 1, kind: input, shape index: {}]   ;;  %s5952_s2 = inlined_call_operand.vmem [shape: f32[1,32], index: 2, kind: input, shape index: {}]   ;;  %s5953_s3 = inlined_call_operand.vmem [shape: f32[1,32], index: 3, kind: input, shape index: {}]   ;;  %s5954_s4 = inlined_call_operand.vmem [shape: f32[1,32], index: 4, kind: input, shape index: {}]   ;;  %s5955_s5 = inlined_call_operand.vmem [shape: f32[2,1,16], index: 5, kind: input, shape index: {}]   ;;  %s5956_s6 = inlined_call_operand.vmem [shape: f32[2,32], index: 6, kind: input, shape index: {}]   ;;  %s5957_s7 = inlined_call_operand.vmem [shape: bf16[2,2,32,16], index: 7, kind: input, shape index: {}]   ;;  %s5958_s8 = inlined_call_operand.vmem [shape: f32[2,2,1,16], index: 8, kind: input, shape index: {}]   ;;  %s5959_s9 = inlined_call_operand.vmem [shape: bf16[2,2,32,16], index: 9, kind: input, shape index: {}]   ;;  %s5960_s10 = inlined_call_operand.vmem [shape: f32[2,2,1,16], index: 10, kind: input, shape index: {}]   ;;  %s5961_s11 = inlined_call_operand.vmem [shape: bf16[2,2,32,16], index: 11, kind: input, shape index: {}]   ;;  %s5962_s12 = inlined_call_operand.vmem [shape: f32[2,2,1,16], index: 12, kind: input, shape index: {}]   ;;  %s5963_s13 = inlined_call_operand.vmem [shape: bf16[2,2,16,32], index: 13, kind: input, shape index: {}]   ;;  %s5964_s14 = inlined_call_operand.vmem [shape: f32[2,1,32], index: 14, kind: input, shape index: {}]   ;;  %s5965_s15 = inlined_call_operand.vmem [shape: f32[2,1,32], index: 15, kind: input, shape index: {}]   ;;  %s5966_s16 = inlined_call_operand.vmem [shape: f32[2,1,32], index: 16, kind: input, shape index: {}]   ;;  %s5967_s17 = inlined_call_operand.vmem [shape: bf16[2,32,128], index: 17, kind: input, shape index: {}]   ;;  %s5968_s18 = inlined_call_operand.vmem [shape: f32[2,1,128], index: 18, kind: input, shape index: {}]   ;;  %s5969_s19 = inlined_call_operand.vmem [shape: bf16[2,128,32], index: 19, kind: input, shape index: {}]   ;;  %s5970_s20 = inlined_call_operand.vmem [shape: f32[2,1,32], index: 20, kind: input, shape index: {}]   ;;  %s5971_s21 = inlined_call_operand.vmem [shape: f32[2,1,32], index: 21, kind: input, shape index: {}]   ;;  %s5972_s22 = inlined_call_operand.vmem [shape: f32[2,1,32], index: 22, kind: input, shape index: {}]   ;;  %s5973_s23 = inlined_call_operand.vmem [shape: bf16[32,32], index: 23, kind: input, shape index: {}]   ;;  %s5974_s24 = inlined_call_operand.vmem [shape: f32[1,32], index: 24, kind: input, shape index: {}]   ;;  %s5975_s25 = inlined_call_operand.vmem [shape: bf16[32,16], index: 25, kind: input, shape index: {}]   ;;  %s5976_s26 = inlined_call_operand.vmem [shape: f32[1,16], index: 26, kind: input, shape index: {}]   ;;  %s5977_s27 = inlined_call_operand.hbm [shape: f32[2,16], index: 27, kind: output, shape index: {}]  }
   0x1   :  { %5987 = sst [smem:[#allocation5_spill]] %s5950_s0 }
   0x2   :  { %5988 = sst [smem:[#allocation6_spill]] %s5951_s1 }
   0x3   :  { %5989 = sst [smem:[#allocation7_spill]] %s5952_s2 }
   0x4   :  { %5990 = sst [smem:[#allocation8_spill]] %s5953_s3 }
   0x5   :  { %5991 = sst [smem:[#allocation9_spill]] %s5954_s4 }
   0x6   :  { %5992 = sst [smem:[#allocation10_spill]] %s5955_s5 }
   0x7   :  { %5993 = sst [smem:[#allocation11_spill]] %s5956_s6 }
   0x8   :  { %5994 = sst [smem:[#allocation12_spill]] %s5957_s7 }
   0x9   :  { %5995 = sst [smem:[#allocation13_spill]] %s5958_s8 }
   0xa   :  { %5996 = sst [smem:[#allocation14_spill]] %s5959_s9 }
   0xb   :  { %5997 = sst [smem:[#allocation15_spill]] %s5960_s10 }
   0xc   :  { %5998 = sst [smem:[#allocation16_spill]] %s5961_s11 }
   0xd   :  { %5999 = sst [smem:[#allocation17_spill]] %s5972_s22 }
   0xe   :  { %s6000_s8 = sld [smem:[#allocation5_spill]]  ;;  %s6001_s22 = sld [smem:[#allocation6_spill]]  ;;  %vm113_vm0 = vcmask 261120  }
   0xf   :  { %s6002_s0 = sld [smem:[#allocation7_spill]] }
  0x14   :  { %v88_v0 = vld [vmem:[%s6000_s8] sm:$0xff]  ;;  %v90_v4 = vld [vmem:[%s6000_s8 + $0x10] sm:$0xff]  ;;  %v89_v6 = vld [vmem:[%s6000_s8 + $0x8] sm:$0xff] }
  0x15   :  { %v92_v1 = vld [vmem:[%s6001_s22] sm:$0xff]  ;;  %v94_v5 = vld [vmem:[%s6001_s22 + $0x10] sm:$0xff]  ;;  %v93_v8 = vld [vmem:[%s6001_s22 + $0x8] sm:$0xff] }
  0x16   :  { %v4092_v2 = vld [vmem:[%s6002_s0] ss:$0 sm:$0xff]  ;;  %v96_v3 = vadd.f32 %v92_v1, %v88_v0  ;;  %v98_v7 = vadd.f32 %v94_v5, %v90_v4  ;;  %v91_v9 = vld [vmem:[%s6000_s8 + $0x18] sm:$0xff]  ;;  %v97_v12 = vadd.f32 %v93_v8, %v89_v6 }
  0x17   :  { %v95_v10 = vld [vmem:[%s6001_s22 + $0x18] sm:$0xff] }
  0x18   :  { %v107_v11 = vadd.f32 %v4092_v2, %v96_v3  ;;  %v99_v13 = vadd.f32 %v95_v10, %v91_v9  ;;  %v109_v14 = vadd.f32 %v4092_v2, %v98_v7  ;;  %v108_v16 = vadd.f32 %v4092_v2, %v97_v12 }
  0x1a   :  { %v114_v15 = vsel %vm113_vm0, %v107_v11, 0.0  ;;  %v110_v17 = vadd.f32 %v4092_v2, %v99_v13  ;;  %v120_v18 = vsel %vm113_vm0, %v109_v14, 0.0  ;;  %v117_v19 = vsel %vm113_vm0, %v108_v16, 0.0 }
  0x1b   :  { %115 = vadd.xlane.f32.xlu0 %v114_v15  ;;  %121 = vadd.xlane.f32.xlu1 %v120_v18 }
  0x1c   :  { %v123_v20 = vsel %vm113_vm0, %v110_v17, 0.0 }
  0x1f   :  { %118 = vadd.xlane.f32.xlu0 %v117_v19  ;;  %124 = vadd.xlane.f32.xlu1 %v123_v20 }
  0x20   :  { %32 = vsyncpa [#allocation3], 0  ;;  %s6003_s28 = sld [smem:[#allocation12_spill]]  ;;  %s6004_s29 = sld [smem:[#allocation14_spill]]  ;;  %vm634_vm1 = vcmask 130048   ;;  %vm5140_vm3 = vmmov 0  }
  0x21   :  { %s6005_s4 = sld [smem:[#allocation16_spill]]  ;;  %s6007_s1 = sld [smem:[#allocation9_spill]]  ;;  %vm5399_vm2 = vmpackc.low %vm634_vm1, %vm634_vm1  ;;  %vm4076_vm4 = vcmask 123904  }
  0x22   :  { %s6006_s8 = sld [smem:[#allocation8_spill]]  ;;  %s6008_s11 = sld [smem:[#allocation13_spill]] }
  0x23   :  { %s6009_s7 = sld [smem:[#allocation15_spill]]  ;;  %s6012_s9 = sld [smem:[#allocation10_spill]] }
  0x24   :  { %s6013_s3 = sld [smem:[#allocation17_spill]] }
  0x26   :  { %v4939_v41 = vld [vmem:[%s6003_s28] sm:$0xff]   ;;  %v4941_v43 = vld [vmem:[%s6003_s28 + $0x8] sm:$0xff]   ;;  %v4944_v46 = vld [vmem:[%s6003_s28 + $0x10] sm:$0xff]  }
  0x27   :  { %v4940_v42 = vld [vmem:[%s6004_s29] sm:$0xff]   ;;  %4510 = vmatprep.subr.bf16.mxu0 %v4939_v41  ;;  %v4942_v44 = vld [vmem:[%s6004_s29 + $0x8] sm:$0xff]   ;;  %v4948_v18 = vld [vmem:[%s6005_s4 + $0x10] sm:$0xff]  }
  0x28   :  { %4518 = vmatprep.subr.bf16.mxu1 %v4940_v42  ;;  %4511 = vmatpush3.bf16.msra.mxu0 %v4939_v41  ;;  %v4943_v45 = vld [vmem:[%s6005_s4] sm:$0xff]   ;;  %v4945_v15 = vld [vmem:[%s6005_s4 + $0x8] sm:$0xff]   ;;  %v4949_v19 = vld [vmem:[%s6004_s29 + $0x18] sm:$0xff]  }
  0x29   :  { %4519 = vmatpush3.bf16.msra.mxu1 %v4940_v42  ;;  %4512 = vmatprep.subr.bf16.mxu0 %v4941_v43  ;;  %v4093_v61 = vld [vmem:[%s6006_s8] ss:$0 sm:$0xff]  ;;  %v4950_v20 = vld [vmem:[%s6005_s4 + $0x18] sm:$0xff]   ;;  %v4115_v41 = vld [vmem:[%s6008_s11 + $0x1] ss:$0 sm:$0xff] }
  0x2a   :  { %4520 = vmatprep.subr.bf16.mxu1 %v4942_v44  ;;  %v4094_v2 = vld [vmem:[%s6007_s1] ss:$0 sm:$0xff] }
  0x2c   :  { %4513 = vmatpush3.bf16.msra.mxu0 %v4941_v43  ;;  %v4105_v43 = vld [vmem:[%s5962_s12] ss:$0 sm:$0xff] }
  0x2d   :  { %4521 = vmatpush3.bf16.msra.mxu1 %v4942_v44  ;;  %4526 = vmatprep.subr.bf16.mxu0 %v4943_v45 }
  0x2e   :  { %4534 = vmatprep.subr.bf16.mxu1 %v4944_v46 }
  0xa8   :  { %v116_v21 = vpop.xlane.xlu0 %115  ;;  %v122_v23 = vpop.xlane.xlu1 %121 }
  0xa9   :  { %v127_v22 = vmul.f32 0.03125, %v116_v21  ;;  %v129_v24 = vmul.f32 0.03125, %v122_v23  ;;  %v4095_v21 = vld [vmem:[%s6008_s11] ss:$0 sm:$0xff] }
  0xab   :  { %v131_v25 = vsub.f32 %v107_v11, %v127_v22  ;;  %v133_v26 = vsub.f32 %v109_v14, %v129_v24  ;;  %v4100_v22 = vld [vmem:[%s6009_s7] ss:$0 sm:$0xff] }
  0xac   :  { %v119_v27 = vpop.xlane.xlu0 %118  ;;  %v125_v29 = vpop.xlane.xlu1 %124 }
  0xad   :  { %v128_v28 = vmul.f32 0.03125, %v119_v27  ;;  %v135_v30 = vmul.f32 %v131_v25, %v131_v25  ;;  %v130_v31 = vmul.f32 0.03125, %v125_v29  ;;  %v137_v32 = vmul.f32 %v133_v26, %v133_v26 }
  0xaf   :  { %v132_v33 = vsub.f32 %v108_v16, %v128_v28  ;;  %v139_v34 = vsel %vm113_vm0, %v135_v30, 0.0  ;;  %v134_v35 = vsub.f32 %v110_v17, %v130_v31  ;;  %v145_v36 = vsel %vm113_vm0, %v137_v32, 0.0  ;;  %v4946_v16 = vld [vmem:[%s6003_s28 + $0x18] sm:$0xff]   ;;  %v4947_v17 = vld [vmem:[%s6004_s29 + $0x10] sm:$0xff]  }
  0xb0   :  { %140 = vadd.xlane.f32.xlu0 %v139_v34 }
  0xb1   :  { %v136_v37 = vmul.f32 %v132_v33, %v132_v33  ;;  %v138_v38 = vmul.f32 %v134_v35, %v134_v35 }
  0xb3   :  { %v142_v39 = vsel %vm113_vm0, %v136_v37, 0.0  ;;  %v148_v40 = vsel %vm113_vm0, %v138_v38, 0.0 }
  0xb4   :  { %146 = vadd.xlane.f32.xlu0 %v145_v36  ;;  %143 = vadd.xlane.f32.xlu1 %v142_v39 }
  0xb8   :  { %149 = vadd.xlane.f32.xlu1 %v148_v40 }
 0x13d   :  { %v141_v47 = vpop.xlane.xlu0 %140 }
 0x13e   :  { %v151_v48 = vmul.f32 0.03125, %v141_v47 }
 0x140   :  { %v155_v49 = vadd.f32 1e-12, %v151_v48 }
 0x141   :  { %v144_v50 = vpop.xlane.xlu1 %143  ;;  %v147_v51 = vpop.xlane.xlu0 %146 }
 0x142   :  { %4991 = vrsqrt.f32 %v155_v49  ;;  %v152_v52 = vmul.f32 0.03125, %v144_v50  ;;  %v153_v53 = vmul.f32 0.03125, %v147_v51 }
 0x144   :  { %v156_v54 = vadd.f32 1e-12, %v152_v52  ;;  %v157_v55 = vadd.f32 1e-12, %v153_v53 }
 0x145   :  { %v150_v56 = vpop.xlane.xlu1 %149 }
 0x146   :  { %4993 = vrsqrt.f32 %v156_v54  ;;  %v154_v57 = vmul.f32 0.03125, %v150_v56 }
 0x147   :  { %4995 = vrsqrt.f32 %v157_v55 }
 0x148   :  { %v158_v58 = vadd.f32 1e-12, %v154_v57 }
 0x14a   :  { %4997 = vrsqrt.f32 %v158_v58 }
 0x14c   :  { %v4992_v59 = vpop.eup %4991 }
 0x14d   :  { %v163_v60 = vmul.f32 %v4992_v59, %v131_v25 }
 0x14f   :  { %v173_v0 = vmul.f32 %v4093_v61, %v163_v60  ;;  %v4125_v60 = vld [vmem:[%s6009_s7 + $0x1] ss:$0 sm:$0xff] }
 0x150   :  { %v4994_v62 = vpop.eup %4993 }
 0x151   :  { %v4996_v63 = vpop.eup %4995  ;;  %v164_v1 = vmul.f32 %v4994_v62, %v132_v33  ;;  %v5342_v6 = vadd.f32 %v4094_v2, %v173_v0  ;;  %v4135_v62 = vld [vmem:[%s5962_s12 + $0x1] ss:$0 sm:$0xff] }
 0x152   :  { %v165_v3 = vmul.f32 %v4996_v63, %v133_v26 }
 0x153   :  { %v174_v4 = vmul.f32 %v4093_v61, %v164_v1 }
 0x154   :  { %v4998_v5 = vpop.eup %4997  ;;  %v175_v8 = vmul.f32 %v4093_v61, %v165_v3 }
 0x155   :  { %v5344_v7 = vadd.f32 %v4094_v2, %v174_v4  ;;  %v166_v9 = vmul.f32 %v4998_v5, %v134_v35 }
 0x156   :  { %v5348_v12 = vadd.f32 %v4094_v2, %v175_v8 }
 0x157   :  { %v176_v10 = vmul.f32 %v4093_v61, %v166_v9  ;;  %v187_v11 = vpack.c.bf16 %v5344_v7, %v5342_v6 }
 0x159   :  { %v5350_v13 = vadd.f32 %v4094_v2, %v176_v10  ;;  %4514 = vmatprep.mubr.msk.bf16.mxu0 %vm113_vm0, %v187_v11  ;;  %4522 = vmatprep.mubr.msk.bf16.mxu1 %vm113_vm0, %v187_v11 }
 0x15b   :  { %v188_v14 = vpack.c.bf16 %v5350_v13, %v5348_v12 }
 0x15d   :  { %4515 = vmatmul.mubr.msk.bf16.vlgmr.msra.gmra.mrb[0].mxu0 %vm113_vm0, %v188_v14  ;;  %4523 = vmatmul.mubr.msk.bf16.vlgmr.msra.gmra.mrb[0].mxu1 %vm113_vm0, %v188_v14 }
 0x15e   :  { %4527 = vmatpush3.bf16.msra.mxu0 %v4943_v45  ;;  %4530 = vmatprep.mubr.msk.bf16.mxu0 %vm113_vm0, %v187_v11 }
 0x15f   :  { %4535 = vmatpush3.bf16.msra.mxu1 %v4944_v46  ;;  %4538 = vmatprep.mubr.msk.bf16.mxu1 %vm113_vm0, %v187_v11 }
 0x160   :  { %4528 = vmatprep.subr.bf16.mxu0 %v4945_v15  ;;  %4536 = vmatprep.subr.bf16.mxu1 %v4946_v16 }
 0x162   :  { %4529 = vmatpush3.bf16.msra.mxu0 %v4945_v15 }
 0x163   :  { %4537 = vmatpush3.bf16.msra.mxu1 %v4946_v16  ;;  %4542 = vmatprep.subr.bf16.mxu0 %v4947_v17 }
 0x164   :  { %4550 = vmatprep.subr.bf16.mxu1 %v4948_v18 }
 0x165   :  { %4531 = vmatmul.mubr.msk.bf16.vlgmr.msra.gmra.mrb[4].mxu0 %vm113_vm0, %v188_v14 }
 0x166   :  { %4539 = vmatmul.mubr.msk.bf16.vlgmr.msra.gmra.mrb[4].mxu1 %vm113_vm0, %v188_v14  ;;  %4543 = vmatpush3.bf16.msra.mxu0 %v4947_v17 }
 0x167   :  { %4546 = vmatprep.mubr.msk.bf16.mxu0 %vm113_vm0, %v187_v11  ;;  %4551 = vmatpush3.bf16.msra.mxu1 %v4948_v18 }
 0x168   :  { %4554 = vmatprep.mubr.msk.bf16.mxu1 %vm113_vm0, %v187_v11  ;;  %4544 = vmatprep.subr.bf16.mxu0 %v4949_v19 }
 0x169   :  { %4552 = vmatprep.subr.bf16.mxu1 %v4950_v20 }
 0x16a   :  { %4545 = vmatpush3.bf16.msra.mxu0 %v4949_v19 }
 0x16b   :  { %4553 = vmatpush3.bf16.msra.mxu1 %v4950_v20 }
 0x16d   :  { %4547 = vmatmul.mubr.msk.bf16.vlgmr.msra.gmra.mrb[8].mxu0 %vm113_vm0, %v188_v14 }
 0x16e   :  { %4555 = vmatmul.mubr.msk.bf16.vlgmr.msra.gmra.mrb[8].mxu1 %vm113_vm0, %v188_v14 }
 0x230   :  { %v4516_v23 = vpop.f32.mrb[0].mxu0  ;;  %v4524_v24 = vpop.f32.mrb[0].mxu1 }
 0x231   :  { %v5390_v25 = vadd.f32 %v4516_v23, %v4095_v21  ;;  %v333_v26 = vadd.f32 %v4524_v24, %v4100_v22  ;;  %v252_v27 = vpop.f32.mrb[1].mxu0  ;;  %v324_v28 = vpop.f32.mrb[1].mxu1  ;;  %v5139_v23 = vmov 0.0   ;;  %v5442_v24 = vld [vmem:[%s5963_s13] sm:$0xff]  }
 0x232   :  { %v253_v29 = vadd.f32 %v4095_v21, %v252_v27  ;;  %v4517_v30 = vpop.f32.mrb[2].mxu0  ;;  %v4525_v31 = vpop.f32.mrb[2].mxu1  ;;  %v325_v36 = vadd.f32 %v4100_v22, %v324_v28  ;;  %v4144_v28 = vld [vmem:[%s6012_s9] ss:$0 sm:$0xff] }
 0x233   :  { %v5392_v32 = vadd.f32 %v4517_v30, %v4095_v21  ;;  %v336_v33 = vadd.f32 %v4525_v31, %v4100_v22  ;;  %v255_v34 = vpop.f32.mrb[3].mxu0  ;;  %v327_v35 = vpop.f32.mrb[3].mxu1 }
 0x234   :  { %v328_v37 = vadd.f32 %v4100_v22, %v327_v35  ;;  %4562 = vmatprep.mubr.msk.f32.mxu0 %vm634_vm1, %v253_v29  ;;  %v256_v58 = vadd.f32 %v4095_v21, %v255_v34 }
 0x235   :  { %v5395_v38 = vpack.c.bf16 %v336_v33, %v333_v26 }
 0x236   :  { %v4849_v40 = vpack.c.bf16 %v328_v37, %v325_v36 }
 0x238   :  { %v4532_v42 = vpop.f32.mrb[4].mxu0  ;;  %4851 = vmatprep.subr.msk.bf16.mxu0 %vm5399_vm2, %v4849_v40 }
 0x239   :  { %v4540_v44 = vpop.f32.mrb[4].mxu1  ;;  %v396_v45 = vpop.f32.mrb[5].mxu0  ;;  %4854 = vmatpush3.bf16.xpose.msk.msra.mxu0 %vm5399_vm2, %v4849_v40  ;;  %v405_v49 = vadd.f32 %v4532_v42, %v4105_v43 }
 0x23a   :  { %v5413_v46 = vadd.f32 %v4540_v44, %v4115_v41  ;;  %v470_v47 = vpop.f32.mrb[5].mxu1  ;;  %v4533_v48 = vpop.f32.mrb[6].mxu0  ;;  %v397_v53 = vadd.f32 %v4105_v43, %v396_v45 }
 0x23b   :  { %v408_v50 = vadd.f32 %v4533_v48, %v4105_v43  ;;  %v4541_v51 = vpop.f32.mrb[6].mxu1  ;;  %v399_v52 = vpop.f32.mrb[7].mxu0  ;;  %v471_v61 = vadd.f32 %v4115_v41, %v470_v47 }
 0x23c   :  { %v5415_v54 = vadd.f32 %v4541_v51, %v4115_v41  ;;  %v400_v55 = vadd.f32 %v4105_v43, %v399_v52  ;;  %v473_v56 = vpop.f32.mrb[7].mxu1 }
 0x23d   :  { %v5417_v57 = vpack.c.bf16 %v408_v50, %v405_v49  ;;  %v474_v26 = vadd.f32 %v4115_v41, %v473_v56 }
 0x23e   :  { %v4855_v59 = vpack.c.bf16 %v400_v55, %v397_v53 }
 0x240   :  { %v4548_v63 = vpop.f32.mrb[8].mxu0  ;;  %4563 = vmatmul.mubr.msk.f32.vlgmr.msra.gmra.mrb[12].mxu0 %vm634_vm1, %v256_v58  ;;  %4856 = vmatprep.subr.bf16.mxu1 %v4855_v59 }
 0x241   :  { %v553_v0 = vadd.f32 %v4548_v63, %v4125_v60  ;;  %v4556_v1 = vpop.f32.mrb[8].mxu1  ;;  %v544_v2 = vpop.f32.mrb[9].mxu0  ;;  %4858 = vmatpush3.bf16.msra.mxu1 %v4855_v59  ;;  %4576 = vmatprep.mubr.msk.f32.mxu0 %vm634_vm1, %v471_v61 }
 0x242   :  { %v627_v3 = vadd.f32 %v4556_v1, %v4135_v62  ;;  %v618_v4 = vpop.f32.mrb[9].mxu1  ;;  %v4549_v5 = vpop.f32.mrb[10].mxu0  ;;  %v545_v11 = vadd.f32 %v4125_v60, %v544_v2 }
 0x243   :  { %v556_v8 = vadd.f32 %v4549_v5, %v4125_v60  ;;  %v4557_v9 = vpop.f32.mrb[10].mxu1  ;;  %v547_v10 = vpop.f32.mrb[11].mxu0  ;;  %v619_v17 = vadd.f32 %v4135_v62, %v618_v4 }
 0x244   :  { %v630_v14 = vadd.f32 %v4557_v9, %v4135_v62  ;;  %v548_v15 = vadd.f32 %v4125_v60, %v547_v10  ;;  %v621_v16 = vpop.f32.mrb[11].mxu1 }
 0x245   :  { %v5427_v18 = vpack.c.bf16 %v556_v8, %v553_v0  ;;  %v622_v19 = vadd.f32 %v4135_v62, %v621_v16 }
 0x246   :  { %v5429_v20 = vpack.c.bf16 %v630_v14, %v627_v3  ;;  %v4859_v21 = vpack.c.bf16 %v548_v15, %v545_v11 }
 0x247   :  { %v5431_v22 = vpack.c.bf16 %v622_v19, %v619_v17 }
 0x248   :  { %4861 = vmatprep.subr.msk.bf16.mxu0 %vm5399_vm2, %v4859_v21 }
 0x249   :  { %4866 = vmatprep.subr.bf16.mxu1 %v5431_v22  ;;  %4864 = vmatpush3.bf16.xpose.msk.msra.mxu0 %vm5399_vm2, %v4859_v21 }
 0x24a   :  { %4592 = vmatprep.subr.bf16.mxu0 %v5139_v23 }
 0x250   :  { %4577 = vmatmul.mubr.msk.f32.vlgmr.msra.gmra.mrb[14].mxu0 %vm634_vm1, %v474_v26 }
 0x251   :  { %4593 = vmatpush3.bf16.msra.mxu0 %v5442_v24  ;;  %4594 = vmatprep.mubr.msk.bf16.mxu0 %vm5140_vm3, %v5139_v23 }
 0x252   :  { %4876 = vmatprep.subr.bf16.mxu0 %v5417_v57 }
 0x313   :  { %v4564_v27 = vpop.f32.mrb[12].mxu0 }
 0x314   :  { %v723_v29 = vmul.f32 0.25, %v4564_v27  ;;  %v713_v30 = vpop.f32.mrb[13].mxu0  ;;  %v5465_v27 = vld [vmem:[%s5963_s13 + $0x8] sm:$0xff]  }
 0x315   :  { %v722_v31 = vmul.f32 0.25, %v713_v30 }
 0x316   :  { %v731_v33 = vadd.f32 %v4144_v28, %v723_v29 }
 0x317   :  { %v730_v34 = vadd.f32 %v4144_v28, %v722_v31 }
 0x318   :  { %v735_v35 = vsel %vm634_vm1, %v731_v33, -inf }
 0x319   :  { %736 = vmax.xlane.f32.xlu1 %v735_v35  ;;  %v732_v36 = vsel %vm634_vm1, %v730_v34, -inf }
 0x31a   :  { %733 = vmax.xlane.f32.xlu0 %v732_v36 }
 0x323   :  { %v4578_v37 = vpop.f32.mrb[14].mxu0 }
 0x324   :  { %v926_v40 = vmul.f32 0.25, %v4578_v37  ;;  %v916_v41 = vpop.f32.mrb[15].mxu0 }
 0x325   :  { %v925_v42 = vmul.f32 0.25, %v916_v41 }
 0x326   :  { %v928_v43 = vadd.f32 %v4144_v28, %v926_v40 }
 0x327   :  { %v927_v44 = vadd.f32 %v4144_v28, %v925_v42 }
 0x328   :  { %v932_v45 = vsel %vm634_vm1, %v928_v43, -inf }
 0x329   :  { %933 = vmax.xlane.f32.xlu1 %v932_v45  ;;  %v929_v47 = vsel %vm634_vm1, %v927_v44, -inf }
 0x32a   :  { %930 = vmax.xlane.f32.xlu0 %v929_v47 }
 0x3a6   :  { %v737_v48 = vpop.xlane.xlu1 %736 }
 0x3a7   :  { %v739_v49 = vsub.f32 %v731_v33, %v737_v48  ;;  %v734_v50 = vpop.xlane.xlu0 %733 }
 0x3a8   :  { %v738_v51 = vsub.f32 %v730_v34, %v734_v50 }
 0x3a9   :  { %v742_v52 = vmul.f32 1.442695, %v739_v49 }
 0x3aa   :  { %v740_v53 = vmul.f32 1.442695, %v738_v51 }
 0x3ab   :  { %4999 = vpow2.f32 %v742_v52 }
 0x3ac   :  { %5001 = vpow2.f32 %v740_v53 }
 0x3b5   :  { %v5000_v55 = vpop.eup %4999 }
 0x3b6   :  { %v5002_v56 = vpop.eup %5001  ;;  %v934_v58 = vpop.xlane.xlu1 %933  ;;  %v747_v59 = vsel %vm634_vm1, %v5000_v55, 0.0 }
 0x3b7   :  { %v936_v60 = vsub.f32 %v928_v43, %v934_v58  ;;  %748 = vadd.xlane.f32.xlu1 %v747_v59  ;;  %v931_v61 = vpop.xlane.xlu0 %930  ;;  %v744_v62 = vsel %vm634_vm1, %v5002_v56, 0.0 }
 0x3b8   :  { %v935_v63 = vsub.f32 %v927_v44, %v931_v61  ;;  %745 = vadd.xlane.f32.xlu0 %v744_v62 }
 0x3b9   :  { %v939_v0 = vmul.f32 1.442695, %v936_v60 }
 0x3ba   :  { %v937_v1 = vmul.f32 1.442695, %v935_v63 }
 0x3bb   :  { %5003 = vpow2.f32 %v939_v0 }
 0x3bc   :  { %5005 = vpow2.f32 %v937_v1 }
 0x3c5   :  { %v5004_v2 = vpop.eup %5003 }
 0x3c6   :  { %v5006_v3 = vpop.eup %5005  ;;  %v944_v4 = vsel %vm634_vm1, %v5004_v2, 0.0 }
 0x3c7   :  { %945 = vadd.xlane.f32.xlu1 %v944_v4  ;;  %v941_v5 = vsel %vm634_vm1, %v5006_v3, 0.0 }
 0x3c8   :  { %942 = vadd.xlane.f32.xlu0 %v941_v5 }
 0x444   :  { %v749_v8 = vpop.xlane.xlu1 %748 }
 0x445   :  { %5007 = vrcp.f32 %v749_v8  ;;  %v746_v9 = vpop.xlane.xlu0 %745 }
 0x446   :  { %5009 = vrcp.f32 %v746_v9 }
 0x44f   :  { %v5008_v10 = vpop.eup %5007 }
 0x450   :  { %v5010_v11 = vpop.eup %5009  ;;  %v753_v15 = vmul.f32 %v5008_v10, %v5000_v55 }
 0x451   :  { %v752_v14 = vmul.f32 %v5010_v11, %v5002_v56 }
 0x453   :  { %4569 = vmatprep.mubr.msk.f32.mxu1 %vm634_vm1, %v752_v14 }
 0x454   :  { %v946_v16 = vpop.xlane.xlu1 %945  ;;  %4570 = vmatmul.mubr.msk.f32.vlgmr.msra.gmra.mrb[12].mxu1 %vm634_vm1, %v753_v15  ;;  %v5514_v15 = vld [vmem:[%s5964_s14] ss:$0 sm:$0xff] }
 0x455   :  { %5011 = vrcp.f32 %v946_v16  ;;  %4868 = vmatpush3.bf16.msra.mxu1 %v5431_v22  ;;  %v943_v17 = vpop.xlane.xlu0 %942 }
 0x456   :  { %5013 = vrcp.f32 %v943_v17  ;;  %4586 = vmatprep.subr.bf16.mxu1 %v5139_v23 }
 0x45f   :  { %v5012_v19 = vpop.eup %5011 }
 0x460   :  { %v5014_v21 = vpop.eup %5013  ;;  %v950_v28 = vmul.f32 %v5012_v19, %v5004_v2 }
 0x461   :  { %v949_v26 = vmul.f32 %v5014_v21, %v5006_v3 }
 0x463   :  { %4583 = vmatprep.mubr.msk.f32.mxu1 %vm634_vm1, %v949_v26 }
 0x464   :  { %4584 = vmatmul.mubr.msk.f32.vlgmr.msra.gmra.mrb[14].mxu1 %vm634_vm1, %v950_v28 }
 0x465   :  { %4587 = vmatpush3.bf16.msra.mxu1 %v5465_v27  ;;  %4588 = vmatprep.mubr.msk.bf16.mxu1 %vm5140_vm3, %v5139_v23 }
 0x466   :  { %4871 = vmatprep.subr.msk.bf16.mxu1 %vm5399_vm2, %v5395_v38 }
 0x527   :  { %v4571_v22 = vpop.f32.mrb[12].mxu1 }
 0x528   :  { %v826_v29 = vpop.f32.mrb[13].mxu1 }
 0x529   :  { %v835_v30 = vpack.c.bf16 %v4571_v22, %v826_v29 }
 0x52b   :  { %4595 = vmatmul.mubr.msk.bf16.vlgmr.msra.gmra.mrb[16].mxu0 %vm634_vm1, %v835_v30 }
 0x52c   :  { %4878 = vmatpush3.bf16.msra.mxu0 %v5417_v57 }
 0x52d   :  { %4886 = vmatprep.subr.bf16.mxu0 %v5429_v20 }
 0x537   :  { %v4585_v31 = vpop.f32.mrb[14].mxu1 }
 0x538   :  { %v1023_v33 = vpop.f32.mrb[15].mxu1 }
 0x539   :  { %v1032_v34 = vpack.c.bf16 %v4585_v31, %v1023_v33 }
 0x53b   :  { %4589 = vmatmul.mubr.msk.bf16.vlgmr.msra.gmra.mrb[16].mxu1 %vm634_vm1, %v1032_v34 }
 0x53c   :  { %4874 = vmatpush3.bf16.xpose.msk.msra.mxu1 %vm5399_vm2, %v5395_v38  ;;  %4602 = vmatprep.mubr.msk.f32.mxu1 %vm634_vm1, %v5390_v25 }
 0x53d   :  { %4881 = vmatprep.subr.msk.bf16.mxu1 %vm5399_vm2, %v5427_v18 }
 0x543   :  { %4603 = vmatmul.mubr.msk.f32.vlgmr.msra.gmra.mrb[20].mxu1 %vm634_vm1, %v5392_v32 }
 0x544   :  { %4884 = vmatpush3.bf16.xpose.msk.msra.mxu1 %vm5399_vm2, %v5427_v18  ;;  %4616 = vmatprep.mubr.msk.f32.mxu1 %vm634_vm1, %v5413_v46 }
 0x545   :  { %4632 = vmatprep.subr.bf16.mxu1 %v5139_v23 }
 0x54b   :  { %4617 = vmatmul.mubr.msk.f32.vlgmr.msra.gmra.mrb[22].mxu1 %vm634_vm1, %v5415_v54  ;;  %v4164_v54 = vld [vmem:[%s6012_s9 + $0x1] ss:$0 sm:$0xff] }
 0x54c   :  { %4633 = vmatpush3.bf16.msra.mxu1 %v5442_v24  ;;  %4634 = vmatprep.mubr.msk.bf16.mxu1 %vm5140_vm3, %v5139_v23 }
 0x5fe   :  { %v1129_v25 = vpop.f32.mrb[16].mxu0 }
 0x5ff   :  { %v4596_v38 = vpop.f32.mrb[17].mxu0 }
 0x600   :  { %v1132_v32 = vpop.f32.mrb[18].mxu0 }
 0x601   :  { %v4597_v57 = vpop.f32.mrb[19].mxu0 }
 0x60e   :  { %v1079_v35 = vpop.f32.mrb[16].mxu1 }
 0x60f   :  { %v1130_v36 = vadd.f32 %v1129_v25, %v1079_v35  ;;  %v4590_v18 = vpop.f32.mrb[17].mxu1 }
 0x610   :  { %v1082_v37 = vpop.f32.mrb[18].mxu1 }
 0x611   :  { %v1133_v40 = vadd.f32 %v1132_v32, %v1082_v37  ;;  %v4591_v46 = vpop.f32.mrb[19].mxu1  ;;  %v1629_v17 = vadd.f32 %v5514_v15, %v1130_v36 }
 0x613   :  { %v1630_v16 = vadd.f32 %v5514_v15, %v1133_v40  ;;  %v1633_v29 = vadd.f32 %v1629_v17, %v5342_v6 }
 0x615   :  { %v1634_v28 = vadd.f32 %v1630_v16, %v5344_v7  ;;  %v1639_v31 = vsel %vm113_vm0, %v1633_v29, 0.0 }
 0x616   :  { %v4604_v41 = vpop.f32.mrb[20].mxu1 }
 0x617   :  { %v1226_v42 = vmul.f32 0.25, %v4604_v41  ;;  %v1216_v24 = vpop.f32.mrb[21].mxu1  ;;  %v1642_v30 = vsel %vm113_vm0, %v1634_v28, 0.0 }
 0x618   :  { %v1225_v43 = vmul.f32 0.25, %v1216_v24 }
 0x619   :  { %v1234_v44 = vadd.f32 %v4164_v54, %v1226_v42 }
 0x61a   :  { %v1233_v45 = vadd.f32 %v4164_v54, %v1225_v43 }
 0x61b   :  { %v1238_v47 = vsel %vm634_vm1, %v1234_v44, -inf }
 0x61c   :  { %1239 = vmax.xlane.f32.xlu1 %v1238_v47  ;;  %v1235_v48 = vsel %vm634_vm1, %v1233_v45, -inf }
 0x61d   :  { %1236 = vmax.xlane.f32.xlu0 %v1235_v48 }
 0x61e   :  { %v4618_v49 = vpop.f32.mrb[22].mxu1 }
 0x61f   :  { %v1427_v50 = vmul.f32 0.25, %v4618_v49  ;;  %v1417_v51 = vpop.f32.mrb[23].mxu1 }
 0x620   :  { %v1426_v52 = vmul.f32 0.25, %v1417_v51 }
 0x621   :  { %v1429_v53 = vadd.f32 %v4164_v54, %v1427_v50 }
 0x622   :  { %v1428_v55 = vadd.f32 %v4164_v54, %v1426_v52 }
 0x623   :  { %v1433_v56 = vsel %vm634_vm1, %v1429_v53, -inf }
 0x624   :  { %1434 = vmax.xlane.f32.xlu1 %v1433_v56  ;;  %v1430_v58 = vsel %vm634_vm1, %v1428_v55, -inf }
 0x625   :  { %1431 = vmax.xlane.f32.xlu0 %v1430_v58 }
 0x6a9   :  { %v1240_v59 = vpop.xlane.xlu1 %1239 }
 0x6aa   :  { %v1242_v60 = vsub.f32 %v1234_v44, %v1240_v59  ;;  %v1237_v61 = vpop.xlane.xlu0 %1236 }
 0x6ab   :  { %v1241_v62 = vsub.f32 %v1233_v45, %v1237_v61 }
 0x6ac   :  { %v1245_v63 = vmul.f32 1.442695, %v1242_v60 }
 0x6ad   :  { %v1243_v0 = vmul.f32 1.442695, %v1241_v62 }
 0x6ae   :  { %5015 = vpow2.f32 %v1245_v63 }
 0x6af   :  { %5017 = vpow2.f32 %v1243_v0 }
 0x6b1   :  { %v1435_v1 = vpop.xlane.xlu1 %1434 }
 0x6b2   :  { %v1437_v2 = vsub.f32 %v1429_v53, %v1435_v1  ;;  %v1432_v3 = vpop.xlane.xlu0 %1431 }
 0x6b3   :  { %v1436_v4 = vsub.f32 %v1428_v55, %v1432_v3 }
 0x6b4   :  { %v1440_v5 = vmul.f32 1.442695, %v1437_v2 }
 0x6b5   :  { %v1438_v8 = vmul.f32 1.442695, %v1436_v4 }
 0x6b6   :  { %5019 = vpow2.f32 %v1440_v5 }
 0x6b7   :  { %5021 = vpow2.f32 %v1438_v8 }
 0x6b8   :  { %v5016_v9 = vpop.eup %5015 }
 0x6b9   :  { %v5018_v10 = vpop.eup %5017  ;;  %v1250_v11 = vsel %vm634_vm1, %v5016_v9, 0.0 }
 0x6ba   :  { %1251 = vadd.xlane.f32.xlu1 %v1250_v11  ;;  %v1247_v14 = vsel %vm634_vm1, %v5018_v10, 0.0 }
 0x6bb   :  { %1248 = vadd.xlane.f32.xlu0 %v1247_v14 }
 0x6c0   :  { %v5020_v19 = vpop.eup %5019 }
 0x6c1   :  { %v5022_v21 = vpop.eup %5021  ;;  %v1445_v26 = vsel %vm634_vm1, %v5020_v19, 0.0 }
 0x6c2   :  { %1446 = vadd.xlane.f32.xlu1 %v1445_v26  ;;  %v1442_v22 = vsel %vm634_vm1, %v5022_v21, 0.0 }
 0x6c3   :  { %1443 = vadd.xlane.f32.xlu0 %v1442_v22 }
 0x6c6   :  { %1643 = vadd.xlane.f32.xlu1 %v1642_v30 }
 0x6c7   :  { %1640 = vadd.xlane.f32.xlu0 %v1639_v31  ;;  %v4176_v31 = vld [vmem:[%s5965_s15] ss:$0 sm:$0xff] }
 0x747   :  { %v1252_v33 = vpop.xlane.xlu1 %1251 }
 0x748   :  { %5023 = vrcp.f32 %v1252_v33  ;;  %v1249_v34 = vpop.xlane.xlu0 %1248 }
 0x749   :  { %5025 = vrcp.f32 %v1249_v34 }
 0x74f   :  { %v1447_v25 = vpop.xlane.xlu1 %1446 }
 0x750   :  { %5027 = vrcp.f32 %v1447_v25  ;;  %v1444_v38 = vpop.xlane.xlu0 %1443 }
 0x751   :  { %5029 = vrcp.f32 %v1444_v38 }
 0x752   :  { %v5024_v7 = vpop.eup %5023 }
 0x753   :  { %v5026_v32 = vpop.eup %5025  ;;  %v1256_v35 = vmul.f32 %v5024_v7, %v5016_v9  ;;  %v1644_v48 = vpop.xlane.xlu1 %1643  ;;  %v4177_v7 = vld [vmem:[%s5966_s16] ss:$0 sm:$0xff] }
 0x754   :  { %v1255_v57 = vmul.f32 %v5026_v32, %v5018_v10  ;;  %v1641_v47 = vpop.xlane.xlu0 %1640  ;;  %v1652_v50 = vmul.f32 0.03125, %v1644_v48 }
 0x756   :  { %4609 = vmatprep.mubr.msk.f32.mxu0 %vm634_vm1, %v1255_v57  ;;  %v1656_v60 = vsub.f32 %v1634_v28, %v1652_v50  ;;  %v4955_v50 = vld [vmem:[%s5969_s19] sm:$0xff]  }
 0x757   :  { %4610 = vmatmul.mubr.msk.f32.vlgmr.msra.gmra.mrb[20].mxu0 %vm634_vm1, %v1256_v35  ;;  %4646 = vmatprep.subr.bf16.mxu1 %v4955_v50 }
 0x758   :  { %4888 = vmatpush3.bf16.msra.mxu0 %v5429_v20  ;;  %v1660_v3 = vmul.f32 %v1656_v60, %v1656_v60 }
 0x759   :  { %4626 = vmatprep.subr.bf16.mxu0 %v5139_v23 }
 0x75a   :  { %v5028_v6 = vpop.eup %5027  ;;  %v1666_v5 = vsel %vm113_vm0, %v1660_v3, 0.0 }
 0x75b   :  { %v5030_v36 = vpop.eup %5029  ;;  %v1451_v37 = vmul.f32 %v5028_v6, %v5020_v19 }
 0x75c   :  { %v1450_v18 = vmul.f32 %v5030_v36, %v5022_v21  ;;  %v4953_v36 = vld [vmem:[%s5967_s17] sm:$0xff]  }
 0x75e   :  { %4623 = vmatprep.mubr.msk.f32.mxu0 %vm634_vm1, %v1450_v18  ;;  %v4954_v18 = vld [vmem:[%s5967_s17 + $0x8] sm:$0xff]  }
 0x75f   :  { %4624 = vmatmul.mubr.msk.f32.vlgmr.msra.gmra.mrb[22].mxu0 %vm634_vm1, %v1451_v37 }
 0x760   :  { %4627 = vmatpush3.bf16.msra.mxu0 %v5465_v27  ;;  %4628 = vmatprep.mubr.msk.bf16.mxu0 %vm5140_vm3, %v5139_v23  ;;  %v1651_v27 = vmul.f32 0.03125, %v1641_v47 }
 0x761   :  { %4638 = vmatprep.subr.bf16.mxu0 %v4953_v36 }
 0x762   :  { %v1655_v55 = vsub.f32 %v1633_v29, %v1651_v27 }
 0x764   :  { %v1659_v1 = vmul.f32 %v1655_v55, %v1655_v55 }
 0x766   :  { %v1663_v4 = vsel %vm113_vm0, %v1659_v1, 0.0 }
 0x82a   :  { %v4611_v40 = vpop.f32.mrb[20].mxu0 }
 0x82b   :  { %v1329_v46 = vpop.f32.mrb[21].mxu0 }
 0x82c   :  { %v1338_v41 = vpack.c.bf16 %v4611_v40, %v1329_v46 }
 0x82e   :  { %4635 = vmatmul.mubr.msk.bf16.vlgmr.msra.gmra.mrb[24].mxu1 %vm634_vm1, %v1338_v41 }
 0x82f   :  { %4647 = vmatpush3.bf16.msra.mxu1 %v4955_v50 }
 0x832   :  { %v4625_v20 = vpop.f32.mrb[22].mxu0 }
 0x833   :  { %v1524_v54 = vpop.f32.mrb[23].mxu0 }
 0x834   :  { %v1533_v42 = vpack.c.bf16 %v4625_v20, %v1524_v54 }
 0x836   :  { %4629 = vmatmul.mubr.msk.bf16.vlgmr.msra.gmra.mrb[24].mxu0 %vm634_vm1, %v1533_v42 }
 0x837   :  { %4639 = vmatpush3.bf16.msra.mxu0 %v4953_v36 }
 0x838   :  { %4640 = vmatprep.subr.bf16.mxu0 %v4954_v18 }
 0x83b   :  { %4641 = vmatpush3.bf16.msra.mxu0 %v4954_v18 }
 0x901   :  { %v1615_v24 = vpop.f32.mrb[24].mxu1 }
 0x902   :  { %v4636_v43 = vpop.f32.mrb[25].mxu1 }
 0x903   :  { %v1618_v44 = vpop.f32.mrb[26].mxu1 }
 0x904   :  { %v4637_v45 = vpop.f32.mrb[27].mxu1 }
 0x909   :  { %v1571_v49 = vpop.f32.mrb[24].mxu0 }
 0x90a   :  { %v1616_v51 = vadd.f32 %v1615_v24, %v1571_v49  ;;  %v4630_v52 = vpop.f32.mrb[25].mxu0 }
 0x90b   :  { %v1574_v53 = vpop.f32.mrb[26].mxu0  ;;  %v4957_v52 = vld [vmem:[%s5969_s19 + $0x10] sm:$0xff]  }
 0x90c   :  { %v1631_v56 = vadd.f32 %v5514_v15, %v1616_v51  ;;  %v1619_v58 = vadd.f32 %v1618_v44, %v1574_v53  ;;  %v4631_v59 = vpop.f32.mrb[27].mxu0  ;;  %v4956_v51 = vld [vmem:[%s5969_s19 + $0x8] sm:$0xff]   ;;  %v4958_v53 = vld [vmem:[%s5969_s19 + $0x18] sm:$0xff]  }
 0x90d   :  { %4648 = vmatprep.subr.bf16.mxu1 %v4956_v51  ;;  %v4962_v59 = vld [vmem:[%s5969_s19 + $0x38] sm:$0xff]  }
 0x90e   :  { %v1632_v61 = vadd.f32 %v5514_v15, %v1619_v58  ;;  %v1635_v62 = vadd.f32 %v1631_v56, %v5348_v12  ;;  %4649 = vmatpush3.bf16.msra.mxu1 %v4956_v51  ;;  %v4960_v56 = vld [vmem:[%s5969_s19 + $0x28] sm:$0xff]   ;;  %v4961_v58 = vld [vmem:[%s5969_s19 + $0x30] sm:$0xff]  }
 0x90f   :  { %4650 = vmatprep.subr.bf16.mxu1 %v4957_v52 }
 0x910   :  { %v1645_v63 = vsel %vm113_vm0, %v1635_v62, 0.0  ;;  %v1636_v0 = vadd.f32 %v1632_v61, %v5350_v13 }
 0x911   :  { %1646 = vadd.xlane.f32.xlu0 %v1645_v63 }
 0x912   :  { %v1648_v2 = vsel %vm113_vm0, %v1636_v0, 0.0  ;;  %4651 = vmatpush3.bf16.msra.mxu1 %v4957_v52 }
 0x913   :  { %1649 = vadd.xlane.f32.xlu1 %v1648_v2  ;;  %4652 = vmatprep.subr.bf16.mxu1 %v4958_v53 }
 0x915   :  { %1664 = vadd.xlane.f32.xlu0 %v1663_v4 }
 0x916   :  { %4653 = vmatpush3.bf16.msra.mxu1 %v4958_v53 }
 0x917   :  { %1667 = vadd.xlane.f32.xlu1 %v1666_v5 }
 0x99e   :  { %v1647_v8 = vpop.xlane.xlu0 %1646 }
 0x99f   :  { %v1653_v9 = vmul.f32 0.03125, %v1647_v8 }
 0x9a0   :  { %v1650_v10 = vpop.xlane.xlu1 %1649 }
 0x9a1   :  { %v1657_v12 = vsub.f32 %v1635_v62, %v1653_v9  ;;  %v1654_v11 = vmul.f32 0.03125, %v1650_v10 }
 0x9a2   :  { %v1665_v14 = vpop.xlane.xlu0 %1664 }
 0x9a3   :  { %v1658_v15 = vsub.f32 %v1636_v0, %v1654_v11  ;;  %v1675_v13 = vmul.f32 0.03125, %v1665_v14  ;;  %v1661_v16 = vmul.f32 %v1657_v12, %v1657_v12 }
 0x9a4   :  { %v1668_v17 = vpop.xlane.xlu1 %1667 }
 0x9a5   :  { %v1679_v19 = vadd.f32 1e-12, %v1675_v13  ;;  %v1676_v21 = vmul.f32 0.03125, %v1668_v17  ;;  %v1669_v26 = vsel %vm113_vm0, %v1661_v16, 0.0  ;;  %v1662_v28 = vmul.f32 %v1658_v15, %v1658_v15 }
 0x9a6   :  { %1670 = vadd.xlane.f32.xlu0 %v1669_v26 }
 0x9a7   :  { %5031 = vrsqrt.f32 %v1679_v19  ;;  %v1680_v22 = vadd.f32 1e-12, %v1676_v21  ;;  %v1672_v29 = vsel %vm113_vm0, %v1662_v28, 0.0 }
 0x9a8   :  { %1673 = vadd.xlane.f32.xlu1 %v1672_v29 }
 0x9a9   :  { %5033 = vrsqrt.f32 %v1680_v22 }
 0x9b1   :  { %v5032_v30 = vpop.eup %5031 }
 0x9b2   :  { %v1687_v33 = vmul.f32 %v5032_v30, %v1655_v55  ;;  %v4959_v55 = vld [vmem:[%s5969_s19 + $0x20] sm:$0xff]  }
 0x9b3   :  { %v5034_v34 = vpop.eup %5033  ;;  %4654 = vmatprep.subr.bf16.mxu1 %v4959_v55 }
 0x9b4   :  { %v1688_v25 = vmul.f32 %v5034_v34, %v1656_v60  ;;  %v1697_v38 = vmul.f32 %v4176_v31, %v1687_v33  ;;  %4655 = vmatpush3.bf16.msra.mxu1 %v4959_v55  ;;  %v4178_v60 = vld [vmem:[%s5968_s18] ss:$0 sm:$0xff] }
 0x9b5   :  { %4656 = vmatprep.subr.bf16.mxu1 %v4960_v56 }
 0x9b6   :  { %v1698_v32 = vmul.f32 %v4176_v31, %v1688_v25  ;;  %v5551_v57 = vadd.f32 %v4177_v7, %v1697_v38 }
 0x9b8   :  { %v5553_v35 = vadd.f32 %v4177_v7, %v1698_v32  ;;  %4657 = vmatpush3.bf16.msra.mxu1 %v4960_v56 }
 0x9b9   :  { %4658 = vmatprep.subr.bf16.mxu1 %v4961_v58 }
 0x9ba   :  { %v1711_v6 = vpack.c.bf16 %v5553_v35, %v5551_v57 }
 0x9bc   :  { %4642 = vmatprep.mubr.msk.bf16.mxu0 %vm113_vm0, %v1711_v6  ;;  %4659 = vmatpush3.bf16.msra.mxu1 %v4961_v58 }
 0x9bd   :  { %4660 = vmatprep.subr.bf16.mxu1 %v4962_v59 }
 0x9c0   :  { %4661 = vmatpush3.bf16.msra.mxu1 %v4962_v59 }
 0xa33   :  { %v1671_v37 = vpop.xlane.xlu0 %1670 }
 0xa34   :  { %v1677_v40 = vmul.f32 0.03125, %v1671_v37 }
 0xa35   :  { %v1674_v46 = vpop.xlane.xlu1 %1673 }
 0xa36   :  { %v1681_v41 = vadd.f32 1e-12, %v1677_v40  ;;  %v1678_v20 = vmul.f32 0.03125, %v1674_v46 }
 0xa38   :  { %5035 = vrsqrt.f32 %v1681_v41  ;;  %v1682_v54 = vadd.f32 1e-12, %v1678_v20 }
 0xa3a   :  { %5037 = vrsqrt.f32 %v1682_v54 }
 0xa42   :  { %v5036_v42 = vpop.eup %5035 }
 0xa43   :  { %v1689_v24 = vmul.f32 %v5036_v42, %v1657_v12 }
 0xa44   :  { %v5038_v43 = vpop.eup %5037 }
 0xa45   :  { %v1699_v44 = vmul.f32 %v4176_v31, %v1689_v24  ;;  %v1690_v45 = vmul.f32 %v5038_v43, %v1658_v15 }
 0xa47   :  { %v1700_v47 = vmul.f32 %v4176_v31, %v1690_v45  ;;  %v5564_v48 = vadd.f32 %v4177_v7, %v1699_v44  ;;  %v4183_v45 = vld [vmem:[%s5970_s20] ss:$0 sm:$0xff] }
 0xa49   :  { %v5566_v27 = vadd.f32 %v4177_v7, %v1700_v47 }
 0xa4b   :  { %v1712_v49 = vpack.c.bf16 %v5566_v27, %v5564_v48 }
 0xa4d   :  { %4643 = vmatmul.mubr.msk.bf16.vlgmr.msra.gmra.mrb[28].mxu0 %vm113_vm0, %v1712_v49 }
 0xb20   :  { %v4644_v61 = vpop.f32.mrb[28].mxu0 }
 0xb21   :  { %v1785_v62 = vadd.f32 %v4644_v61, %v4178_v60  ;;  %v1776_v63 = vpop.f32.mrb[29].mxu0 }
 0xb22   :  { %v1777_v0 = vadd.f32 %v4178_v60, %v1776_v63  ;;  %v4645_v1 = vpop.f32.mrb[30].mxu0 }
 0xb23   :  { %v1793_v2 = vmul.f32 %v1785_v62, %v1785_v62  ;;  %v1788_v3 = vadd.f32 %v4645_v1, %v4178_v60  ;;  %v1779_v4 = vpop.f32.mrb[31].mxu0 }
 0xb24   :  { %v1791_v5 = vmul.f32 %v1777_v0, %v1777_v0  ;;  %v1780_v8 = vadd.f32 %v4178_v60, %v1779_v4 }
 0xb25   :  { %v1797_v9 = vmul.f32 %v1793_v2, %v1785_v62  ;;  %v1794_v10 = vmul.f32 %v1788_v3, %v1788_v3 }
 0xb26   :  { %v1795_v12 = vmul.f32 %v1791_v5, %v1777_v0  ;;  %v1792_v11 = vmul.f32 %v1780_v8, %v1780_v8 }
 0xb27   :  { %v1801_v14 = vmul.f32 0.044715, %v1797_v9  ;;  %v1798_v15 = vmul.f32 %v1794_v10, %v1788_v3 }
 0xb28   :  { %v1799_v13 = vmul.f32 0.044715, %v1795_v12  ;;  %v1796_v16 = vmul.f32 %v1792_v11, %v1780_v8 }
 0xb29   :  { %v1805_v17 = vadd.f32 %v1801_v14, %v1785_v62  ;;  %v1802_v19 = vmul.f32 0.044715, %v1798_v15 }
 0xb2a   :  { %v1803_v21 = vadd.f32 %v1799_v13, %v1777_v0  ;;  %v1800_v26 = vmul.f32 0.044715, %v1796_v16 }
 0xb2b   :  { %v1809_v28 = vmul.f32 0.7978846, %v1805_v17  ;;  %v1806_v22 = vadd.f32 %v1802_v19, %v1788_v3 }
 0xb2c   :  { %v1807_v29 = vmul.f32 0.7978846, %v1803_v21  ;;  %v1804_v30 = vadd.f32 %v1800_v26, %v1780_v8  ;;  %v4963_v26 = vld [vmem:[%s6003_s28 + $0x20] sm:$0xff]  }
 0xb2d   :  { %5039 = vtanh.f32 %v1809_v28  ;;  %v1810_v31 = vmul.f32 0.7978846, %v1806_v22  ;;  %v4964_v28 = vld [vmem:[%s6004_s29 + $0x30] sm:$0xff]   ;;  %4666 = vmatprep.subr.bf16.mxu0 %v4963_v26  ;;  %v4965_v22 = vld [vmem:[%s6003_s28 + $0x28] sm:$0xff]  }
 0xb2e   :  { %5041 = vtanh.f32 %v1807_v29  ;;  %v1808_v33 = vmul.f32 0.7978846, %v1804_v30  ;;  %4698 = vmatprep.subr.bf16.mxu1 %v4964_v28  ;;  %4667 = vmatpush3.bf16.msra.mxu0 %v4963_v26  ;;  %v4966_v29 = vld [vmem:[%s6004_s29 + $0x38] sm:$0xff]   ;;  %v4967_v30 = vld [vmem:[%s6004_s29 + $0x20] sm:$0xff]  }
 0xb2f   :  { %5043 = vtanh.f32 %v1810_v31  ;;  %4668 = vmatprep.subr.bf16.mxu0 %v4965_v22 }
 0xb30   :  { %5045 = vtanh.f32 %v1808_v33 }
 0xb32   :  { %4669 = vmatpush3.bf16.msra.mxu0 %v4965_v22  ;;  %v4209_v22 = vld [vmem:[%s6009_s7 + $0x2] ss:$0 sm:$0xff] }
 0xb33   :  { %4674 = vmatprep.subr.bf16.mxu0 %v4967_v30 }
 0xb37   :  { %v5040_v34 = vpop.eup %5039 }
 0xb38   :  { %v5042_v25 = vpop.eup %5041  ;;  %v1817_v38 = vadd.f32 1.0, %v5040_v34 }
 0xb39   :  { %v5044_v7 = vpop.eup %5043  ;;  %v1815_v32 = vadd.f32 1.0, %v5042_v25 }
 0xb3a   :  { %v5046_v6 = vpop.eup %5045  ;;  %v1821_v36 = vmul.f32 0.5, %v1817_v38  ;;  %v1818_v18 = vadd.f32 1.0, %v5044_v7 }
 0xb3b   :  { %v1816_v37 = vadd.f32 1.0, %v5046_v6  ;;  %v1819_v40 = vmul.f32 0.5, %v1815_v32 }
 0xb3c   :  { %v1822_v46 = vmul.f32 0.5, %v1818_v18  ;;  %v1825_v20 = vmul.f32 %v1821_v36, %v1785_v62 }
 0xb3d   :  { %v1820_v41 = vmul.f32 0.5, %v1816_v37  ;;  %v1823_v42 = vmul.f32 %v1819_v40, %v1777_v0 }
 0xb3e   :  { %v1826_v54 = vmul.f32 %v1822_v46, %v1788_v3 }
 0xb3f   :  { %v1824_v24 = vmul.f32 %v1820_v41, %v1780_v8  ;;  %v4192_v41 = vld [vmem:[%s5971_s21] ss:$0 sm:$0xff] }
 0xb40   :  { %v1828_v43 = vpack.c.bf16 %v1826_v54, %v1825_v20 }
 0xb41   :  { %v1827_v44 = vpack.c.bf16 %v1824_v24, %v1823_v42 }
 0xb43   :  { %4662 = vmatprep.mubr.bf16.mxu1 %v1827_v44  ;;  %v4193_v44 = vld [vmem:[%s6013_s3] ss:$0 sm:$0xff] }
 0xb44   :  { %4663 = vmatmul.mubr.bf16.vlgmr.msra.gmra.mrb[28].mxu1 %v1828_v43 }
 0xb45   :  { %4699 = vmatpush3.bf16.msra.mxu1 %v4964_v28 }
 0xb46   :  { %4700 = vmatprep.subr.bf16.mxu1 %v4966_v29 }
 0xb49   :  { %4701 = vmatpush3.bf16.msra.mxu1 %v4966_v29 }
 0xc17   :  { %v4664_v47 = vpop.f32.mrb[28].mxu1 }
 0xc18   :  { %v1934_v49 = vpop.f32.mrb[29].mxu1  ;;  %v1943_v50 = vadd.f32 %v4664_v47, %v4183_v45 }
 0xc19   :  { %v1935_v51 = vadd.f32 %v4183_v45, %v1934_v49  ;;  %v4665_v52 = vpop.f32.mrb[30].mxu1 }
 0xc1a   :  { %v1937_v53 = vpop.f32.mrb[31].mxu1  ;;  %v1946_v55 = vadd.f32 %v4665_v52, %v4183_v45  ;;  %v1951_v61 = vadd.f32 %v1943_v50, %v5564_v48 }
 0xc1b   :  { %v1938_v56 = vadd.f32 %v4183_v45, %v1937_v53  ;;  %v1949_v58 = vadd.f32 %v1935_v51, %v5551_v57 }
 0xc1c   :  { %v1952_v63 = vadd.f32 %v1946_v55, %v5566_v27  ;;  %v1961_v0 = vsel %vm113_vm0, %v1951_v61, 0.0 }
 0xc1d   :  { %v1955_v59 = vsel %vm113_vm0, %v1949_v58, 0.0  ;;  %v1950_v60 = vadd.f32 %v1938_v56, %v5553_v35 }
 0xc1e   :  { %1956 = vadd.xlane.f32.xlu0 %v1955_v59  ;;  %v1964_v1 = vsel %vm113_vm0, %v1952_v63, 0.0 }
 0xc1f   :  { %v1958_v62 = vsel %vm113_vm0, %v1950_v60, 0.0 }
 0xc20   :  { %1959 = vadd.xlane.f32.xlu1 %v1958_v62  ;;  %v4969_v62 = vld [vmem:[%s6005_s4 + $0x20] sm:$0xff]  }
 0xc22   :  { %1962 = vadd.xlane.f32.xlu0 %v1961_v0  ;;  %v4971_v0 = vld [vmem:[%s6003_s28 + $0x30] sm:$0xff]  }
 0xc24   :  { %1965 = vadd.xlane.f32.xlu1 %v1964_v1  ;;  %v4972_v1 = vld [vmem:[%s6003_s28 + $0x38] sm:$0xff]  }
 0xcab   :  { %v1957_v2 = vpop.xlane.xlu0 %1956 }
 0xcac   :  { %v1967_v57 = vmul.f32 0.03125, %v1957_v2  ;;  %v4973_v2 = vld [vmem:[%s6005_s4 + $0x30] sm:$0xff]  }
 0xcad   :  { %v1960_v3 = vpop.xlane.xlu1 %1959 }
 0xcae   :  { %v1971_v4 = vsub.f32 %v1949_v58, %v1967_v57  ;;  %v1968_v5 = vmul.f32 0.03125, %v1960_v3  ;;  %v4974_v57 = vld [vmem:[%s6005_s4 + $0x38] sm:$0xff]   ;;  %v4199_v3 = vld [vmem:[%s6008_s11 + $0x2] ss:$0 sm:$0xff] }
 0xcaf   :  { %v1963_v35 = vpop.xlane.xlu0 %1962 }
 0xcb0   :  { %v1972_v8 = vsub.f32 %v1950_v60, %v1968_v5  ;;  %v1969_v48 = vmul.f32 0.03125, %v1963_v35  ;;  %v1975_v9 = vmul.f32 %v1971_v4, %v1971_v4 }
 0xcb1   :  { %v1966_v10 = vpop.xlane.xlu1 %1965 }
 0xcb2   :  { %v1973_v12 = vsub.f32 %v1951_v61, %v1969_v48  ;;  %v1970_v11 = vmul.f32 0.03125, %v1966_v10  ;;  %v1979_v27 = vsel %vm113_vm0, %v1975_v9, 0.0  ;;  %v1976_v14 = vmul.f32 %v1972_v8, %v1972_v8  ;;  %v4968_v61 = vld [vmem:[%s6004_s29 + $0x28] sm:$0xff]  }
 0xcb3   :  { %1980 = vadd.xlane.f32.xlu0 %v1979_v27 }
 0xcb4   :  { %v1974_v15 = vsub.f32 %v1952_v63, %v1970_v11  ;;  %v1982_v13 = vsel %vm113_vm0, %v1976_v14, 0.0  ;;  %v1977_v16 = vmul.f32 %v1973_v12, %v1973_v12  ;;  %v4970_v63 = vld [vmem:[%s6005_s4 + $0x28] sm:$0xff]  }
 0xcb5   :  { %1983 = vadd.xlane.f32.xlu1 %v1982_v13 }
 0xcb6   :  { %v1985_v17 = vsel %vm113_vm0, %v1977_v16, 0.0  ;;  %v1978_v19 = vmul.f32 %v1974_v15, %v1974_v15 }
 0xcb7   :  { %1986 = vadd.xlane.f32.xlu0 %v1985_v17 }
 0xcb8   :  { %v1988_v21 = vsel %vm113_vm0, %v1978_v19, 0.0 }
 0xcb9   :  { %1989 = vadd.xlane.f32.xlu1 %v1988_v21 }
 0xd40   :  { %v1981_v31 = vpop.xlane.xlu0 %1980 }
 0xd41   :  { %v1991_v33 = vmul.f32 0.03125, %v1981_v31 }
 0xd42   :  { %v1984_v34 = vpop.xlane.xlu1 %1983 }
 0xd43   :  { %v1995_v25 = vadd.f32 1e-12, %v1991_v33  ;;  %v1992_v38 = vmul.f32 0.03125, %v1984_v34 }
 0xd44   :  { %v1987_v7 = vpop.xlane.xlu0 %1986 }
 0xd45   :  { %5047 = vrsqrt.f32 %v1995_v25  ;;  %v1996_v32 = vadd.f32 1e-12, %v1992_v38  ;;  %v1993_v6 = vmul.f32 0.03125, %v1987_v7 }
 0xd46   :  { %v1990_v36 = vpop.xlane.xlu1 %1989 }
 0xd47   :  { %5049 = vrsqrt.f32 %v1996_v32  ;;  %v1997_v18 = vadd.f32 1e-12, %v1993_v6  ;;  %v1994_v37 = vmul.f32 0.03125, %v1990_v36  ;;  %v4219_v6 = vld [vmem:[%s5962_s12 + $0x2] ss:$0 sm:$0xff] }
 0xd49   :  { %5051 = vrsqrt.f32 %v1997_v18  ;;  %v1998_v40 = vadd.f32 1e-12, %v1994_v37 }
 0xd4b   :  { %5053 = vrsqrt.f32 %v1998_v40 }
 0xd4f   :  { %v5048_v46 = vpop.eup %5047 }
 0xd50   :  { %v2003_v20 = vmul.f32 %v5048_v46, %v1971_v4  ;;  %v4239_v4 = vld [vmem:[%s6009_s7 + $0x3] ss:$0 sm:$0xff] }
 0xd51   :  { %v5050_v54 = vpop.eup %5049 }
 0xd52   :  { %v2013_v42 = vmul.f32 %v4192_v41, %v2003_v20  ;;  %v2004_v24 = vmul.f32 %v5050_v54, %v1972_v8 }
 0xd53   :  { %v5052_v43 = vpop.eup %5051 }
 0xd54   :  { %v2014_v45 = vmul.f32 %v4192_v41, %v2004_v24  ;;  %v2005_v47 = vmul.f32 %v5052_v43, %v1973_v12  ;;  %v5634_v50 = vadd.f32 %v4193_v44, %v2013_v42 }
 0xd55   :  { %v5054_v49 = vpop.eup %5053 }
 0xd56   :  { %v5636_v51 = vadd.f32 %v4193_v44, %v2014_v45  ;;  %v2015_v52 = vmul.f32 %v4192_v41, %v2005_v47  ;;  %v2006_v53 = vmul.f32 %v5054_v49, %v1974_v15 }
 0xd58   :  { %v2016_v55 = vmul.f32 %v4192_v41, %v2006_v53  ;;  %v2027_v56 = vpack.c.bf16 %v5636_v51, %v5634_v50  ;;  %v5640_v58 = vadd.f32 %v4193_v44, %v2015_v52 }
 0xd5a   :  { %v5642_v59 = vadd.f32 %v4193_v44, %v2016_v55  ;;  %4670 = vmatprep.mubr.msk.bf16.mxu0 %vm113_vm0, %v2027_v56  ;;  %4702 = vmatprep.mubr.msk.bf16.mxu1 %vm113_vm0, %v2027_v56  ;;  %v4229_v44 = vld [vmem:[%s6008_s11 + $0x3] ss:$0 sm:$0xff] }
 0xd5c   :  { %v2028_v60 = vpack.c.bf16 %v5642_v59, %v5640_v58 }
 0xd5e   :  { %4671 = vmatmul.mubr.msk.bf16.vlgmr.msra.gmra.mrb[32].mxu0 %vm113_vm0, %v2028_v60  ;;  %4703 = vmatmul.mubr.msk.bf16.vlgmr.msra.gmra.mrb[32].mxu1 %vm113_vm0, %v2028_v60 }
 0xd5f   :  { %4675 = vmatpush3.bf16.msra.mxu0 %v4967_v30  ;;  %4678 = vmatprep.mubr.msk.bf16.mxu0 %vm113_vm0, %v2027_v56 }
 0xd60   :  { %4676 = vmatprep.subr.bf16.mxu0 %v4968_v61 }
 0xd63   :  { %4677 = vmatpush3.bf16.msra.mxu0 %v4968_v61 }
 0xd64   :  { %4682 = vmatprep.subr.bf16.mxu0 %v4969_v62 }
 0xd66   :  { %4679 = vmatmul.mubr.msk.bf16.vlgmr.msra.gmra.mrb[36].mxu0 %vm113_vm0, %v2028_v60 }
 0xd67   :  { %4683 = vmatpush3.bf16.msra.mxu0 %v4969_v62  ;;  %4686 = vmatprep.mubr.msk.bf16.mxu0 %vm113_vm0, %v2027_v56  ;;  %v4249_v62 = vld [vmem:[%s5962_s12 + $0x3] ss:$0 sm:$0xff] }
 0xd68   :  { %4684 = vmatprep.subr.bf16.mxu0 %v4970_v63 }
 0xd6b   :  { %4685 = vmatpush3.bf16.msra.mxu0 %v4970_v63 }
 0xd6c   :  { %4690 = vmatprep.subr.bf16.mxu0 %v4971_v0 }
 0xd6e   :  { %4687 = vmatmul.mubr.msk.bf16.vlgmr.msra.gmra.mrb[40].mxu0 %vm113_vm0, %v2028_v60 }
 0xd6f   :  { %4691 = vmatpush3.bf16.msra.mxu0 %v4971_v0  ;;  %4694 = vmatprep.mubr.msk.bf16.mxu0 %vm113_vm0, %v2027_v56 }
 0xd70   :  { %4692 = vmatprep.subr.bf16.mxu0 %v4972_v1 }
 0xd73   :  { %4693 = vmatpush3.bf16.msra.mxu0 %v4972_v1 }
 0xd74   :  { %4706 = vmatprep.subr.bf16.mxu0 %v4973_v2 }
 0xd76   :  { %4695 = vmatmul.mubr.msk.bf16.vlgmr.msra.gmra.mrb[44].mxu0 %vm113_vm0, %v2028_v60 }
 0xd77   :  { %4707 = vmatpush3.bf16.msra.mxu0 %v4973_v2  ;;  %4710 = vmatprep.mubr.msk.bf16.mxu0 %vm113_vm0, %v2027_v56 }
 0xd78   :  { %4708 = vmatprep.subr.bf16.mxu0 %v4974_v57 }
 0xd7b   :  { %4709 = vmatpush3.bf16.msra.mxu0 %v4974_v57 }
 0xd7e   :  { %4711 = vmatmul.mubr.msk.bf16.vlgmr.msra.gmra.mrb[48].mxu0 %vm113_vm0, %v2028_v60  ;;  %v5722_v60 = vld [vmem:[%s5963_s13 + $0x18] sm:$0xff]  }
 0xe31   :  { %v4672_v5 = vpop.f32.mrb[32].mxu0  ;;  %v4704_v35 = vpop.f32.mrb[32].mxu1 }
 0xe32   :  { %v5685_v8 = vadd.f32 %v4672_v5, %v4199_v3  ;;  %v2399_v48 = vadd.f32 %v4704_v35, %v4239_v4  ;;  %v2094_v9 = vpop.f32.mrb[33].mxu0  ;;  %v2390_v10 = vpop.f32.mrb[33].mxu1 }
 0xe33   :  { %v2095_v12 = vadd.f32 %v4199_v3, %v2094_v9  ;;  %v4673_v11 = vpop.f32.mrb[34].mxu0  ;;  %v4705_v27 = vpop.f32.mrb[34].mxu1  ;;  %v2391_v17 = vadd.f32 %v4239_v4, %v2390_v10 }
 0xe34   :  { %v5687_v14 = vadd.f32 %v4673_v11, %v4199_v3  ;;  %v2402_v15 = vadd.f32 %v4705_v27, %v4239_v4  ;;  %v2097_v13 = vpop.f32.mrb[35].mxu0  ;;  %v2393_v16 = vpop.f32.mrb[35].mxu1  ;;  %v5113_v27 = vld [vmem:[%s6012_s9] ss:$0 sm:$0xff] }
 0xe35   :  { %v2394_v19 = vadd.f32 %v4239_v4, %v2393_v16  ;;  %4718 = vmatprep.mubr.msk.f32.mxu1 %vm634_vm1, %v2095_v12  ;;  %v2098_v24 = vadd.f32 %v4199_v3, %v2097_v13 }
 0xe36   :  { %v5690_v21 = vpack.c.bf16 %v2402_v15, %v2399_v48 }
 0xe37   :  { %v4899_v26 = vpack.c.bf16 %v2394_v19, %v2391_v17 }
 0xe39   :  { %v4680_v28 = vpop.f32.mrb[36].mxu0  ;;  %4901 = vmatprep.subr.msk.bf16.mxu0 %vm5399_vm2, %v4899_v26 }
 0xe3a   :  { %v2168_v29 = vpop.f32.mrb[37].mxu0  ;;  %4904 = vmatpush3.bf16.xpose.msk.msra.mxu0 %vm5399_vm2, %v4899_v26  ;;  %v2177_v31 = vadd.f32 %v4680_v28, %v4209_v22 }
 0xe3b   :  { %v4681_v30 = vpop.f32.mrb[38].mxu0  ;;  %4742 = vmatprep.subr.bf16.mxu0 %v5139_v23  ;;  %v2169_v25 = vadd.f32 %v4209_v22, %v2168_v29 }
 0xe3c   :  { %v2180_v33 = vadd.f32 %v4681_v30, %v4209_v22  ;;  %v2171_v34 = vpop.f32.mrb[39].mxu0 }
 0xe3d   :  { %v2172_v38 = vadd.f32 %v4209_v22, %v2171_v34 }
 0xe3e   :  { %v5700_v7 = vpack.c.bf16 %v2180_v33, %v2177_v31 }
 0xe3f   :  { %v4889_v32 = vpack.c.bf16 %v2172_v38, %v2169_v25 }
 0xe41   :  { %v4688_v36 = vpop.f32.mrb[40].mxu0  ;;  %4891 = vmatprep.subr.msk.bf16.mxu1 %vm5399_vm2, %v4889_v32 }
 0xe42   :  { %v2251_v18 = vadd.f32 %v4688_v36, %v4219_v6  ;;  %v2242_v37 = vpop.f32.mrb[41].mxu0  ;;  %4894 = vmatpush3.bf16.xpose.msk.msra.mxu1 %vm5399_vm2, %v4889_v32 }
 0xe43   :  { %v4689_v40 = vpop.f32.mrb[42].mxu0  ;;  %v2243_v20 = vadd.f32 %v4219_v6, %v2242_v37 }
 0xe44   :  { %v2254_v46 = vadd.f32 %v4689_v40, %v4219_v6  ;;  %v2245_v41 = vpop.f32.mrb[43].mxu0 }
 0xe45   :  { %v2246_v54 = vadd.f32 %v4219_v6, %v2245_v41 }
 0xe46   :  { %v5709_v42 = vpack.c.bf16 %v2254_v46, %v2251_v18 }
 0xe47   :  { %v4895_v43 = vpack.c.bf16 %v2246_v54, %v2243_v20 }
 0xe49   :  { %v4696_v45 = vpop.f32.mrb[44].mxu0  ;;  %4719 = vmatmul.mubr.msk.f32.vlgmr.msra.gmra.mrb[36].mxu1 %vm634_vm1, %v2098_v24  ;;  %4896 = vmatprep.subr.bf16.mxu1 %v4895_v43 }
 0xe4a   :  { %v5715_v47 = vadd.f32 %v4696_v45, %v4229_v44  ;;  %v2316_v49 = vpop.f32.mrb[45].mxu0  ;;  %4898 = vmatpush3.bf16.msra.mxu1 %v4895_v43 }
 0xe4b   :  { %v2317_v52 = vadd.f32 %v4229_v44, %v2316_v49  ;;  %v4697_v53 = vpop.f32.mrb[46].mxu0 }
 0xe4c   :  { %v5717_v55 = vadd.f32 %v4697_v53, %v4229_v44  ;;  %v2319_v56 = vpop.f32.mrb[47].mxu0 }
 0xe4d   :  { %v2320_v61 = vadd.f32 %v4229_v44, %v2319_v56  ;;  %4732 = vmatprep.mubr.msk.f32.mxu0 %vm634_vm1, %v2317_v52 }
 0xe4f   :  { %4733 = vmatmul.mubr.msk.f32.vlgmr.msra.gmra.mrb[52].mxu0 %vm634_vm1, %v2320_v61 }
 0xe50   :  { %4743 = vmatpush3.bf16.msra.mxu0 %v5722_v60  ;;  %4744 = vmatprep.mubr.msk.bf16.mxu0 %vm5140_vm3, %v5139_v23 }
 0xe51   :  { %4911 = vmatprep.subr.msk.bf16.mxu0 %vm5399_vm2, %v5700_v7  ;;  %v4712_v63 = vpop.f32.mrb[48].mxu0 }
 0xe52   :  { %v2473_v0 = vadd.f32 %v4712_v63, %v4249_v62  ;;  %v2464_v1 = vpop.f32.mrb[49].mxu0 }
 0xe53   :  { %v4713_v2 = vpop.f32.mrb[50].mxu0  ;;  %v2465_v4 = vadd.f32 %v4249_v62, %v2464_v1 }
 0xe54   :  { %v2476_v57 = vadd.f32 %v4713_v2, %v4249_v62  ;;  %v2467_v3 = vpop.f32.mrb[51].mxu0 }
 0xe55   :  { %v2468_v5 = vadd.f32 %v4249_v62, %v2467_v3 }
 0xe56   :  { %v5735_v35 = vpack.c.bf16 %v2476_v57, %v2473_v0 }
 0xe57   :  { %v5737_v48 = vpack.c.bf16 %v2468_v5, %v2465_v4 }
 0xe59   :  { %4906 = vmatprep.subr.bf16.mxu1 %v5737_v48 }
 0xf1c   :  { %v4720_v9 = vpop.f32.mrb[36].mxu1 }
 0xf1d   :  { %v2567_v10 = vmul.f32 0.25, %v4720_v9  ;;  %v2557_v12 = vpop.f32.mrb[37].mxu1  ;;  %v4976_v9 = vld [vmem:[%s5963_s13 + $0x10] sm:$0xff]  }
 0xf1e   :  { %v2566_v11 = vmul.f32 0.25, %v2557_v12 }
 0xf1f   :  { %v2569_v15 = vadd.f32 %v5113_v27, %v2567_v10 }
 0xf20   :  { %v2568_v13 = vadd.f32 %v5113_v27, %v2566_v11 }
 0xf21   :  { %v2573_v16 = vsel %vm634_vm1, %v2569_v15, -inf }
 0xf22   :  { %v4734_v17 = vpop.f32.mrb[52].mxu0  ;;  %2574 = vmax.xlane.f32.xlu1 %v2573_v16  ;;  %v2570_v19 = vsel %vm634_vm1, %v2568_v13, -inf }
 0xf23   :  { %v2765_v26 = vmul.f32 0.25, %v4734_v17  ;;  %v2755_v28 = vpop.f32.mrb[53].mxu0  ;;  %2571 = vmax.xlane.f32.xlu0 %v2570_v19 }
 0xf24   :  { %v2764_v22 = vmul.f32 0.25, %v2755_v28 }
 0xf25   :  { %v2767_v29 = vadd.f32 %v5113_v27, %v2765_v26 }
 0xf26   :  { %v2766_v30 = vadd.f32 %v5113_v27, %v2764_v22 }
 0xf27   :  { %v2771_v31 = vsel %vm634_vm1, %v2767_v29, -inf }
 0xf28   :  { %2772 = vmax.xlane.f32.xlu1 %v2771_v31  ;;  %v2768_v33 = vsel %vm634_vm1, %v2766_v30, -inf }
 0xf29   :  { %2769 = vmax.xlane.f32.xlu0 %v2768_v33 }
 0xfaf   :  { %v2575_v34 = vpop.xlane.xlu1 %2574 }
 0xfb0   :  { %v2577_v25 = vsub.f32 %v2569_v15, %v2575_v34  ;;  %v2572_v38 = vpop.xlane.xlu0 %2571 }
 0xfb1   :  { %v2576_v32 = vsub.f32 %v2568_v13, %v2572_v38 }
 0xfb2   :  { %v2580_v6 = vmul.f32 1.442695, %v2577_v25 }
 0xfb3   :  { %v2578_v36 = vmul.f32 1.442695, %v2576_v32 }
 0xfb4   :  { %5055 = vpow2.f32 %v2580_v6 }
 0xfb5   :  { %5057 = vpow2.f32 %v2578_v36  ;;  %v2773_v18 = vpop.xlane.xlu1 %2772 }
 0xfb6   :  { %v2775_v37 = vsub.f32 %v2767_v29, %v2773_v18  ;;  %v2770_v40 = vpop.xlane.xlu0 %2769 }
 0xfb7   :  { %v2774_v46 = vsub.f32 %v2766_v30, %v2770_v40 }
 0xfb8   :  { %v2778_v41 = vmul.f32 1.442695, %v2775_v37 }
 0xfb9   :  { %v2776_v20 = vmul.f32 1.442695, %v2774_v46 }
 0xfba   :  { %5059 = vpow2.f32 %v2778_v41 }
 0xfbb   :  { %5061 = vpow2.f32 %v2776_v20 }
 0xfbe   :  { %v5056_v54 = vpop.eup %5055 }
 0xfbf   :  { %v5058_v24 = vpop.eup %5057  ;;  %v2585_v43 = vsel %vm634_vm1, %v5056_v54, 0.0 }
 0xfc0   :  { %2586 = vadd.xlane.f32.xlu1 %v2585_v43  ;;  %v2582_v44 = vsel %vm634_vm1, %v5058_v24, 0.0 }
 0xfc1   :  { %2583 = vadd.xlane.f32.xlu0 %v2582_v44 }
 0xfc4   :  { %v5060_v45 = vpop.eup %5059 }
 0xfc5   :  { %v5062_v49 = vpop.eup %5061  ;;  %v2783_v52 = vsel %vm634_vm1, %v5060_v45, 0.0 }
 0xfc6   :  { %2784 = vadd.xlane.f32.xlu1 %v2783_v52  ;;  %v2780_v53 = vsel %vm634_vm1, %v5062_v49, 0.0 }
 0xfc7   :  { %2781 = vadd.xlane.f32.xlu0 %v2780_v53 }
0x104d   :  { %v2587_v56 = vpop.xlane.xlu1 %2586 }
0x104e   :  { %5063 = vrcp.f32 %v2587_v56  ;;  %v2584_v61 = vpop.xlane.xlu0 %2583 }
0x104f   :  { %5065 = vrcp.f32 %v2584_v61 }
0x1053   :  { %v2785_v62 = vpop.xlane.xlu1 %2784 }
0x1054   :  { %5067 = vrcp.f32 %v2785_v62  ;;  %v2782_v63 = vpop.xlane.xlu0 %2781 }
0x1055   :  { %5069 = vrcp.f32 %v2782_v63 }
0x1058   :  { %v5064_v0 = vpop.eup %5063 }
0x1059   :  { %v5066_v1 = vpop.eup %5065  ;;  %v2591_v57 = vmul.f32 %v5064_v0, %v5056_v54 }
0x105a   :  { %v2590_v2 = vmul.f32 %v5066_v1, %v5058_v24  ;;  %v5799_v1 = vld [vmem:[%s5964_s14 + $0x1] ss:$0 sm:$0xff] }
0x105c   :  { %4725 = vmatprep.mubr.msk.f32.mxu1 %vm634_vm1, %v2590_v2 }
0x105d   :  { %4726 = vmatmul.mubr.msk.f32.vlgmr.msra.gmra.mrb[38].mxu1 %vm634_vm1, %v2591_v57 }
0x105e   :  { %v5068_v3 = vpop.eup %5067  ;;  %4908 = vmatpush3.bf16.msra.mxu1 %v5737_v48 }
0x105f   :  { %v5070_v4 = vpop.eup %5069  ;;  %4748 = vmatprep.subr.bf16.mxu1 %v5139_v23  ;;  %v2789_v10 = vmul.f32 %v5068_v3, %v5060_v45 }
0x1060   :  { %v2788_v5 = vmul.f32 %v5070_v4, %v5062_v49 }
0x1062   :  { %4739 = vmatprep.mubr.msk.f32.mxu1 %vm634_vm1, %v2788_v5 }
0x1063   :  { %4740 = vmatmul.mubr.msk.f32.vlgmr.msra.gmra.mrb[40].mxu1 %vm634_vm1, %v2789_v10 }
0x1064   :  { %4749 = vmatpush3.bf16.msra.mxu1 %v4976_v9  ;;  %4750 = vmatprep.mubr.msk.bf16.mxu1 %vm5140_vm3, %v5139_v23 }
0x1065   :  { %4916 = vmatprep.subr.bf16.mxu1 %v5709_v42 }
0x1130   :  { %v4727_v48 = vpop.f32.mrb[38].mxu1 }
0x1131   :  { %v2664_v12 = vpop.f32.mrb[39].mxu1 }
0x1132   :  { %v2673_v11 = vpack.c.bf16 %v4727_v48, %v2664_v12 }
0x1134   :  { %4751 = vmatmul.mubr.msk.bf16.vlgmr.msra.gmra.mrb[44].mxu1 %vm634_vm1, %v2673_v11 }
0x1135   :  { %4918 = vmatpush3.bf16.msra.mxu1 %v5709_v42 }
0x1136   :  { %4926 = vmatprep.subr.bf16.mxu1 %v5735_v35  ;;  %v4741_v27 = vpop.f32.mrb[40].mxu1 }
0x1137   :  { %v2862_v15 = vpop.f32.mrb[41].mxu1 }
0x1138   :  { %v2871_v13 = vpack.c.bf16 %v4741_v27, %v2862_v15 }
0x113a   :  { %4745 = vmatmul.mubr.msk.bf16.vlgmr.msra.gmra.mrb[56].mxu0 %vm634_vm1, %v2871_v13 }
0x113b   :  { %4914 = vmatpush3.bf16.xpose.msk.msra.mxu0 %vm5399_vm2, %v5700_v7  ;;  %4758 = vmatprep.mubr.msk.f32.mxu0 %vm634_vm1, %v5685_v8 }
0x113c   :  { %4921 = vmatprep.subr.msk.bf16.mxu0 %vm5399_vm2, %v5690_v21 }
0x1142   :  { %4759 = vmatmul.mubr.msk.f32.vlgmr.msra.gmra.mrb[54].mxu0 %vm634_vm1, %v5687_v14 }
0x1143   :  { %4924 = vmatpush3.bf16.xpose.msk.msra.mxu0 %vm5399_vm2, %v5690_v21  ;;  %4772 = vmatprep.mubr.msk.f32.mxu0 %vm634_vm1, %v5715_v47 }
0x1144   :  { %4788 = vmatprep.subr.bf16.mxu0 %v5139_v23 }
0x114a   :  { %4773 = vmatmul.mubr.msk.f32.vlgmr.msra.gmra.mrb[60].mxu0 %vm634_vm1, %v5717_v55  ;;  %v5114_v55 = vld [vmem:[%s6012_s9 + $0x1] ss:$0 sm:$0xff] }
0x114b   :  { %4789 = vmatpush3.bf16.msra.mxu0 %v4976_v9  ;;  %4790 = vmatprep.mubr.msk.bf16.mxu0 %vm5140_vm3, %v5139_v23 }
0x1207   :  { %v2968_v8 = vpop.f32.mrb[44].mxu1 }
0x1208   :  { %v4752_v7 = vpop.f32.mrb[45].mxu1 }
0x1209   :  { %v2971_v42 = vpop.f32.mrb[46].mxu1 }
0x120a   :  { %v4753_v14 = vpop.f32.mrb[47].mxu1 }
0x120d   :  { %v2918_v16 = vpop.f32.mrb[56].mxu0 }
0x120e   :  { %v2969_v17 = vadd.f32 %v2968_v8, %v2918_v16  ;;  %v4746_v39 = vpop.f32.mrb[57].mxu0 }
0x120f   :  { %v2921_v21 = vpop.f32.mrb[58].mxu0 }
0x1210   :  { %v2972_v19 = vadd.f32 %v2971_v42, %v2921_v21  ;;  %v4747_v26 = vpop.f32.mrb[59].mxu0  ;;  %v3461_v57 = vadd.f32 %v5799_v1, %v2969_v17 }
0x1212   :  { %v3462_v2 = vadd.f32 %v5799_v1, %v2972_v19  ;;  %v3465_v48 = vadd.f32 %v3461_v57, %v5634_v50 }
0x1214   :  { %v3466_v9 = vadd.f32 %v3462_v2, %v5636_v51  ;;  %v3473_v11 = vsel %vm113_vm0, %v3465_v48, 0.0 }
0x1215   :  { %v4760_v47 = vpop.f32.mrb[54].mxu0 }
0x1216   :  { %v3063_v28 = vmul.f32 0.25, %v4760_v47  ;;  %v3053_v22 = vpop.f32.mrb[55].mxu0  ;;  %v3476_v12 = vsel %vm113_vm0, %v3466_v9, 0.0 }
0x1217   :  { %v3062_v29 = vmul.f32 0.25, %v3053_v22 }
0x1218   :  { %v3065_v30 = vadd.f32 %v5114_v55, %v3063_v28 }
0x1219   :  { %v3064_v31 = vadd.f32 %v5114_v55, %v3062_v29 }
0x121a   :  { %v3069_v33 = vsel %vm634_vm1, %v3065_v30, -inf }
0x121b   :  { %3070 = vmax.xlane.f32.xlu1 %v3069_v33  ;;  %v3066_v34 = vsel %vm634_vm1, %v3064_v31, -inf }
0x121c   :  { %3067 = vmax.xlane.f32.xlu0 %v3066_v34 }
0x121d   :  { %v4774_v25 = vpop.f32.mrb[60].mxu0 }
0x121e   :  { %v3258_v38 = vmul.f32 0.25, %v4774_v25  ;;  %v3248_v32 = vpop.f32.mrb[61].mxu0 }
0x121f   :  { %v3257_v6 = vmul.f32 0.25, %v3248_v32 }
0x1220   :  { %v3260_v36 = vadd.f32 %v5114_v55, %v3258_v38 }
0x1221   :  { %v3259_v18 = vadd.f32 %v5114_v55, %v3257_v6 }
0x1222   :  { %v3264_v37 = vsel %vm634_vm1, %v3260_v36, -inf }
0x1223   :  { %3265 = vmax.xlane.f32.xlu1 %v3264_v37  ;;  %v3261_v40 = vsel %vm634_vm1, %v3259_v18, -inf }
0x1224   :  { %3262 = vmax.xlane.f32.xlu0 %v3261_v40 }
0x12a8   :  { %v3071_v46 = vpop.xlane.xlu1 %3070 }
0x12a9   :  { %v3073_v41 = vsub.f32 %v3065_v30, %v3071_v46  ;;  %v3068_v20 = vpop.xlane.xlu0 %3067 }
0x12aa   :  { %v3072_v54 = vsub.f32 %v3064_v31, %v3068_v20 }
0x12ab   :  { %v3076_v24 = vmul.f32 1.442695, %v3073_v41 }
0x12ac   :  { %v3074_v43 = vmul.f32 1.442695, %v3072_v54 }
0x12ad   :  { %5071 = vpow2.f32 %v3076_v24 }
0x12ae   :  { %5073 = vpow2.f32 %v3074_v43 }
0x12b0   :  { %v3266_v44 = vpop.xlane.xlu1 %3265 }
0x12b1   :  { %v3268_v45 = vsub.f32 %v3260_v36, %v3266_v44  ;;  %v3263_v49 = vpop.xlane.xlu0 %3262 }
0x12b2   :  { %v3267_v52 = vsub.f32 %v3259_v18, %v3263_v49 }
0x12b3   :  { %v3271_v53 = vmul.f32 1.442695, %v3268_v45 }
0x12b4   :  { %v3269_v56 = vmul.f32 1.442695, %v3267_v52 }
0x12b5   :  { %5075 = vpow2.f32 %v3271_v53 }
0x12b6   :  { %5077 = vpow2.f32 %v3269_v56 }
0x12b7   :  { %v5072_v61 = vpop.eup %5071 }
0x12b8   :  { %v5074_v62 = vpop.eup %5073  ;;  %v3081_v63 = vsel %vm634_vm1, %v5072_v61, 0.0 }
0x12b9   :  { %3082 = vadd.xlane.f32.xlu1 %v3081_v63  ;;  %v3078_v0 = vsel %vm634_vm1, %v5074_v62, 0.0 }
0x12ba   :  { %3079 = vadd.xlane.f32.xlu0 %v3078_v0 }
0x12bf   :  { %v5076_v3 = vpop.eup %5075 }
0x12c0   :  { %v5078_v4 = vpop.eup %5077  ;;  %v3276_v5 = vsel %vm634_vm1, %v5076_v3, 0.0 }
0x12c1   :  { %3277 = vadd.xlane.f32.xlu1 %v3276_v5  ;;  %v3273_v10 = vsel %vm634_vm1, %v5078_v4, 0.0 }
0x12c2   :  { %3274 = vadd.xlane.f32.xlu0 %v3273_v10 }
0x12c5   :  { %3477 = vadd.xlane.f32.xlu1 %v3476_v12  ;;  %v4292_v12 = vld [vmem:[%s5965_s15 + $0x1] ss:$0 sm:$0xff] }
0x12c6   :  { %3474 = vadd.xlane.f32.xlu0 %v3473_v11 }
0x1346   :  { %v3083_v27 = vpop.xlane.xlu1 %3082 }
0x1347   :  { %5079 = vrcp.f32 %v3083_v27  ;;  %v3080_v15 = vpop.xlane.xlu0 %3079 }
0x1348   :  { %5081 = vrcp.f32 %v3080_v15 }
0x134e   :  { %v3278_v13 = vpop.xlane.xlu1 %3277 }
0x134f   :  { %5083 = vrcp.f32 %v3278_v13  ;;  %v3275_v8 = vpop.xlane.xlu0 %3274 }
0x1350   :  { %5085 = vrcp.f32 %v3275_v8  ;;  %v4293_v8 = vld [vmem:[%s5966_s16 + $0x1] ss:$0 sm:$0xff] }
0x1351   :  { %v5080_v51 = vpop.eup %5079 }
0x1352   :  { %v5082_v7 = vpop.eup %5081  ;;  %v3087_v14 = vmul.f32 %v5080_v51, %v5072_v61  ;;  %v3478_v33 = vpop.xlane.xlu1 %3477 }
0x1353   :  { %v3086_v42 = vmul.f32 %v5082_v7, %v5074_v62  ;;  %v3475_v31 = vpop.xlane.xlu0 %3474  ;;  %v3486_v25 = vmul.f32 0.03125, %v3478_v33 }
0x1355   :  { %4765 = vmatprep.mubr.msk.f32.mxu1 %vm634_vm1, %v3086_v42  ;;  %v3490_v46 = vsub.f32 %v3466_v9, %v3486_v25  ;;  %v4980_v25 = vld [vmem:[%s5969_s19 + $0x48] sm:$0xff]  }
0x1356   :  { %4766 = vmatmul.mubr.msk.f32.vlgmr.msra.gmra.mrb[42].mxu1 %vm634_vm1, %v3087_v14 }
0x1357   :  { %4928 = vmatpush3.bf16.msra.mxu1 %v5735_v35  ;;  %v3494_v45 = vmul.f32 %v3490_v46, %v3490_v46 }
0x1358   :  { %4782 = vmatprep.subr.bf16.mxu1 %v5139_v23 }
0x1359   :  { %v5084_v50 = vpop.eup %5083  ;;  %v3500_v52 = vsel %vm113_vm0, %v3494_v45, 0.0 }
0x135a   :  { %v5086_v16 = vpop.eup %5085  ;;  %v3282_v39 = vmul.f32 %v5084_v50, %v5076_v3  ;;  %v4977_v50 = vld [vmem:[%s5967_s17 + $0x10] sm:$0xff]  }
0x135b   :  { %v3281_v17 = vmul.f32 %v5086_v16, %v5078_v4  ;;  %v4978_v16 = vld [vmem:[%s5967_s17 + $0x18] sm:$0xff]   ;;  %s6014_s17 = sld [smem:[#allocation11_spill]] }
0x135d   :  { %4779 = vmatprep.mubr.msk.f32.mxu1 %vm634_vm1, %v3281_v17 }
0x135e   :  { %4780 = vmatmul.mubr.msk.f32.vlgmr.msra.gmra.mrb[48].mxu1 %vm634_vm1, %v3282_v39 }
0x135f   :  { %4783 = vmatpush3.bf16.msra.mxu1 %v5722_v60  ;;  %4784 = vmatprep.mubr.msk.bf16.mxu1 %vm5140_vm3, %v5139_v23  ;;  %v3485_v60 = vmul.f32 0.03125, %v3475_v31 }
0x1360   :  { %4794 = vmatprep.subr.bf16.mxu1 %v4977_v50 }
0x1361   :  { %v3489_v36 = vsub.f32 %v3465_v48, %v3485_v60 }
0x1363   :  { %v3493_v43 = vmul.f32 %v3489_v36, %v3489_v36 }
0x1365   :  { %v3497_v49 = vsel %vm113_vm0, %v3493_v43, 0.0 }
0x1429   :  { %v4767_v21 = vpop.f32.mrb[42].mxu1 }
0x142a   :  { %v3160_v19 = vpop.f32.mrb[43].mxu1 }
0x142b   :  { %v3169_v26 = vpack.c.bf16 %v4767_v21, %v3160_v19 }
0x142d   :  { %4791 = vmatmul.mubr.msk.bf16.vlgmr.msra.gmra.mrb[64].mxu0 %vm634_vm1, %v3169_v26 }
0x1431   :  { %v4781_v35 = vpop.f32.mrb[48].mxu1 }
0x1432   :  { %v3355_v47 = vpop.f32.mrb[49].mxu1 }
0x1433   :  { %v3364_v28 = vpack.c.bf16 %v4781_v35, %v3355_v47 }
0x1435   :  { %4785 = vmatmul.mubr.msk.bf16.vlgmr.msra.gmra.mrb[52].mxu1 %vm634_vm1, %v3364_v28 }
0x1436   :  { %4795 = vmatpush3.bf16.msra.mxu1 %v4977_v50 }
0x1437   :  { %4796 = vmatprep.subr.bf16.mxu1 %v4978_v16 }
0x143a   :  { %4797 = vmatpush3.bf16.msra.mxu1 %v4978_v16 }
0x1500   :  { %v3446_v22 = vpop.f32.mrb[64].mxu0 }
0x1501   :  { %v4792_v29 = vpop.f32.mrb[65].mxu0 }
0x1502   :  { %v3449_v55 = vpop.f32.mrb[66].mxu0 }
0x1503   :  { %v4793_v30 = vpop.f32.mrb[67].mxu0 }
0x1508   :  { %v3402_v34 = vpop.f32.mrb[52].mxu1 }
0x1509   :  { %v3447_v38 = vadd.f32 %v3446_v22, %v3402_v34  ;;  %v4786_v32 = vpop.f32.mrb[53].mxu1  ;;  %v4979_v34 = vld [vmem:[%s5969_s19 + $0x40] sm:$0xff]  }
0x150a   :  { %v3405_v6 = vpop.f32.mrb[54].mxu1  ;;  %4802 = vmatprep.subr.bf16.mxu0 %v4979_v34  ;;  %v4982_v32 = vld [vmem:[%s5969_s19 + $0x58] sm:$0xff]  }
0x150b   :  { %v3463_v18 = vadd.f32 %v5799_v1, %v3447_v38  ;;  %v3450_v37 = vadd.f32 %v3449_v55, %v3405_v6  ;;  %v4787_v40 = vpop.f32.mrb[55].mxu1  ;;  %4803 = vmatpush3.bf16.msra.mxu0 %v4979_v34  ;;  %v4981_v38 = vld [vmem:[%s5969_s19 + $0x50] sm:$0xff]   ;;  %v4983_v6 = vld [vmem:[%s5969_s19 + $0x60] sm:$0xff]  }
0x150c   :  { %4804 = vmatprep.subr.bf16.mxu0 %v4980_v25  ;;  %v4299_v40 = vld [vmem:[%s5968_s18 + $0x1] ss:$0 sm:$0xff] }
0x150d   :  { %v3464_v41 = vadd.f32 %v5799_v1, %v3450_v37  ;;  %v3467_v20 = vadd.f32 %v3463_v18, %v5640_v58  ;;  %v4985_v18 = vld [vmem:[%s5969_s19 + $0x70] sm:$0xff]   ;;  %v4986_v37 = vld [vmem:[%s5969_s19 + $0x78] sm:$0xff]  }
0x150f   :  { %v3479_v54 = vsel %vm113_vm0, %v3467_v20, 0.0  ;;  %v3468_v24 = vadd.f32 %v3464_v41, %v5642_v59  ;;  %4805 = vmatpush3.bf16.msra.mxu0 %v4980_v25 }
0x1510   :  { %3480 = vadd.xlane.f32.xlu0 %v3479_v54  ;;  %4806 = vmatprep.subr.bf16.mxu0 %v4981_v38 }
0x1511   :  { %v3482_v44 = vsel %vm113_vm0, %v3468_v24, 0.0 }
0x1512   :  { %3483 = vadd.xlane.f32.xlu1 %v3482_v44 }
0x1513   :  { %4807 = vmatpush3.bf16.msra.mxu0 %v4981_v38 }
0x1514   :  { %3498 = vadd.xlane.f32.xlu0 %v3497_v49  ;;  %4808 = vmatprep.subr.bf16.mxu0 %v4982_v32 }
0x1516   :  { %3501 = vadd.xlane.f32.xlu1 %v3500_v52 }
0x1517   :  { %4809 = vmatpush3.bf16.msra.mxu0 %v4982_v32 }
0x1518   :  { %4810 = vmatprep.subr.bf16.mxu0 %v4983_v6 }
0x151b   :  { %4811 = vmatpush3.bf16.msra.mxu0 %v4983_v6 }
0x159d   :  { %v3481_v53 = vpop.xlane.xlu0 %3480 }
0x159e   :  { %v3487_v56 = vmul.f32 0.03125, %v3481_v53 }
0x159f   :  { %v3484_v61 = vpop.xlane.xlu1 %3483 }
0x15a0   :  { %v3491_v58 = vsub.f32 %v3467_v20, %v3487_v56  ;;  %v3488_v62 = vmul.f32 0.03125, %v3484_v61 }
0x15a1   :  { %v3499_v63 = vpop.xlane.xlu0 %3498 }
0x15a2   :  { %v3492_v0 = vsub.f32 %v3468_v24, %v3488_v62  ;;  %v3509_v59 = vmul.f32 0.03125, %v3499_v63  ;;  %v3495_v1 = vmul.f32 %v3491_v58, %v3491_v58 }
0x15a3   :  { %v3502_v2 = vpop.xlane.xlu1 %3501 }
0x15a4   :  { %v3513_v57 = vadd.f32 1e-12, %v3509_v59  ;;  %v3510_v3 = vmul.f32 0.03125, %v3502_v2  ;;  %v3503_v4 = vsel %vm113_vm0, %v3495_v1, 0.0  ;;  %v3496_v5 = vmul.f32 %v3492_v0, %v3492_v0 }
0x15a5   :  { %3504 = vadd.xlane.f32.xlu0 %v3503_v4 }
0x15a6   :  { %5087 = vrsqrt.f32 %v3513_v57  ;;  %v3514_v9 = vadd.f32 1e-12, %v3510_v3  ;;  %v3506_v10 = vsel %vm113_vm0, %v3496_v5, 0.0 }
0x15a7   :  { %3507 = vadd.xlane.f32.xlu1 %v3506_v10 }
0x15a8   :  { %5089 = vrsqrt.f32 %v3514_v9 }
0x15b0   :  { %v5088_v48 = vpop.eup %5087 }
0x15b1   :  { %v3521_v11 = vmul.f32 %v5088_v48, %v3489_v36  ;;  %v4984_v36 = vld [vmem:[%s5969_s19 + $0x68] sm:$0xff]  }
0x15b2   :  { %v5090_v27 = vpop.eup %5089  ;;  %4812 = vmatprep.subr.bf16.mxu0 %v4984_v36 }
0x15b3   :  { %v3522_v15 = vmul.f32 %v5090_v27, %v3490_v46  ;;  %v3531_v13 = vmul.f32 %v4292_v12, %v3521_v11  ;;  %4813 = vmatpush3.bf16.msra.mxu0 %v4984_v36 }
0x15b4   :  { %4814 = vmatprep.subr.bf16.mxu0 %v4985_v18 }
0x15b5   :  { %v3532_v51 = vmul.f32 %v4292_v12, %v3522_v15  ;;  %v5836_v7 = vadd.f32 %v4293_v8, %v3531_v13 }
0x15b7   :  { %v5838_v42 = vadd.f32 %v4293_v8, %v3532_v51  ;;  %4815 = vmatpush3.bf16.msra.mxu0 %v4985_v18 }
0x15b8   :  { %4816 = vmatprep.subr.bf16.mxu0 %v4986_v37 }
0x15b9   :  { %v3545_v14 = vpack.c.bf16 %v5838_v42, %v5836_v7 }
0x15bb   :  { %4798 = vmatprep.mubr.msk.bf16.mxu1 %vm113_vm0, %v3545_v14  ;;  %4817 = vmatpush3.bf16.msra.mxu0 %v4986_v37 }
0x1632   :  { %v3505_v17 = vpop.xlane.xlu0 %3504 }
0x1633   :  { %v3511_v39 = vmul.f32 0.03125, %v3505_v17 }
0x1634   :  { %v3508_v21 = vpop.xlane.xlu1 %3507 }
0x1635   :  { %v3515_v19 = vadd.f32 1e-12, %v3511_v39  ;;  %v3512_v26 = vmul.f32 0.03125, %v3508_v21 }
0x1637   :  { %5091 = vrsqrt.f32 %v3515_v19  ;;  %v3516_v35 = vadd.f32 1e-12, %v3512_v26 }
0x1639   :  { %5093 = vrsqrt.f32 %v3516_v35 }
0x1641   :  { %v5092_v47 = vpop.eup %5091 }
0x1642   :  { %v3523_v28 = vmul.f32 %v5092_v47, %v3491_v58 }
0x1643   :  { %v5094_v22 = vpop.eup %5093 }
0x1644   :  { %v3533_v29 = vmul.f32 %v4292_v12, %v3523_v28  ;;  %v3524_v55 = vmul.f32 %v5094_v22, %v3492_v0 }
0x1646   :  { %v3534_v30 = vmul.f32 %v4292_v12, %v3524_v55  ;;  %v5849_v31 = vadd.f32 %v4293_v8, %v3533_v29  ;;  %v4321_v29 = vld [vmem:[%s5970_s20 + $0x1] ss:$0 sm:$0xff] }
0x1648   :  { %v5851_v33 = vadd.f32 %v4293_v8, %v3534_v30 }
0x164a   :  { %v3546_v60 = vpack.c.bf16 %v5851_v33, %v5849_v31 }
0x164c   :  { %4799 = vmatmul.mubr.msk.bf16.vlgmr.msra.gmra.mrb[56].mxu1 %vm113_vm0, %v3546_v60 }
0x164d   :  { %4830 = vmatprep.mubr.msk.f32.mxu1 %vm5140_vm3, %v5139_v23 }
0x171f   :  { %v4800_v46 = vpop.f32.mrb[56].mxu1 }
0x1720   :  { %v3621_v41 = vadd.f32 %v4800_v46, %v4299_v40  ;;  %v3612_v20 = vpop.f32.mrb[57].mxu1 }
0x1721   :  { %v3613_v54 = vadd.f32 %v4299_v40, %v3612_v20  ;;  %v4801_v24 = vpop.f32.mrb[58].mxu1 }
0x1722   :  { %v3629_v43 = vmul.f32 %v3621_v41, %v3621_v41  ;;  %v3624_v44 = vadd.f32 %v4801_v24, %v4299_v40  ;;  %v3615_v45 = vpop.f32.mrb[59].mxu1 }
0x1723   :  { %v3627_v49 = vmul.f32 %v3613_v54, %v3613_v54  ;;  %v3616_v52 = vadd.f32 %v4299_v40, %v3615_v45 }
0x1724   :  { %v3633_v53 = vmul.f32 %v3629_v43, %v3621_v41  ;;  %v3630_v56 = vmul.f32 %v3624_v44, %v3624_v44 }
0x1725   :  { %v3631_v61 = vmul.f32 %v3627_v49, %v3613_v54  ;;  %v3628_v58 = vmul.f32 %v3616_v52, %v3616_v52 }
0x1726   :  { %v3637_v62 = vmul.f32 0.044715, %v3633_v53  ;;  %v3634_v63 = vmul.f32 %v3630_v56, %v3624_v44 }
0x1727   :  { %v3635_v0 = vmul.f32 0.044715, %v3631_v61  ;;  %v3632_v59 = vmul.f32 %v3628_v58, %v3616_v52 }
0x1728   :  { %v3641_v1 = vadd.f32 %v3637_v62, %v3621_v41  ;;  %v3638_v2 = vmul.f32 0.044715, %v3634_v63 }
0x1729   :  { %v3639_v57 = vadd.f32 %v3635_v0, %v3613_v54  ;;  %v3636_v3 = vmul.f32 0.044715, %v3632_v59 }
0x172a   :  { %v3645_v4 = vmul.f32 0.7978846, %v3641_v1  ;;  %v3642_v5 = vadd.f32 %v3638_v2, %v3624_v44 }
0x172b   :  { %v3643_v9 = vmul.f32 0.7978846, %v3639_v57  ;;  %v3640_v10 = vadd.f32 %v3636_v3, %v3616_v52  ;;  %v5141_v57 = vmov 0.0|0.0  }
0x172c   :  { %5095 = vtanh.f32 %v3645_v4  ;;  %v3646_v48 = vmul.f32 0.7978846, %v3642_v5  ;;  %4929 = vmatprep.subr.bf16.mxu1 %v5141_v57 }
0x172d   :  { %5097 = vtanh.f32 %v3643_v9  ;;  %v3644_v12 = vmul.f32 0.7978846, %v3640_v10 }
0x172e   :  { %5099 = vtanh.f32 %v3646_v48 }
0x172f   :  { %5101 = vtanh.f32 %v3644_v12 }
0x1736   :  { %v5096_v11 = vpop.eup %5095 }
0x1737   :  { %v5098_v27 = vpop.eup %5097  ;;  %v3653_v15 = vadd.f32 1.0, %v5096_v11 }
0x1738   :  { %v5100_v13 = vpop.eup %5099  ;;  %v3651_v8 = vadd.f32 1.0, %v5098_v27 }
0x1739   :  { %v5102_v51 = vpop.eup %5101  ;;  %v3657_v14 = vmul.f32 0.5, %v3653_v15  ;;  %v3654_v50 = vadd.f32 1.0, %v5100_v13 }
0x173a   :  { %v3652_v16 = vadd.f32 1.0, %v5102_v51  ;;  %v3655_v17 = vmul.f32 0.5, %v3651_v8 }
0x173b   :  { %v3658_v39 = vmul.f32 0.5, %v3654_v50  ;;  %v3661_v19 = vmul.f32 %v3657_v14, %v3621_v41  ;;  %v4332_v14 = vld [vmem:[%s5971_s21 + $0x1] ss:$0 sm:$0xff] }
0x173c   :  { %v3656_v21 = vmul.f32 0.5, %v3652_v16  ;;  %v3659_v35 = vmul.f32 %v3655_v17, %v3613_v54 }
0x173d   :  { %v3662_v26 = vmul.f32 %v3658_v39, %v3624_v44 }
0x173e   :  { %v3660_v47 = vmul.f32 %v3656_v21, %v3616_v52 }
0x173f   :  { %v3664_v28 = vpack.c.bf16 %v3662_v26, %v3661_v19  ;;  %v4333_v19 = vld [vmem:[%s6013_s3 + $0x1] ss:$0 sm:$0xff] }
0x1740   :  { %v3663_v22 = vpack.c.bf16 %v3660_v47, %v3659_v35 }
0x1742   :  { %4818 = vmatprep.mubr.bf16.mxu0 %v3663_v22 }
0x1743   :  { %4819 = vmatmul.mubr.bf16.vlgmr.msra.gmra.mrb[68].mxu0 %v3664_v28 }
0x1816   :  { %v4820_v55 = vpop.f32.mrb[68].mxu0 }
0x1817   :  { %v3772_v30 = vpop.f32.mrb[69].mxu0  ;;  %v3781_v60 = vadd.f32 %v4820_v55, %v4321_v29 }
0x1818   :  { %v3773_v34 = vadd.f32 %v4321_v29, %v3772_v30  ;;  %v4821_v25 = vpop.f32.mrb[70].mxu0 }
0x1819   :  { %v3775_v38 = vpop.f32.mrb[71].mxu0  ;;  %v3784_v32 = vadd.f32 %v4821_v25, %v4321_v29  ;;  %v3789_v40 = vadd.f32 %v3781_v60, %v5849_v31 }
0x181a   :  { %v3776_v6 = vadd.f32 %v4321_v29, %v3775_v38  ;;  %v3787_v36 = vadd.f32 %v3773_v34, %v5836_v7 }
0x181b   :  { %v3790_v41 = vadd.f32 %v3784_v32, %v5851_v33  ;;  %v3801_v20 = vsel %vm113_vm0, %v3789_v40, 0.0  ;;  %v3867_v32 = vld [vmem:[%s6014_s17] sm:$0x3] }
0x181c   :  { %v3795_v18 = vsel %vm113_vm0, %v3787_v36, 0.0  ;;  %v3788_v37 = vadd.f32 %v3776_v6, %v5838_v42  ;;  %v4987_v6 = vld [vmem:[%s5973_s23] sm:$0xff]  }
0x181d   :  { %3796 = vadd.xlane.f32.xlu0 %v3795_v18  ;;  %v3804_v54 = vsel %vm113_vm0, %v3790_v41, 0.0 }
0x181e   :  { %v3798_v46 = vsel %vm113_vm0, %v3788_v37, 0.0 }
0x181f   :  { %3799 = vadd.xlane.f32.xlu1 %v3798_v46  ;;  %v4989_v46 = vld [vmem:[%s5975_s25] sm:$0xff]  }
0x1821   :  { %3802 = vadd.xlane.f32.xlu0 %v3801_v20  ;;  %v4335_v20 = vld [vmem:[%s5974_s24] ss:$0 sm:$0xff] }
0x1823   :  { %3805 = vadd.xlane.f32.xlu1 %v3804_v54 }
0x18aa   :  { %v3797_v24 = vpop.xlane.xlu0 %3796 }
0x18ab   :  { %v3807_v7 = vmul.f32 0.03125, %v3797_v24 }
0x18ac   :  { %v3800_v43 = vpop.xlane.xlu1 %3799 }
0x18ad   :  { %v3811_v44 = vsub.f32 %v3787_v36, %v3807_v7  ;;  %v3808_v45 = vmul.f32 0.03125, %v3800_v43  ;;  %v4988_v36 = vld [vmem:[%s5973_s23 + $0x8] sm:$0xff]  }
0x18ae   :  { %v3803_v42 = vpop.xlane.xlu0 %3802 }
0x18af   :  { %v3812_v49 = vsub.f32 %v3788_v37, %v3808_v45  ;;  %v3809_v31 = vmul.f32 0.03125, %v3803_v42  ;;  %v3815_v52 = vmul.f32 %v3811_v44, %v3811_v44 }
0x18b0   :  { %v3806_v53 = vpop.xlane.xlu1 %3805 }
0x18b1   :  { %v3813_v56 = vsub.f32 %v3789_v40, %v3809_v31  ;;  %v3810_v61 = vmul.f32 0.03125, %v3806_v53  ;;  %v3819_v33 = vsel %vm113_vm0, %v3815_v52, 0.0  ;;  %v3816_v58 = vmul.f32 %v3812_v49, %v3812_v49 }
0x18b2   :  { %3820 = vadd.xlane.f32.xlu0 %v3819_v33 }
0x18b3   :  { %v3814_v62 = vsub.f32 %v3790_v41, %v3810_v61  ;;  %v3822_v63 = vsel %vm113_vm0, %v3816_v58, 0.0  ;;  %v3817_v0 = vmul.f32 %v3813_v56, %v3813_v56  ;;  %v4990_v41 = vld [vmem:[%s5975_s25 + $0x8] sm:$0xff]   ;;  %s5142_s25 = smov [#allocation2]  }
0x18b4   :  { %3823 = vadd.xlane.f32.xlu1 %v3822_v63  ;;  %s4084_s4 = sshll.u32 %s5142_s25, 4  ;;  %s4085_s4 = int_to_ptr.vmem [resolvable:$true] %s4084_s4 }
0x18b5   :  { %v3825_v59 = vsel %vm113_vm0, %v3817_v0, 0.0  ;;  %v3818_v1 = vmul.f32 %v3814_v62, %v3814_v62  ;;  %s5115_s24 = scalar_lea.vmem %s4085_s4, 32  ;;  %p5120_p1 = scmp.lt.s32.totalorder %s4085_s4, %s4085_s4 }
0x18b6   :  { %3826 = vadd.xlane.f32.xlu0 %v3825_v59  ;;  %p5116_p0 = scmp.ne.s32.totalorder %s4085_s4, %s5115_s24  ;;  %p5121_p2 = scmp.lt.s32.totalorder %s5115_s24, %s5115_s24 }
0x18b7   :  { %v3828_v2 = vsel %vm113_vm0, %v3818_v1, 0.0 }
0x18b8   :  { %3829 = vadd.xlane.f32.xlu1 %v3828_v2  ;;  %p5122_p3 = por %p5121_p2, %p5120_p1 }
0x18ba   :  { %p5123_p4 = pnand %p5122_p3, %p5116_p0 }
0x193f   :  { %v3821_v3 = vpop.xlane.xlu0 %3820 }
0x1940   :  { %v3831_v4 = vmul.f32 0.03125, %v3821_v3 }
0x1941   :  { %v3824_v5 = vpop.xlane.xlu1 %3823 }
0x1942   :  { %v3835_v9 = vadd.f32 1e-12, %v3831_v4  ;;  %v3832_v10 = vmul.f32 0.03125, %v3824_v5 }
0x1943   :  { %v3827_v48 = vpop.xlane.xlu0 %3826 }
0x1944   :  { %5103 = vrsqrt.f32 %v3835_v9  ;;  %v3836_v12 = vadd.f32 1e-12, %v3832_v10  ;;  %v3833_v11 = vmul.f32 0.03125, %v3827_v48 }
0x1945   :  { %v3830_v27 = vpop.xlane.xlu1 %3829 }
0x1946   :  { %5105 = vrsqrt.f32 %v3836_v12  ;;  %v3837_v15 = vadd.f32 1e-12, %v3833_v11  ;;  %v3834_v13 = vmul.f32 0.03125, %v3830_v27 }
0x1948   :  { %5107 = vrsqrt.f32 %v3837_v15  ;;  %v3838_v8 = vadd.f32 1e-12, %v3834_v13 }
0x194a   :  { %5109 = vrsqrt.f32 %v3838_v8 }
0x194e   :  { %v5104_v51 = vpop.eup %5103 }
0x194f   :  { %v3843_v50 = vmul.f32 %v5104_v51, %v3811_v44 }
0x1950   :  { %v5106_v16 = vpop.eup %5105 }
0x1951   :  { %v3844_v17 = vmul.f32 %v5106_v16, %v3812_v49  ;;  %v3853_v39 = vmul.f32 %v4332_v14, %v3843_v50 }
0x1952   :  { %v5108_v21 = vpop.eup %5107 }
0x1953   :  { %v3845_v26 = vmul.f32 %v5108_v21, %v3813_v56  ;;  %v3854_v35 = vmul.f32 %v4332_v14, %v3844_v17  ;;  %v3863_v22 = vadd.f32 %v4333_v19, %v3853_v39 }
0x1954   :  { %v5110_v47 = vpop.eup %5109 }
0x1955   :  { %v3846_v28 = vmul.f32 %v5110_v47, %v3814_v62  ;;  %v3864_v29 = vadd.f32 %v4333_v19, %v3854_v35  ;;  %v3855_v55 = vmul.f32 %v4332_v14, %v3845_v26 }
0x1957   :  { %v4930_v30 = vpack.c.bf16 %v3864_v29, %v3863_v22  ;;  %v3856_v60 = vmul.f32 %v4332_v14, %v3846_v28  ;;  %v3865_v34 = vadd.f32 %v4333_v19, %v3855_v55 }
0x1959   :  { %4931 = vmatpush3.bf16.msra.mxu1 %v4930_v30  ;;  %v3866_v25 = vadd.f32 %v4333_v19, %v3856_v60 }
0x195a   :  { %4932 = vmatprep.subr.bf16.mxu1 %v5141_v57 }
0x195b   :  { %v4933_v38 = vpack.c.bf16 %v3866_v25, %v3865_v34 }
0x195d   :  { %4934 = vmatpush3.bf16.msra.mxu1 %v4933_v38 }
0x195e   :  { %4833 = vmatprep.subr.bf16.mxu1 %v5139_v23 }
0x1960   :  { %4831 = vmatmul.mubr.msk.f32.vlgmr.msra.gmra.mrb[50].mxu1 %vm113_vm0, %v3867_v32 }
0x1961   :  { %4834 = vmatpush3.bf16.msra.mxu1 %v4987_v6  ;;  %4837 = vmatprep.mubr.msk.bf16.mxu1 %vm5140_vm3, %v5139_v23 }
0x1962   :  { %4835 = vmatprep.subr.bf16.mxu1 %v5139_v23 }
0x1965   :  { %4836 = vmatpush3.bf16.msra.mxu1 %v4988_v36 }
0x1966   :  { %4841 = vmatprep.subr.bf16.mxu1 %v5139_v23 }
0x1a33   :  { %v3937_v18 = vpop.f32.mrb[50].mxu1 }
0x1a34   :  { %v3941_v37 = vpack.c.bf16 %v3937_v18, %v3937_v18  ;;  %v4832_v40 = vpop.f32.mrb[51].mxu1 }
0x1a36   :  { %4838 = vmatmul.mubr.msk.bf16.vlgmr.msra.gmra.mrb[60].mxu1 %vm113_vm0, %v3941_v37 }
0x1a37   :  { %4845 = vmatprep.mubr.msk.bf16.mxu1 %vm5140_vm3, %v5139_v23  ;;  %4842 = vmatpush3.bf16.msra.mxu1 %v4989_v46 }
0x1a38   :  { %4843 = vmatprep.subr.bf16.mxu1 %v5139_v23  ;;  %v4339_v23 = vld [vmem:[%s5976_s26] ss:$0 sm:$0xff] }
0x1a3b   :  { %4844 = vmatpush3.bf16.msra.mxu1 %v4990_v41 }
0x1b09   :  { %v4002_v54 = vpop.f32.mrb[60].mxu1 }
0x1b0a   :  { %v4003_v24 = vadd.f32 %v4335_v20, %v4002_v54  ;;  %v4839_v7 = vpop.f32.mrb[61].mxu1 }
0x1b0b   :  { %v4005_v43 = vpop.f32.mrb[62].mxu1 }
0x1b0c   :  { %5111 = vtanh.f32 %v4003_v24  ;;  %v4840_v44 = vpop.f32.mrb[63].mxu1 }
0x1b16   :  { %v5112_v45 = vpop.eup %5111 }
0x1b17   :  { %v4009_v42 = vpack.c.bf16 %v5112_v45, %v5112_v45 }
0x1b19   :  { %4846 = vmatmul.mubr.msk.bf16.vlgmr.msra.gmra.mrb[64].mxu1 %vm113_vm0, %v4009_v42 }
0x1bec   :  { %v4070_v49 = vpop.f32.mrb[64].mxu1 }
0x1bed   :  { %v4071_v31 = vadd.f32 %v4339_v23, %v4070_v49  ;;  %v4847_v52 = vpop.f32.mrb[65].mxu1 }
0x1bee   :  { %v4073_v53 = vpop.f32.mrb[66].mxu1 }
0x1bef   :  { %v4848_v56 = vpop.f32.mrb[67].mxu1  ;;  %4077 = vst.msk [vmem:[#allocation2] sm:$0x3] %vm4076_vm4, %v4071_v31 }
0x1bf0   :  { %5126 = shalt.err (!%p5123_p4)
}
0x1bf1   :  { %s5127_s26 = scalar_lea.hbm %s5977_s27, 32 }
0x1bf2   :  { %p5128_p5 = scmp.ne.s32.totalorder %s5977_s27, %s5127_s26  ;;  %p5131_p6 = scmp.lt.u32.totalorder %s5127_s26, %s5977_s27 }
0x1bf4   :  { %p5133_p7 = pnand %p5131_p6, %p5128_p5 }
0x1bf6   :  { %5136 = shalt.err (!%p5133_p7)
}
0x1bf7   :  { %4087 = dma.vmem_to_hbm [thread:$0]  %s4085_s4, 32, %s5977_s27, [#allocation3]  }
0x1bf8   :  { %5137 = dma.done.wait [#allocation3], 32  }
0x1bf9   :  { %5138 = vsyncadd [#allocation3], 4294967264 }
0x1bfa   :  { %4091 = vsyncpa [#allocation3], 1 }

</bundles_post_ra>
